<compile_context>
chip_gen: v7x
topology: tpu7x:2x2x1
jax: 0.10.0
libtpu: 0.0.40
codegen_flags: <defaults>
</compile_context>

<pallas_src>
import functools

import jax
import jax.numpy as jnp
from jax.experimental import pallas as pl
from jax.experimental.pallas import tpu as pltpu


def _spatial_attention_kernel(x_ref, w_ref, o_ref, sum_acc, max_acc, pad_buf,
                              *, C, c_tile, H, W, K, pad, row_off, col_off,
                              needs_mask):
    c_idx = pl.program_id(1)
    n_c = pl.num_programs(1)

    # ---- init accumulators on the first channel block of this batch row ----
    @pl.when(c_idx == 0)
    def _init():
        sum_acc[...] = jnp.zeros_like(sum_acc)
        max_acc[...] = jnp.full_like(max_acc, -jnp.inf)

    # ---- per-tile channel reduction (hot loop: 1 DMA-in + reduce only) ----
    xb = x_ref[...]                                   # (1, c_tile, H, W) native dtype

    def _accumulate(mask_tail):
        if mask_tail:
            # Padded channels contribute 0 to the sum and -inf to the max.
            ch = c_idx * c_tile + jax.lax.broadcasted_iota(jnp.int32, xb.shape, 1)
            valid = ch < C
            xs = jnp.where(valid, xb, jnp.zeros_like(xb))
            xm = jnp.where(valid, xb, jnp.full_like(xb, -jnp.inf))
        else:
            xs = xb
            xm = xb
        sum_acc[...] += jnp.sum(xs, axis=1, dtype=jnp.float32)           # (1, H, W)
        max_acc[...] = jnp.maximum(max_acc[...],
                                   jnp.max(xm, axis=1).astype(jnp.float32))

    if needs_mask:
        # Only the last (remainder) channel block pays the mask cost.
        @pl.when(c_idx < n_c - 1)
        def _full_tile():
            _accumulate(False)

        @pl.when(c_idx == n_c - 1)
        def _tail_tile():
            _accumulate(True)
    else:
        _accumulate(False)

    # ---- finalize: 7x7 conv over (avg, max) + sigmoid, only on last block ----
    @pl.when(c_idx == n_c - 1)
    def _finalize():
        # Zero-padded staging buffer; maps placed at an (8,128)-aligned offset so
        # these stores are dense/unmasked.
        pad_buf[...] = jnp.zeros_like(pad_buf)
        pad_buf[0, pl.ds(row_off, H), pl.ds(col_off, W)] = sum_acc[0]
        pad_buf[1, pl.ds(row_off, H), pl.ds(col_off, W)] = max_acc[0]

        inv_c = 1.0 / C                      # fold mean scale into channel-0 weights
        acc = jnp.zeros((H, W), jnp.float32)
        for ci in range(2):
            for ki in range(K):
                for kj in range(K):
                    wv = w_ref[ci * K * K + ki * K + kj]      # scalar from SMEM
                    if ci == 0:
                        wv = wv * inv_c                        # scalar-unit mul
                    r0 = row_off - pad + ki
                    c0 = col_off - pad + kj
                    acc = acc + wv * pad_buf[ci, pl.ds(r0, H), pl.ds(c0, W)]

        att = 1.0 / (1.0 + jnp.exp(-acc))             # sigmoid (exp on EUP)
        o_ref[...] = att[None, None, :, :].astype(o_ref.dtype)


def spatial_attention(x, conv_weight, *, c_tile_bytes=4 * 1024 * 1024):
    """x: (B, C, H, W); conv_weight: (1, 2, K, K) PyTorch Conv2d weight (bias-free).
    Returns the spatial attention map of shape (B, 1, H, W)."""
    B, C, H, W = x.shape
    Kout, Kin, K, K2 = conv_weight.shape
    assert Kout == 1 and Kin == 2 and K == K2
    pad = (K - 1) // 2

    # Aligned offsets inside the padded staging buffer (>= pad, multiples of 8/128).
    row_off = max(8, ((pad + 7) // 8) * 8)
    col_off = max(128, ((pad + 127) // 128) * 128)

    # Channel tile: largest tile with <= ~4 MiB per input buffer (double-buffered
    # => <= ~8 MiB pipelined; safe within scoped VMEM on v5e/v6e/v7x).
    itemsize = jnp.dtype(x.dtype).itemsize
    per_channel = max(1, H * W * itemsize)
    c_tile = max(1, min(C, c_tile_bytes // per_channel))
    if C % c_tile != 0:
        # Prefer a divisor of C (no masked remainder tile) if it's not much smaller.
        for d in range(c_tile, 0, -1):
            if C % d == 0:
                if d >= max(1, c_tile // 2):
                    c_tile = d
                break
    n_c = pl.cdiv(C, c_tile)
    needs_mask = (C % c_tile) != 0

    w_flat = conv_weight.reshape(-1).astype(jnp.float32)    # (2*K*K,) -> SMEM scalars

    kernel = functools.partial(
        _spatial_attention_kernel,
        C=C, c_tile=c_tile, H=H, W=W, K=K, pad=pad,
        row_off=row_off, col_off=col_off, needs_mask=needs_mask)

    # TODO(synk): for extremely large single-channel planes (H*W tiles that do not
    # fit VMEM) an additional spatial grid axis would be needed; typical CBAM
    # feature maps do not require it.
    out = pl.pallas_call(
        kernel,
        out_shape=jax.ShapeDtypeStruct((B, 1, H, W), x.dtype),
        grid=(B, n_c),
        in_specs=[
            pl.BlockSpec((1, c_tile, H, W), lambda b, c: (b, c, 0, 0)),
            pl.BlockSpec(memory_space=pltpu.MemorySpace.SMEM),   # conv weights, resident
        ],
        out_specs=pl.BlockSpec((1, 1, H, W), lambda b, c: (b, 0, 0, 0)),
        scratch_shapes=[
            pltpu.VMEM((1, H, W), jnp.float32),                                   # sum acc
            pltpu.VMEM((1, H, W), jnp.float32),                                   # max acc
            pltpu.VMEM((2, row_off + H + pad, col_off + W + pad), jnp.float32),   # padded maps
        ],
        compiler_params=pltpu.CompilerParams(
            dimension_semantics=("parallel", "arbitrary"),
            vmem_limit_bytes=32 * 1024 * 1024),
    )(x, w_flat)
    return out


def spatial_attention_ref(x, conv_weight):
    """Pure-JAX reference matching the PyTorch forward."""
    pad = (conv_weight.shape[-1] - 1) // 2
    xf = x.astype(jnp.float32)
    avg = jnp.mean(xf, axis=1, keepdims=True)          # (B, 1, H, W)
    mx = jnp.max(xf, axis=1, keepdims=True)            # (B, 1, H, W)
    pooled = jnp.concatenate([avg, mx], axis=1)        # (B, 2, H, W)
    conv = jax.lax.conv_general_dilated(
        pooled, conv_weight.astype(jnp.float32),
        window_strides=(1, 1), padding=[(pad, pad), (pad, pad)],
        dimension_numbers=("NCHW", "OIHW", "NCHW"),
        precision=jax.lax.Precision.HIGHEST)
    return jax.nn.sigmoid(conv).astype(x.dtype)


if __name__ == "__main__":
    # Module config: kernel_size=7 -> padding=3; toy input (B, C, H, W) = (2, 4, 16, 16)
    B, C, H, W = 2, 4, 16, 16
    K = 7

    key = jax.random.PRNGKey(0)
    kx, kw = jax.random.split(key, 2)
    x = jax.random.normal(kx, (B, C, H, W), dtype=jnp.float32)
    # PyTorch Conv2d(2, 1, 7, padding=3, bias=False) weight shape: (1, 2, 7, 7)
    w = jax.random.normal(kw, (1, 2, K, K), dtype=jnp.float32) * 0.1

    out = spatial_attention(x, w)
    out = jax.block_until_ready(out)

    ref = spatial_attention_ref(x, w)
    assert out.shape == (B, 1, H, W), out.shape
    assert jnp.allclose(out, ref, atol=1e-5, rtol=1e-5), "mismatch vs reference"

    print("KERNEL_OK")
</pallas_src>

<mosaic_0001>
module attributes {stable_mosaic.version = 11 : i64} {
  func.func @_spatial_attention_kernel(%arg0: i32, %arg1: i32, %arg2: memref<1x4x16x16xf32, #tpu.memory_space<vmem>>, %arg3: memref<98xf32, #tpu.memory_space<smem>>, %arg4: memref<1x1x16x16xf32, #tpu.memory_space<vmem>>, %arg5: memref<1x16x16xf32, #tpu.memory_space<vmem>>, %arg6: memref<1x16x16xf32, #tpu.memory_space<vmem>>, %arg7: memref<2x27x147xf32, #tpu.memory_space<vmem>>) attributes {dimension_semantics = [#tpu.dimension_semantics<parallel>, #tpu.dimension_semantics<arbitrary>], iteration_bounds = array<i64: 2, 1>, scalar_prefetch = 0 : i64, scratch_operands = 3 : i64, tpu.core_type = #tpu.core_type<tc>, window_params = [{transform_indices = @transform_0, window_bounds = array<i64: 1, 4, 16, 16>}, {transform_indices = @transform_1, window_bounds = array<i64: 98>}, {transform_indices = @transform_2, window_bounds = array<i64: 1, 1, 16, 16>}]} {
    %c0_i32 = arith.constant 0 : i32
    %0 = arith.cmpi eq, %arg1, %c0_i32 : i32
    %1 = arith.extui %0 : i1 to i32
    %c0_i32_0 = arith.constant 0 : i32
    %2 = arith.cmpi ne, %1, %c0_i32_0 : i32
    scf.if %2 {
      %cst_19 = arith.constant 0.000000e+00 : f32
      %15 = vector.broadcast %cst_19 : f32 to vector<1x16x16xf32>
      %c0_20 = arith.constant 0 : index
      %c0_21 = arith.constant 0 : index
      %c0_22 = arith.constant 0 : index
      %16 = vector.load %arg5[%c0_20, %c0_21, %c0_22] : memref<1x16x16xf32, #tpu.memory_space<vmem>>, vector<1x16x16xf32>
      tpu.vector_store %arg5[%c0_20, %c0_21, %c0_22], %15 {strides = array<i32>} : memref<1x16x16xf32, #tpu.memory_space<vmem>>, vector<1x16x16xf32>,
      %cst_23 = arith.constant 0xFF800000 : f32
      %17 = vector.broadcast %cst_23 : f32 to vector<1x16x16xf32>
      %c0_24 = arith.constant 0 : index
      %c0_25 = arith.constant 0 : index
      %c0_26 = arith.constant 0 : index
      %18 = vector.load %arg6[%c0_24, %c0_25, %c0_26] : memref<1x16x16xf32, #tpu.memory_space<vmem>>, vector<1x16x16xf32>
      tpu.vector_store %arg6[%c0_24, %c0_25, %c0_26], %17 {strides = array<i32>} : memref<1x16x16xf32, #tpu.memory_space<vmem>>, vector<1x16x16xf32>,
    } else {
    }
    %c0 = arith.constant 0 : index
    %c0_1 = arith.constant 0 : index
    %c0_2 = arith.constant 0 : index
    %c0_3 = arith.constant 0 : index
    %3 = vector.load %arg2[%c0, %c0_1, %c0_2, %c0_3] : memref<1x4x16x16xf32, #tpu.memory_space<vmem>>, vector<1x4x16x16xf32>
    %c0_4 = arith.constant 0 : index
    %c0_5 = arith.constant 0 : index
    %c0_6 = arith.constant 0 : index
    %4 = vector.load %arg5[%c0_4, %c0_5, %c0_6] : memref<1x16x16xf32, #tpu.memory_space<vmem>>, vector<1x16x16xf32>
    %cst = arith.constant dense<0.000000e+00> : vector<1x16x16xf32>
    %5 = vector.multi_reduction <add>, %3, %cst [1] : vector<1x4x16x16xf32> to vector<1x16x16xf32>
    %6 = arith.addf %4, %5 : vector<1x16x16xf32>
    %c0_7 = arith.constant 0 : index
    %c0_8 = arith.constant 0 : index
    %c0_9 = arith.constant 0 : index
    %7 = vector.load %arg5[%c0_7, %c0_8, %c0_9] : memref<1x16x16xf32, #tpu.memory_space<vmem>>, vector<1x16x16xf32>
    tpu.vector_store %arg5[%c0_7, %c0_8, %c0_9], %6 {strides = array<i32>} : memref<1x16x16xf32, #tpu.memory_space<vmem>>, vector<1x16x16xf32>,
    %c0_10 = arith.constant 0 : index
    %c0_11 = arith.constant 0 : index
    %c0_12 = arith.constant 0 : index
    %8 = vector.load %arg6[%c0_10, %c0_11, %c0_12] : memref<1x16x16xf32, #tpu.memory_space<vmem>>, vector<1x16x16xf32>
    %cst_13 = arith.constant dense<0xFF800000> : vector<1x16x16xf32>
    %9 = vector.multi_reduction <maximumf>, %3, %cst_13 [1] : vector<1x4x16x16xf32> to vector<1x16x16xf32>
    %10 = arith.maximumf %8, %9 : vector<1x16x16xf32>
    %c0_14 = arith.constant 0 : index
    %c0_15 = arith.constant 0 : index
    %c0_16 = arith.constant 0 : index
    %11 = vector.load %arg6[%c0_14, %c0_15, %c0_16] : memref<1x16x16xf32, #tpu.memory_space<vmem>>, vector<1x16x16xf32>
    tpu.vector_store %arg6[%c0_14, %c0_15, %c0_16], %10 {strides = array<i32>} : memref<1x16x16xf32, #tpu.memory_space<vmem>>, vector<1x16x16xf32>,
    %c0_i32_17 = arith.constant 0 : i32
    %12 = arith.cmpi eq, %arg1, %c0_i32_17 : i32
    %13 = arith.extui %12 : i1 to i32
    %c0_i32_18 = arith.constant 0 : i32
    %14 = arith.cmpi ne, %13, %c0_i32_18 : i32
    scf.if %14 {
      %cst_19 = arith.constant 0.000000e+00 : f32
      %15 = vector.broadcast %cst_19 : f32 to vector<2x27x147xf32>
      %c0_20 = arith.constant 0 : index
      %c0_21 = arith.constant 0 : index
      %c0_22 = arith.constant 0 : index
      %16 = vector.load %arg7[%c0_20, %c0_21, %c0_22] : memref<2x27x147xf32, #tpu.memory_space<vmem>>, vector<2x27x147xf32>
      tpu.vector_store %arg7[%c0_20, %c0_21, %c0_22], %15 {strides = array<i32>} : memref<2x27x147xf32, #tpu.memory_space<vmem>>, vector<2x27x147xf32>,
      %c0_23 = arith.constant 0 : index
      %c0_24 = arith.constant 0 : index
      %c0_25 = arith.constant 0 : index
      %17 = vector.load %arg5[%c0_23, %c0_24, %c0_25] : memref<1x16x16xf32, #tpu.memory_space<vmem>>, vector<1x16x16xf32>
      %18 = vector.shape_cast %17 : vector<1x16x16xf32> to vector<16x16xf32>
      %c0_26 = arith.constant 0 : index
      %c8 = arith.constant 8 : index
      %c128 = arith.constant 128 : index
      %19 = vector.load %arg7[%c0_26, %c8, %c128] : memref<2x27x147xf32, #tpu.memory_space<vmem>>, vector<1x16x16xf32>
      %20 = vector.shape_cast %19 : vector<1x16x16xf32> to vector<16x16xf32>
      %21 = vector.shape_cast %18 : vector<16x16xf32> to vector<1x16x16xf32>
      tpu.vector_store %arg7[%c0_26, %c8, %c128], %21 {strides = array<i32>} : memref<2x27x147xf32, #tpu.memory_space<vmem>>, vector<1x16x16xf32>,
      %c0_27 = arith.constant 0 : index
      %c0_28 = arith.constant 0 : index
      %c0_29 = arith.constant 0 : index
      %22 = vector.load %arg6[%c0_27, %c0_28, %c0_29] : memref<1x16x16xf32, #tpu.memory_space<vmem>>, vector<1x16x16xf32>
      %23 = vector.shape_cast %22 : vector<1x16x16xf32> to vector<16x16xf32>
      %c1 = arith.constant 1 : index
      %c8_30 = arith.constant 8 : index
      %c128_31 = arith.constant 128 : index
      %24 = vector.load %arg7[%c1, %c8_30, %c128_31] : memref<2x27x147xf32, #tpu.memory_space<vmem>>, vector<1x16x16xf32>
      %25 = vector.shape_cast %24 : vector<1x16x16xf32> to vector<16x16xf32>
      %26 = vector.shape_cast %23 : vector<16x16xf32> to vector<1x16x16xf32>
      tpu.vector_store %arg7[%c1, %c8_30, %c128_31], %26 {strides = array<i32>} : memref<2x27x147xf32, #tpu.memory_space<vmem>>, vector<1x16x16xf32>,
      %cst_32 = arith.constant 0.000000e+00 : f32
      %27 = vector.broadcast %cst_32 : f32 to vector<16x16xf32>
      %c0_33 = arith.constant 0 : index
      %28 = memref.load %arg3[%c0_33] : memref<98xf32, #tpu.memory_space<smem>>
      %cst_34 = arith.constant 2.500000e-01 : f32
      %29 = arith.mulf %28, %cst_34 : f32
      %c0_35 = arith.constant 0 : index
      %c5 = arith.constant 5 : index
      %c125 = arith.constant 125 : index
      %30 = vector.load %arg7[%c0_35, %c5, %c125] : memref<2x27x147xf32, #tpu.memory_space<vmem>>, vector<1x16x16xf32>
      %31 = vector.shape_cast %30 : vector<1x16x16xf32> to vector<16x16xf32>
      %32 = vector.broadcast %29 : f32 to vector<16x16xf32>
      %33 = arith.mulf %32, %31 : vector<16x16xf32>
      %34 = arith.addf %27, %33 : vector<16x16xf32>
      %c1_36 = arith.constant 1 : index
      %35 = memref.load %arg3[%c1_36] : memref<98xf32, #tpu.memory_space<smem>>
      %cst_37 = arith.constant 2.500000e-01 : f32
      %36 = arith.mulf %35, %cst_37 : f32
      %c0_38 = arith.constant 0 : index
      %c5_39 = arith.constant 5 : index
      %c126 = arith.constant 126 : index
      %37 = vector.load %arg7[%c0_38, %c5_39, %c126] : memref<2x27x147xf32, #tpu.memory_space<vmem>>, vector<1x16x16xf32>
      %38 = vector.shape_cast %37 : vector<1x16x16xf32> to vector<16x16xf32>
      %39 = vector.broadcast %36 : f32 to vector<16x16xf32>
      %40 = arith.mulf %39, %38 : vector<16x16xf32>
      %41 = arith.addf %34, %40 : vector<16x16xf32>
      %c2 = arith.constant 2 : index
      %42 = memref.load %arg3[%c2] : memref<98xf32, #tpu.memory_space<smem>>
      %cst_40 = arith.constant 2.500000e-01 : f32
      %43 = arith.mulf %42, %cst_40 : f32
      %c0_41 = arith.constant 0 : index
      %c5_42 = arith.constant 5 : index
      %c127 = arith.constant 127 : index
      %44 = vector.load %arg7[%c0_41, %c5_42, %c127] : memref<2x27x147xf32, #tpu.memory_space<vmem>>, vector<1x16x16xf32>
      %45 = vector.shape_cast %44 : vector<1x16x16xf32> to vector<16x16xf32>
      %46 = vector.broadcast %43 : f32 to vector<16x16xf32>
      %47 = arith.mulf %46, %45 : vector<16x16xf32>
      %48 = arith.addf %41, %47 : vector<16x16xf32>
      %c3 = arith.constant 3 : index
      %49 = memref.load %arg3[%c3] : memref<98xf32, #tpu.memory_space<smem>>
      %cst_43 = arith.constant 2.500000e-01 : f32
      %50 = arith.mulf %49, %cst_43 : f32
      %c0_44 = arith.constant 0 : index
      %c5_45 = arith.constant 5 : index
      %c128_46 = arith.constant 128 : index
      %51 = vector.load %arg7[%c0_44, %c5_45, %c128_46] : memref<2x27x147xf32, #tpu.memory_space<vmem>>, vector<1x16x16xf32>
      %52 = vector.shape_cast %51 : vector<1x16x16xf32> to vector<16x16xf32>
      %53 = vector.broadcast %50 : f32 to vector<16x16xf32>
      %54 = arith.mulf %53, %52 : vector<16x16xf32>
      %55 = arith.addf %48, %54 : vector<16x16xf32>
      %c4 = arith.constant 4 : index
      %56 = memref.load %arg3[%c4] : memref<98xf32, #tpu.memory_space<smem>>
      %cst_47 = arith.constant 2.500000e-01 : f32
      %57 = arith.mulf %56, %cst_47 : f32
      %c0_48 = arith.constant 0 : index
      %c5_49 = arith.constant 5 : index
      %c129 = arith.constant 129 : index
      %58 = vector.load %arg7[%c0_48, %c5_49, %c129] : memref<2x27x147xf32, #tpu.memory_space<vmem>>, vector<1x16x16xf32>
      %59 = vector.shape_cast %58 : vector<1x16x16xf32> to vector<16x16xf32>
      %60 = vector.broadcast %57 : f32 to vector<16x16xf32>
      %61 = arith.mulf %60, %59 : vector<16x16xf32>
      %62 = arith.addf %55, %61 : vector<16x16xf32>
      %c5_50 = arith.constant 5 : index
      %63 = memref.load %arg3[%c5_50] : memref<98xf32, #tpu.memory_space<smem>>
      %cst_51 = arith.constant 2.500000e-01 : f32
      %64 = arith.mulf %63, %cst_51 : f32
      %c0_52 = arith.constant 0 : index
      %c5_53 = arith.constant 5 : index
      %c130 = arith.constant 130 : index
      %65 = vector.load %arg7[%c0_52, %c5_53, %c130] : memref<2x27x147xf32, #tpu.memory_space<vmem>>, vector<1x16x16xf32>
      %66 = vector.shape_cast %65 : vector<1x16x16xf32> to vector<16x16xf32>
      %67 = vector.broadcast %64 : f32 to vector<16x16xf32>
      %68 = arith.mulf %67, %66 : vector<16x16xf32>
      %69 = arith.addf %62, %68 : vector<16x16xf32>
      %c6 = arith.constant 6 : index
      %70 = memref.load %arg3[%c6] : memref<98xf32, #tpu.memory_space<smem>>
      %cst_54 = arith.constant 2.500000e-01 : f32
      %71 = arith.mulf %70, %cst_54 : f32
      %c0_55 = arith.constant 0 : index
      %c5_56 = arith.constant 5 : index
      %c131 = arith.constant 131 : index
      %72 = vector.load %arg7[%c0_55, %c5_56, %c131] : memref<2x27x147xf32, #tpu.memory_space<vmem>>, vector<1x16x16xf32>
      %73 = vector.shape_cast %72 : vector<1x16x16xf32> to vector<16x16xf32>
      %74 = vector.broadcast %71 : f32 to vector<16x16xf32>
      %75 = arith.mulf %74, %73 : vector<16x16xf32>
      %76 = arith.addf %69, %75 : vector<16x16xf32>
      %c7 = arith.constant 7 : index
      %77 = memref.load %arg3[%c7] : memref<98xf32, #tpu.memory_space<smem>>
      %cst_57 = arith.constant 2.500000e-01 : f32
      %78 = arith.mulf %77, %cst_57 : f32
      %c0_58 = arith.constant 0 : index
      %c6_59 = arith.constant 6 : index
      %c125_60 = arith.constant 125 : index
      %79 = vector.load %arg7[%c0_58, %c6_59, %c125_60] : memref<2x27x147xf32, #tpu.memory_space<vmem>>, vector<1x16x16xf32>
      %80 = vector.shape_cast %79 : vector<1x16x16xf32> to vector<16x16xf32>
      %81 = vector.broadcast %78 : f32 to vector<16x16xf32>
      %82 = arith.mulf %81, %80 : vector<16x16xf32>
      %83 = arith.addf %76, %82 : vector<16x16xf32>
      %c8_61 = arith.constant 8 : index
      %84 = memref.load %arg3[%c8_61] : memref<98xf32, #tpu.memory_space<smem>>
      %cst_62 = arith.constant 2.500000e-01 : f32
      %85 = arith.mulf %84, %cst_62 : f32
      %c0_63 = arith.constant 0 : index
      %c6_64 = arith.constant 6 : index
      %c126_65 = arith.constant 126 : index
      %86 = vector.load %arg7[%c0_63, %c6_64, %c126_65] : memref<2x27x147xf32, #tpu.memory_space<vmem>>, vector<1x16x16xf32>
      %87 = vector.shape_cast %86 : vector<1x16x16xf32> to vector<16x16xf32>
      %88 = vector.broadcast %85 : f32 to vector<16x16xf32>
      %89 = arith.mulf %88, %87 : vector<16x16xf32>
      %90 = arith.addf %83, %89 : vector<16x16xf32>
      %c9 = arith.constant 9 : index
      %91 = memref.load %arg3[%c9] : memref<98xf32, #tpu.memory_space<smem>>
      %cst_66 = arith.constant 2.500000e-01 : f32
      %92 = arith.mulf %91, %cst_66 : f32
      %c0_67 = arith.constant 0 : index
      %c6_68 = arith.constant 6 : index
      %c127_69 = arith.constant 127 : index
      %93 = vector.load %arg7[%c0_67, %c6_68, %c127_69] : memref<2x27x147xf32, #tpu.memory_space<vmem>>, vector<1x16x16xf32>
      %94 = vector.shape_cast %93 : vector<1x16x16xf32> to vector<16x16xf32>
      %95 = vector.broadcast %92 : f32 to vector<16x16xf32>
      %96 = arith.mulf %95, %94 : vector<16x16xf32>
      %97 = arith.addf %90, %96 : vector<16x16xf32>
      %c10 = arith.constant 10 : index
      %98 = memref.load %arg3[%c10] : memref<98xf32, #tpu.memory_space<smem>>
      %cst_70 = arith.constant 2.500000e-01 : f32
      %99 = arith.mulf %98, %cst_70 : f32
      %c0_71 = arith.constant 0 : index
      %c6_72 = arith.constant 6 : index
      %c128_73 = arith.constant 128 : index
      %100 = vector.load %arg7[%c0_71, %c6_72, %c128_73] : memref<2x27x147xf32, #tpu.memory_space<vmem>>, vector<1x16x16xf32>
      %101 = vector.shape_cast %100 : vector<1x16x16xf32> to vector<16x16xf32>
      %102 = vector.broadcast %99 : f32 to vector<16x16xf32>
      %103 = arith.mulf %102, %101 : vector<16x16xf32>
      %104 = arith.addf %97, %103 : vector<16x16xf32>
      %c11 = arith.constant 11 : index
      %105 = memref.load %arg3[%c11] : memref<98xf32, #tpu.memory_space<smem>>
      %cst_74 = arith.constant 2.500000e-01 : f32
      %106 = arith.mulf %105, %cst_74 : f32
      %c0_75 = arith.constant 0 : index
      %c6_76 = arith.constant 6 : index
      %c129_77 = arith.constant 129 : index
      %107 = vector.load %arg7[%c0_75, %c6_76, %c129_77] : memref<2x27x147xf32, #tpu.memory_space<vmem>>, vector<1x16x16xf32>
      %108 = vector.shape_cast %107 : vector<1x16x16xf32> to vector<16x16xf32>
      %109 = vector.broadcast %106 : f32 to vector<16x16xf32>
      %110 = arith.mulf %109, %108 : vector<16x16xf32>
      %111 = arith.addf %104, %110 : vector<16x16xf32>
      %c12 = arith.constant 12 : index
      %112 = memref.load %arg3[%c12] : memref<98xf32, #tpu.memory_space<smem>>
      %cst_78 = arith.constant 2.500000e-01 : f32
      %113 = arith.mulf %112, %cst_78 : f32
      %c0_79 = arith.constant 0 : index
      %c6_80 = arith.constant 6 : index
      %c130_81 = arith.constant 130 : index
      %114 = vector.load %arg7[%c0_79, %c6_80, %c130_81] : memref<2x27x147xf32, #tpu.memory_space<vmem>>, vector<1x16x16xf32>
      %115 = vector.shape_cast %114 : vector<1x16x16xf32> to vector<16x16xf32>
      %116 = vector.broadcast %113 : f32 to vector<16x16xf32>
      %117 = arith.mulf %116, %115 : vector<16x16xf32>
      %118 = arith.addf %111, %117 : vector<16x16xf32>
      %c13 = arith.constant 13 : index
      %119 = memref.load %arg3[%c13] : memref<98xf32, #tpu.memory_space<smem>>
      %cst_82 = arith.constant 2.500000e-01 : f32
      %120 = arith.mulf %119, %cst_82 : f32
      %c0_83 = arith.constant 0 : index
      %c6_84 = arith.constant 6 : index
      %c131_85 = arith.constant 131 : index
      %121 = vector.load %arg7[%c0_83, %c6_84, %c131_85] : memref<2x27x147xf32, #tpu.memory_space<vmem>>, vector<1x16x16xf32>
      %122 = vector.shape_cast %121 : vector<1x16x16xf32> to vector<16x16xf32>
      %123 = vector.broadcast %120 : f32 to vector<16x16xf32>
      %124 = arith.mulf %123, %122 : vector<16x16xf32>
      %125 = arith.addf %118, %124 : vector<16x16xf32>
      %c14 = arith.constant 14 : index
      %126 = memref.load %arg3[%c14] : memref<98xf32, #tpu.memory_space<smem>>
      %cst_86 = arith.constant 2.500000e-01 : f32
      %127 = arith.mulf %126, %cst_86 : f32
      %c0_87 = arith.constant 0 : index
      %c7_88 = arith.constant 7 : index
      %c125_89 = arith.constant 125 : index
      %128 = vector.load %arg7[%c0_87, %c7_88, %c125_89] : memref<2x27x147xf32, #tpu.memory_space<vmem>>, vector<1x16x16xf32>
      %129 = vector.shape_cast %128 : vector<1x16x16xf32> to vector<16x16xf32>
      %130 = vector.broadcast %127 : f32 to vector<16x16xf32>
      %131 = arith.mulf %130, %129 : vector<16x16xf32>
      %132 = arith.addf %125, %131 : vector<16x16xf32>
      %c15 = arith.constant 15 : index
      %133 = memref.load %arg3[%c15] : memref<98xf32, #tpu.memory_space<smem>>
      %cst_90 = arith.constant 2.500000e-01 : f32
      %134 = arith.mulf %133, %cst_90 : f32
      %c0_91 = arith.constant 0 : index
      %c7_92 = arith.constant 7 : index
      %c126_93 = arith.constant 126 : index
      %135 = vector.load %arg7[%c0_91, %c7_92, %c126_93] : memref<2x27x147xf32, #tpu.memory_space<vmem>>, vector<1x16x16xf32>
      %136 = vector.shape_cast %135 : vector<1x16x16xf32> to vector<16x16xf32>
      %137 = vector.broadcast %134 : f32 to vector<16x16xf32>
      %138 = arith.mulf %137, %136 : vector<16x16xf32>
      %139 = arith.addf %132, %138 : vector<16x16xf32>
      %c16 = arith.constant 16 : index
      %140 = memref.load %arg3[%c16] : memref<98xf32, #tpu.memory_space<smem>>
      %cst_94 = arith.constant 2.500000e-01 : f32
      %141 = arith.mulf %140, %cst_94 : f32
      %c0_95 = arith.constant 0 : index
      %c7_96 = arith.constant 7 : index
      %c127_97 = arith.constant 127 : index
      %142 = vector.load %arg7[%c0_95, %c7_96, %c127_97] : memref<2x27x147xf32, #tpu.memory_space<vmem>>, vector<1x16x16xf32>
      %143 = vector.shape_cast %142 : vector<1x16x16xf32> to vector<16x16xf32>
      %144 = vector.broadcast %141 : f32 to vector<16x16xf32>
      %145 = arith.mulf %144, %143 : vector<16x16xf32>
      %146 = arith.addf %139, %145 : vector<16x16xf32>
      %c17 = arith.constant 17 : index
      %147 = memref.load %arg3[%c17] : memref<98xf32, #tpu.memory_space<smem>>
      %cst_98 = arith.constant 2.500000e-01 : f32
      %148 = arith.mulf %147, %cst_98 : f32
      %c0_99 = arith.constant 0 : index
      %c7_100 = arith.constant 7 : index
      %c128_101 = arith.constant 128 : index
      %149 = vector.load %arg7[%c0_99, %c7_100, %c128_101] : memref<2x27x147xf32, #tpu.memory_space<vmem>>, vector<1x16x16xf32>
      %150 = vector.shape_cast %149 : vector<1x16x16xf32> to vector<16x16xf32>
      %151 = vector.broadcast %148 : f32 to vector<16x16xf32>
      %152 = arith.mulf %151, %150 : vector<16x16xf32>
      %153 = arith.addf %146, %152 : vector<16x16xf32>
      %c18 = arith.constant 18 : index
      %154 = memref.load %arg3[%c18] : memref<98xf32, #tpu.memory_space<smem>>
      %cst_102 = arith.constant 2.500000e-01 : f32
      %155 = arith.mulf %154, %cst_102 : f32
      %c0_103 = arith.constant 0 : index
      %c7_104 = arith.constant 7 : index
      %c129_105 = arith.constant 129 : index
      %156 = vector.load %arg7[%c0_103, %c7_104, %c129_105] : memref<2x27x147xf32, #tpu.memory_space<vmem>>, vector<1x16x16xf32>
      %157 = vector.shape_cast %156 : vector<1x16x16xf32> to vector<16x16xf32>
      %158 = vector.broadcast %155 : f32 to vector<16x16xf32>
      %159 = arith.mulf %158, %157 : vector<16x16xf32>
      %160 = arith.addf %153, %159 : vector<16x16xf32>
      %c19 = arith.constant 19 : index
      %161 = memref.load %arg3[%c19] : memref<98xf32, #tpu.memory_space<smem>>
      %cst_106 = arith.constant 2.500000e-01 : f32
      %162 = arith.mulf %161, %cst_106 : f32
      %c0_107 = arith.constant 0 : index
      %c7_108 = arith.constant 7 : index
      %c130_109 = arith.constant 130 : index
      %163 = vector.load %arg7[%c0_107, %c7_108, %c130_109] : memref<2x27x147xf32, #tpu.memory_space<vmem>>, vector<1x16x16xf32>
      %164 = vector.shape_cast %163 : vector<1x16x16xf32> to vector<16x16xf32>
      %165 = vector.broadcast %162 : f32 to vector<16x16xf32>
      %166 = arith.mulf %165, %164 : vector<16x16xf32>
      %167 = arith.addf %160, %166 : vector<16x16xf32>
      %c20 = arith.constant 20 : index
      %168 = memref.load %arg3[%c20] : memref<98xf32, #tpu.memory_space<smem>>
      %cst_110 = arith.constant 2.500000e-01 : f32
      %169 = arith.mulf %168, %cst_110 : f32
      %c0_111 = arith.constant 0 : index
      %c7_112 = arith.constant 7 : index
      %c131_113 = arith.constant 131 : index
      %170 = vector.load %arg7[%c0_111, %c7_112, %c131_113] : memref<2x27x147xf32, #tpu.memory_space<vmem>>, vector<1x16x16xf32>
      %171 = vector.shape_cast %170 : vector<1x16x16xf32> to vector<16x16xf32>
      %172 = vector.broadcast %169 : f32 to vector<16x16xf32>
      %173 = arith.mulf %172, %171 : vector<16x16xf32>
      %174 = arith.addf %167, %173 : vector<16x16xf32>
      %c21 = arith.constant 21 : index
      %175 = memref.load %arg3[%c21] : memref<98xf32, #tpu.memory_space<smem>>
      %cst_114 = arith.constant 2.500000e-01 : f32
      %176 = arith.mulf %175, %cst_114 : f32
      %c0_115 = arith.constant 0 : index
      %c8_116 = arith.constant 8 : index
      %c125_117 = arith.constant 125 : index
      %177 = vector.load %arg7[%c0_115, %c8_116, %c125_117] : memref<2x27x147xf32, #tpu.memory_space<vmem>>, vector<1x16x16xf32>
      %178 = vector.shape_cast %177 : vector<1x16x16xf32> to vector<16x16xf32>
      %179 = vector.broadcast %176 : f32 to vector<16x16xf32>
      %180 = arith.mulf %179, %178 : vector<16x16xf32>
      %181 = arith.addf %174, %180 : vector<16x16xf32>
      %c22 = arith.constant 22 : index
      %182 = memref.load %arg3[%c22] : memref<98xf32, #tpu.memory_space<smem>>
      %cst_118 = arith.constant 2.500000e-01 : f32
      %183 = arith.mulf %182, %cst_118 : f32
      %c0_119 = arith.constant 0 : index
      %c8_120 = arith.constant 8 : index
      %c126_121 = arith.constant 126 : index
      %184 = vector.load %arg7[%c0_119, %c8_120, %c126_121] : memref<2x27x147xf32, #tpu.memory_space<vmem>>, vector<1x16x16xf32>
      %185 = vector.shape_cast %184 : vector<1x16x16xf32> to vector<16x16xf32>
      %186 = vector.broadcast %183 : f32 to vector<16x16xf32>
      %187 = arith.mulf %186, %185 : vector<16x16xf32>
      %188 = arith.addf %181, %187 : vector<16x16xf32>
      %c23 = arith.constant 23 : index
      %189 = memref.load %arg3[%c23] : memref<98xf32, #tpu.memory_space<smem>>
      %cst_122 = arith.constant 2.500000e-01 : f32
      %190 = arith.mulf %189, %cst_122 : f32
      %c0_123 = arith.constant 0 : index
      %c8_124 = arith.constant 8 : index
      %c127_125 = arith.constant 127 : index
      %191 = vector.load %arg7[%c0_123, %c8_124, %c127_125] : memref<2x27x147xf32, #tpu.memory_space<vmem>>, vector<1x16x16xf32>
      %192 = vector.shape_cast %191 : vector<1x16x16xf32> to vector<16x16xf32>
      %193 = vector.broadcast %190 : f32 to vector<16x16xf32>
      %194 = arith.mulf %193, %192 : vector<16x16xf32>
      %195 = arith.addf %188, %194 : vector<16x16xf32>
      %c24 = arith.constant 24 : index
      %196 = memref.load %arg3[%c24] : memref<98xf32, #tpu.memory_space<smem>>
      %cst_126 = arith.constant 2.500000e-01 : f32
      %197 = arith.mulf %196, %cst_126 : f32
      %c0_127 = arith.constant 0 : index
      %c8_128 = arith.constant 8 : index
      %c128_129 = arith.constant 128 : index
      %198 = vector.load %arg7[%c0_127, %c8_128, %c128_129] : memref<2x27x147xf32, #tpu.memory_space<vmem>>, vector<1x16x16xf32>
      %199 = vector.shape_cast %198 : vector<1x16x16xf32> to vector<16x16xf32>
      %200 = vector.broadcast %197 : f32 to vector<16x16xf32>
      %201 = arith.mulf %200, %199 : vector<16x16xf32>
      %202 = arith.addf %195, %201 : vector<16x16xf32>
      %c25 = arith.constant 25 : index
      %203 = memref.load %arg3[%c25] : memref<98xf32, #tpu.memory_space<smem>>
      %cst_130 = arith.constant 2.500000e-01 : f32
      %204 = arith.mulf %203, %cst_130 : f32
      %c0_131 = arith.constant 0 : index
      %c8_132 = arith.constant 8 : index
      %c129_133 = arith.constant 129 : index
      %205 = vector.load %arg7[%c0_131, %c8_132, %c129_133] : memref<2x27x147xf32, #tpu.memory_space<vmem>>, vector<1x16x16xf32>
      %206 = vector.shape_cast %205 : vector<1x16x16xf32> to vector<16x16xf32>
      %207 = vector.broadcast %204 : f32 to vector<16x16xf32>
      %208 = arith.mulf %207, %206 : vector<16x16xf32>
      %209 = arith.addf %202, %208 : vector<16x16xf32>
      %c26 = arith.constant 26 : index
      %210 = memref.load %arg3[%c26] : memref<98xf32, #tpu.memory_space<smem>>
      %cst_134 = arith.constant 2.500000e-01 : f32
      %211 = arith.mulf %210, %cst_134 : f32
      %c0_135 = arith.constant 0 : index
      %c8_136 = arith.constant 8 : index
      %c130_137 = arith.constant 130 : index
      %212 = vector.load %arg7[%c0_135, %c8_136, %c130_137] : memref<2x27x147xf32, #tpu.memory_space<vmem>>, vector<1x16x16xf32>
      %213 = vector.shape_cast %212 : vector<1x16x16xf32> to vector<16x16xf32>
      %214 = vector.broadcast %211 : f32 to vector<16x16xf32>
      %215 = arith.mulf %214, %213 : vector<16x16xf32>
      %216 = arith.addf %209, %215 : vector<16x16xf32>
      %c27 = arith.constant 27 : index
      %217 = memref.load %arg3[%c27] : memref<98xf32, #tpu.memory_space<smem>>
      %cst_138 = arith.constant 2.500000e-01 : f32
      %218 = arith.mulf %217, %cst_138 : f32
      %c0_139 = arith.constant 0 : index
      %c8_140 = arith.constant 8 : index
      %c131_141 = arith.constant 131 : index
      %219 = vector.load %arg7[%c0_139, %c8_140, %c131_141] : memref<2x27x147xf32, #tpu.memory_space<vmem>>, vector<1x16x16xf32>
      %220 = vector.shape_cast %219 : vector<1x16x16xf32> to vector<16x16xf32>
      %221 = vector.broadcast %218 : f32 to vector<16x16xf32>
      %222 = arith.mulf %221, %220 : vector<16x16xf32>
      %223 = arith.addf %216, %222 : vector<16x16xf32>
      %c28 = arith.constant 28 : index
      %224 = memref.load %arg3[%c28] : memref<98xf32, #tpu.memory_space<smem>>
      %cst_142 = arith.constant 2.500000e-01 : f32
      %225 = arith.mulf %224, %cst_142 : f32
      %c0_143 = arith.constant 0 : index
      %c9_144 = arith.constant 9 : index
      %c125_145 = arith.constant 125 : index
      %226 = vector.load %arg7[%c0_143, %c9_144, %c125_145] : memref<2x27x147xf32, #tpu.memory_space<vmem>>, vector<1x16x16xf32>
      %227 = vector.shape_cast %226 : vector<1x16x16xf32> to vector<16x16xf32>
      %228 = vector.broadcast %225 : f32 to vector<16x16xf32>
      %229 = arith.mulf %228, %227 : vector<16x16xf32>
      %230 = arith.addf %223, %229 : vector<16x16xf32>
      %c29 = arith.constant 29 : index
      %231 = memref.load %arg3[%c29] : memref<98xf32, #tpu.memory_space<smem>>
      %cst_146 = arith.constant 2.500000e-01 : f32
      %232 = arith.mulf %231, %cst_146 : f32
      %c0_147 = arith.constant 0 : index
      %c9_148 = arith.constant 9 : index
      %c126_149 = arith.constant 126 : index
      %233 = vector.load %arg7[%c0_147, %c9_148, %c126_149] : memref<2x27x147xf32, #tpu.memory_space<vmem>>, vector<1x16x16xf32>
      %234 = vector.shape_cast %233 : vector<1x16x16xf32> to vector<16x16xf32>
      %235 = vector.broadcast %232 : f32 to vector<16x16xf32>
      %236 = arith.mulf %235, %234 : vector<16x16xf32>
      %237 = arith.addf %230, %236 : vector<16x16xf32>
      %c30 = arith.constant 30 : index
      %238 = memref.load %arg3[%c30] : memref<98xf32, #tpu.memory_space<smem>>
      %cst_150 = arith.constant 2.500000e-01 : f32
      %239 = arith.mulf %238, %cst_150 : f32
      %c0_151 = arith.constant 0 : index
      %c9_152 = arith.constant 9 : index
      %c127_153 = arith.constant 127 : index
      %240 = vector.load %arg7[%c0_151, %c9_152, %c127_153] : memref<2x27x147xf32, #tpu.memory_space<vmem>>, vector<1x16x16xf32>
      %241 = vector.shape_cast %240 : vector<1x16x16xf32> to vector<16x16xf32>
      %242 = vector.broadcast %239 : f32 to vector<16x16xf32>
      %243 = arith.mulf %242, %241 : vector<16x16xf32>
      %244 = arith.addf %237, %243 : vector<16x16xf32>
      %c31 = arith.constant 31 : index
      %245 = memref.load %arg3[%c31] : memref<98xf32, #tpu.memory_space<smem>>
      %cst_154 = arith.constant 2.500000e-01 : f32
      %246 = arith.mulf %245, %cst_154 : f32
      %c0_155 = arith.constant 0 : index
      %c9_156 = arith.constant 9 : index
      %c128_157 = arith.constant 128 : index
      %247 = vector.load %arg7[%c0_155, %c9_156, %c128_157] : memref<2x27x147xf32, #tpu.memory_space<vmem>>, vector<1x16x16xf32>
      %248 = vector.shape_cast %247 : vector<1x16x16xf32> to vector<16x16xf32>
      %249 = vector.broadcast %246 : f32 to vector<16x16xf32>
      %250 = arith.mulf %249, %248 : vector<16x16xf32>
      %251 = arith.addf %244, %250 : vector<16x16xf32>
      %c32 = arith.constant 32 : index
      %252 = memref.load %arg3[%c32] : memref<98xf32, #tpu.memory_space<smem>>
      %cst_158 = arith.constant 2.500000e-01 : f32
      %253 = arith.mulf %252, %cst_158 : f32
      %c0_159 = arith.constant 0 : index
      %c9_160 = arith.constant 9 : index
      %c129_161 = arith.constant 129 : index
      %254 = vector.load %arg7[%c0_159, %c9_160, %c129_161] : memref<2x27x147xf32, #tpu.memory_space<vmem>>, vector<1x16x16xf32>
      %255 = vector.shape_cast %254 : vector<1x16x16xf32> to vector<16x16xf32>
      %256 = vector.broadcast %253 : f32 to vector<16x16xf32>
      %257 = arith.mulf %256, %255 : vector<16x16xf32>
      %258 = arith.addf %251, %257 : vector<16x16xf32>
      %c33 = arith.constant 33 : index
      %259 = memref.load %arg3[%c33] : memref<98xf32, #tpu.memory_space<smem>>
      %cst_162 = arith.constant 2.500000e-01 : f32
      %260 = arith.mulf %259, %cst_162 : f32
      %c0_163 = arith.constant 0 : index
      %c9_164 = arith.constant 9 : index
      %c130_165 = arith.constant 130 : index
      %261 = vector.load %arg7[%c0_163, %c9_164, %c130_165] : memref<2x27x147xf32, #tpu.memory_space<vmem>>, vector<1x16x16xf32>
      %262 = vector.shape_cast %261 : vector<1x16x16xf32> to vector<16x16xf32>
      %263 = vector.broadcast %260 : f32 to vector<16x16xf32>
      %264 = arith.mulf %263, %262 : vector<16x16xf32>
      %265 = arith.addf %258, %264 : vector<16x16xf32>
      %c34 = arith.constant 34 : index
      %266 = memref.load %arg3[%c34] : memref<98xf32, #tpu.memory_space<smem>>
      %cst_166 = arith.constant 2.500000e-01 : f32
      %267 = arith.mulf %266, %cst_166 : f32
      %c0_167 = arith.constant 0 : index
      %c9_168 = arith.constant 9 : index
      %c131_169 = arith.constant 131 : index
      %268 = vector.load %arg7[%c0_167, %c9_168, %c131_169] : memref<2x27x147xf32, #tpu.memory_space<vmem>>, vector<1x16x16xf32>
      %269 = vector.shape_cast %268 : vector<1x16x16xf32> to vector<16x16xf32>
      %270 = vector.broadcast %267 : f32 to vector<16x16xf32>
      %271 = arith.mulf %270, %269 : vector<16x16xf32>
      %272 = arith.addf %265, %271 : vector<16x16xf32>
      %c35 = arith.constant 35 : index
      %273 = memref.load %arg3[%c35] : memref<98xf32, #tpu.memory_space<smem>>
      %cst_170 = arith.constant 2.500000e-01 : f32
      %274 = arith.mulf %273, %cst_170 : f32
      %c0_171 = arith.constant 0 : index
      %c10_172 = arith.constant 10 : index
      %c125_173 = arith.constant 125 : index
      %275 = vector.load %arg7[%c0_171, %c10_172, %c125_173] : memref<2x27x147xf32, #tpu.memory_space<vmem>>, vector<1x16x16xf32>
      %276 = vector.shape_cast %275 : vector<1x16x16xf32> to vector<16x16xf32>
      %277 = vector.broadcast %274 : f32 to vector<16x16xf32>
      %278 = arith.mulf %277, %276 : vector<16x16xf32>
      %279 = arith.addf %272, %278 : vector<16x16xf32>
      %c36 = arith.constant 36 : index
      %280 = memref.load %arg3[%c36] : memref<98xf32, #tpu.memory_space<smem>>
      %cst_174 = arith.constant 2.500000e-01 : f32
      %281 = arith.mulf %280, %cst_174 : f32
      %c0_175 = arith.constant 0 : index
      %c10_176 = arith.constant 10 : index
      %c126_177 = arith.constant 126 : index
      %282 = vector.load %arg7[%c0_175, %c10_176, %c126_177] : memref<2x27x147xf32, #tpu.memory_space<vmem>>, vector<1x16x16xf32>
      %283 = vector.shape_cast %282 : vector<1x16x16xf32> to vector<16x16xf32>
      %284 = vector.broadcast %281 : f32 to vector<16x16xf32>
      %285 = arith.mulf %284, %283 : vector<16x16xf32>
      %286 = arith.addf %279, %285 : vector<16x16xf32>
      %c37 = arith.constant 37 : index
      %287 = memref.load %arg3[%c37] : memref<98xf32, #tpu.memory_space<smem>>
      %cst_178 = arith.constant 2.500000e-01 : f32
      %288 = arith.mulf %287, %cst_178 : f32
      %c0_179 = arith.constant 0 : index
      %c10_180 = arith.constant 10 : index
      %c127_181 = arith.constant 127 : index
      %289 = vector.load %arg7[%c0_179, %c10_180, %c127_181] : memref<2x27x147xf32, #tpu.memory_space<vmem>>, vector<1x16x16xf32>
      %290 = vector.shape_cast %289 : vector<1x16x16xf32> to vector<16x16xf32>
      %291 = vector.broadcast %288 : f32 to vector<16x16xf32>
      %292 = arith.mulf %291, %290 : vector<16x16xf32>
      %293 = arith.addf %286, %292 : vector<16x16xf32>
      %c38 = arith.constant 38 : index
      %294 = memref.load %arg3[%c38] : memref<98xf32, #tpu.memory_space<smem>>
      %cst_182 = arith.constant 2.500000e-01 : f32
      %295 = arith.mulf %294, %cst_182 : f32
      %c0_183 = arith.constant 0 : index
      %c10_184 = arith.constant 10 : index
      %c128_185 = arith.constant 128 : index
      %296 = vector.load %arg7[%c0_183, %c10_184, %c128_185] : memref<2x27x147xf32, #tpu.memory_space<vmem>>, vector<1x16x16xf32>
      %297 = vector.shape_cast %296 : vector<1x16x16xf32> to vector<16x16xf32>
      %298 = vector.broadcast %295 : f32 to vector<16x16xf32>
      %299 = arith.mulf %298, %297 : vector<16x16xf32>
      %300 = arith.addf %293, %299 : vector<16x16xf32>
      %c39 = arith.constant 39 : index
      %301 = memref.load %arg3[%c39] : memref<98xf32, #tpu.memory_space<smem>>
      %cst_186 = arith.constant 2.500000e-01 : f32
      %302 = arith.mulf %301, %cst_186 : f32
      %c0_187 = arith.constant 0 : index
      %c10_188 = arith.constant 10 : index
      %c129_189 = arith.constant 129 : index
      %303 = vector.load %arg7[%c0_187, %c10_188, %c129_189] : memref<2x27x147xf32, #tpu.memory_space<vmem>>, vector<1x16x16xf32>
      %304 = vector.shape_cast %303 : vector<1x16x16xf32> to vector<16x16xf32>
      %305 = vector.broadcast %302 : f32 to vector<16x16xf32>
      %306 = arith.mulf %305, %304 : vector<16x16xf32>
      %307 = arith.addf %300, %306 : vector<16x16xf32>
      %c40 = arith.constant 40 : index
      %308 = memref.load %arg3[%c40] : memref<98xf32, #tpu.memory_space<smem>>
      %cst_190 = arith.constant 2.500000e-01 : f32
      %309 = arith.mulf %308, %cst_190 : f32
      %c0_191 = arith.constant 0 : index
      %c10_192 = arith.constant 10 : index
      %c130_193 = arith.constant 130 : index
      %310 = vector.load %arg7[%c0_191, %c10_192, %c130_193] : memref<2x27x147xf32, #tpu.memory_space<vmem>>, vector<1x16x16xf32>
      %311 = vector.shape_cast %310 : vector<1x16x16xf32> to vector<16x16xf32>
      %312 = vector.broadcast %309 : f32 to vector<16x16xf32>
      %313 = arith.mulf %312, %311 : vector<16x16xf32>
      %314 = arith.addf %307, %313 : vector<16x16xf32>
      %c41 = arith.constant 41 : index
      %315 = memref.load %arg3[%c41] : memref<98xf32, #tpu.memory_space<smem>>
      %cst_194 = arith.constant 2.500000e-01 : f32
      %316 = arith.mulf %315, %cst_194 : f32
      %c0_195 = arith.constant 0 : index
      %c10_196 = arith.constant 10 : index
      %c131_197 = arith.constant 131 : index
      %317 = vector.load %arg7[%c0_195, %c10_196, %c131_197] : memref<2x27x147xf32, #tpu.memory_space<vmem>>, vector<1x16x16xf32>
      %318 = vector.shape_cast %317 : vector<1x16x16xf32> to vector<16x16xf32>
      %319 = vector.broadcast %316 : f32 to vector<16x16xf32>
      %320 = arith.mulf %319, %318 : vector<16x16xf32>
      %321 = arith.addf %314, %320 : vector<16x16xf32>
      %c42 = arith.constant 42 : index
      %322 = memref.load %arg3[%c42] : memref<98xf32, #tpu.memory_space<smem>>
      %cst_198 = arith.constant 2.500000e-01 : f32
      %323 = arith.mulf %322, %cst_198 : f32
      %c0_199 = arith.constant 0 : index
      %c11_200 = arith.constant 11 : index
      %c125_201 = arith.constant 125 : index
      %324 = vector.load %arg7[%c0_199, %c11_200, %c125_201] : memref<2x27x147xf32, #tpu.memory_space<vmem>>, vector<1x16x16xf32>
      %325 = vector.shape_cast %324 : vector<1x16x16xf32> to vector<16x16xf32>
      %326 = vector.broadcast %323 : f32 to vector<16x16xf32>
      %327 = arith.mulf %326, %325 : vector<16x16xf32>
      %328 = arith.addf %321, %327 : vector<16x16xf32>
      %c43 = arith.constant 43 : index
      %329 = memref.load %arg3[%c43] : memref<98xf32, #tpu.memory_space<smem>>
      %cst_202 = arith.constant 2.500000e-01 : f32
      %330 = arith.mulf %329, %cst_202 : f32
      %c0_203 = arith.constant 0 : index
      %c11_204 = arith.constant 11 : index
      %c126_205 = arith.constant 126 : index
      %331 = vector.load %arg7[%c0_203, %c11_204, %c126_205] : memref<2x27x147xf32, #tpu.memory_space<vmem>>, vector<1x16x16xf32>
      %332 = vector.shape_cast %331 : vector<1x16x16xf32> to vector<16x16xf32>
      %333 = vector.broadcast %330 : f32 to vector<16x16xf32>
      %334 = arith.mulf %333, %332 : vector<16x16xf32>
      %335 = arith.addf %328, %334 : vector<16x16xf32>
      %c44 = arith.constant 44 : index
      %336 = memref.load %arg3[%c44] : memref<98xf32, #tpu.memory_space<smem>>
      %cst_206 = arith.constant 2.500000e-01 : f32
      %337 = arith.mulf %336, %cst_206 : f32
      %c0_207 = arith.constant 0 : index
      %c11_208 = arith.constant 11 : index
      %c127_209 = arith.constant 127 : index
      %338 = vector.load %arg7[%c0_207, %c11_208, %c127_209] : memref<2x27x147xf32, #tpu.memory_space<vmem>>, vector<1x16x16xf32>
      %339 = vector.shape_cast %338 : vector<1x16x16xf32> to vector<16x16xf32>
      %340 = vector.broadcast %337 : f32 to vector<16x16xf32>
      %341 = arith.mulf %340, %339 : vector<16x16xf32>
      %342 = arith.addf %335, %341 : vector<16x16xf32>
      %c45 = arith.constant 45 : index
      %343 = memref.load %arg3[%c45] : memref<98xf32, #tpu.memory_space<smem>>
      %cst_210 = arith.constant 2.500000e-01 : f32
      %344 = arith.mulf %343, %cst_210 : f32
      %c0_211 = arith.constant 0 : index
      %c11_212 = arith.constant 11 : index
      %c128_213 = arith.constant 128 : index
      %345 = vector.load %arg7[%c0_211, %c11_212, %c128_213] : memref<2x27x147xf32, #tpu.memory_space<vmem>>, vector<1x16x16xf32>
      %346 = vector.shape_cast %345 : vector<1x16x16xf32> to vector<16x16xf32>
      %347 = vector.broadcast %344 : f32 to vector<16x16xf32>
      %348 = arith.mulf %347, %346 : vector<16x16xf32>
      %349 = arith.addf %342, %348 : vector<16x16xf32>
      %c46 = arith.constant 46 : index
      %350 = memref.load %arg3[%c46] : memref<98xf32, #tpu.memory_space<smem>>
      %cst_214 = arith.constant 2.500000e-01 : f32
      %351 = arith.mulf %350, %cst_214 : f32
      %c0_215 = arith.constant 0 : index
      %c11_216 = arith.constant 11 : index
      %c129_217 = arith.constant 129 : index
      %352 = vector.load %arg7[%c0_215, %c11_216, %c129_217] : memref<2x27x147xf32, #tpu.memory_space<vmem>>, vector<1x16x16xf32>
      %353 = vector.shape_cast %352 : vector<1x16x16xf32> to vector<16x16xf32>
      %354 = vector.broadcast %351 : f32 to vector<16x16xf32>
      %355 = arith.mulf %354, %353 : vector<16x16xf32>
      %356 = arith.addf %349, %355 : vector<16x16xf32>
      %c47 = arith.constant 47 : index
      %357 = memref.load %arg3[%c47] : memref<98xf32, #tpu.memory_space<smem>>
      %cst_218 = arith.constant 2.500000e-01 : f32
      %358 = arith.mulf %357, %cst_218 : f32
      %c0_219 = arith.constant 0 : index
      %c11_220 = arith.constant 11 : index
      %c130_221 = arith.constant 130 : index
      %359 = vector.load %arg7[%c0_219, %c11_220, %c130_221] : memref<2x27x147xf32, #tpu.memory_space<vmem>>, vector<1x16x16xf32>
      %360 = vector.shape_cast %359 : vector<1x16x16xf32> to vector<16x16xf32>
      %361 = vector.broadcast %358 : f32 to vector<16x16xf32>
      %362 = arith.mulf %361, %360 : vector<16x16xf32>
      %363 = arith.addf %356, %362 : vector<16x16xf32>
      %c48 = arith.constant 48 : index
      %364 = memref.load %arg3[%c48] : memref<98xf32, #tpu.memory_space<smem>>
      %cst_222 = arith.constant 2.500000e-01 : f32
      %365 = arith.mulf %364, %cst_222 : f32
      %c0_223 = arith.constant 0 : index
      %c11_224 = arith.constant 11 : index
      %c131_225 = arith.constant 131 : index
      %366 = vector.load %arg7[%c0_223, %c11_224, %c131_225] : memref<2x27x147xf32, #tpu.memory_space<vmem>>, vector<1x16x16xf32>
      %367 = vector.shape_cast %366 : vector<1x16x16xf32> to vector<16x16xf32>
      %368 = vector.broadcast %365 : f32 to vector<16x16xf32>
      %369 = arith.mulf %368, %367 : vector<16x16xf32>
      %370 = arith.addf %363, %369 : vector<16x16xf32>
      %c49 = arith.constant 49 : index
      %371 = memref.load %arg3[%c49] : memref<98xf32, #tpu.memory_space<smem>>
      %c1_226 = arith.constant 1 : index
      %c5_227 = arith.constant 5 : index
      %c125_228 = arith.constant 125 : index
      %372 = vector.load %arg7[%c1_226, %c5_227, %c125_228] : memref<2x27x147xf32, #tpu.memory_space<vmem>>, vector<1x16x16xf32>
      %373 = vector.shape_cast %372 : vector<1x16x16xf32> to vector<16x16xf32>
      %374 = vector.broadcast %371 : f32 to vector<16x16xf32>
      %375 = arith.mulf %374, %373 : vector<16x16xf32>
      %376 = arith.addf %370, %375 : vector<16x16xf32>
      %c50 = arith.constant 50 : index
      %377 = memref.load %arg3[%c50] : memref<98xf32, #tpu.memory_space<smem>>
      %c1_229 = arith.constant 1 : index
      %c5_230 = arith.constant 5 : index
      %c126_231 = arith.constant 126 : index
      %378 = vector.load %arg7[%c1_229, %c5_230, %c126_231] : memref<2x27x147xf32, #tpu.memory_space<vmem>>, vector<1x16x16xf32>
      %379 = vector.shape_cast %378 : vector<1x16x16xf32> to vector<16x16xf32>
      %380 = vector.broadcast %377 : f32 to vector<16x16xf32>
      %381 = arith.mulf %380, %379 : vector<16x16xf32>
      %382 = arith.addf %376, %381 : vector<16x16xf32>
      %c51 = arith.constant 51 : index
      %383 = memref.load %arg3[%c51] : memref<98xf32, #tpu.memory_space<smem>>
      %c1_232 = arith.constant 1 : index
      %c5_233 = arith.constant 5 : index
      %c127_234 = arith.constant 127 : index
      %384 = vector.load %arg7[%c1_232, %c5_233, %c127_234] : memref<2x27x147xf32, #tpu.memory_space<vmem>>, vector<1x16x16xf32>
      %385 = vector.shape_cast %384 : vector<1x16x16xf32> to vector<16x16xf32>
      %386 = vector.broadcast %383 : f32 to vector<16x16xf32>
      %387 = arith.mulf %386, %385 : vector<16x16xf32>
      %388 = arith.addf %382, %387 : vector<16x16xf32>
      %c52 = arith.constant 52 : index
      %389 = memref.load %arg3[%c52] : memref<98xf32, #tpu.memory_space<smem>>
      %c1_235 = arith.constant 1 : index
      %c5_236 = arith.constant 5 : index
      %c128_237 = arith.constant 128 : index
      %390 = vector.load %arg7[%c1_235, %c5_236, %c128_237] : memref<2x27x147xf32, #tpu.memory_space<vmem>>, vector<1x16x16xf32>
      %391 = vector.shape_cast %390 : vector<1x16x16xf32> to vector<16x16xf32>
      %392 = vector.broadcast %389 : f32 to vector<16x16xf32>
      %393 = arith.mulf %392, %391 : vector<16x16xf32>
      %394 = arith.addf %388, %393 : vector<16x16xf32>
      %c53 = arith.constant 53 : index
      %395 = memref.load %arg3[%c53] : memref<98xf32, #tpu.memory_space<smem>>
      %c1_238 = arith.constant 1 : index
      %c5_239 = arith.constant 5 : index
      %c129_240 = arith.constant 129 : index
      %396 = vector.load %arg7[%c1_238, %c5_239, %c129_240] : memref<2x27x147xf32, #tpu.memory_space<vmem>>, vector<1x16x16xf32>
      %397 = vector.shape_cast %396 : vector<1x16x16xf32> to vector<16x16xf32>
      %398 = vector.broadcast %395 : f32 to vector<16x16xf32>
      %399 = arith.mulf %398, %397 : vector<16x16xf32>
      %400 = arith.addf %394, %399 : vector<16x16xf32>
      %c54 = arith.constant 54 : index
      %401 = memref.load %arg3[%c54] : memref<98xf32, #tpu.memory_space<smem>>
      %c1_241 = arith.constant 1 : index
      %c5_242 = arith.constant 5 : index
      %c130_243 = arith.constant 130 : index
      %402 = vector.load %arg7[%c1_241, %c5_242, %c130_243] : memref<2x27x147xf32, #tpu.memory_space<vmem>>, vector<1x16x16xf32>
      %403 = vector.shape_cast %402 : vector<1x16x16xf32> to vector<16x16xf32>
      %404 = vector.broadcast %401 : f32 to vector<16x16xf32>
      %405 = arith.mulf %404, %403 : vector<16x16xf32>
      %406 = arith.addf %400, %405 : vector<16x16xf32>
      %c55 = arith.constant 55 : index
      %407 = memref.load %arg3[%c55] : memref<98xf32, #tpu.memory_space<smem>>
      %c1_244 = arith.constant 1 : index
      %c5_245 = arith.constant 5 : index
      %c131_246 = arith.constant 131 : index
      %408 = vector.load %arg7[%c1_244, %c5_245, %c131_246] : memref<2x27x147xf32, #tpu.memory_space<vmem>>, vector<1x16x16xf32>
      %409 = vector.shape_cast %408 : vector<1x16x16xf32> to vector<16x16xf32>
      %410 = vector.broadcast %407 : f32 to vector<16x16xf32>
      %411 = arith.mulf %410, %409 : vector<16x16xf32>
      %412 = arith.addf %406, %411 : vector<16x16xf32>
      %c56 = arith.constant 56 : index
      %413 = memref.load %arg3[%c56] : memref<98xf32, #tpu.memory_space<smem>>
      %c1_247 = arith.constant 1 : index
      %c6_248 = arith.constant 6 : index
      %c125_249 = arith.constant 125 : index
      %414 = vector.load %arg7[%c1_247, %c6_248, %c125_249] : memref<2x27x147xf32, #tpu.memory_space<vmem>>, vector<1x16x16xf32>
      %415 = vector.shape_cast %414 : vector<1x16x16xf32> to vector<16x16xf32>
      %416 = vector.broadcast %413 : f32 to vector<16x16xf32>
      %417 = arith.mulf %416, %415 : vector<16x16xf32>
      %418 = arith.addf %412, %417 : vector<16x16xf32>
      %c57 = arith.constant 57 : index
      %419 = memref.load %arg3[%c57] : memref<98xf32, #tpu.memory_space<smem>>
      %c1_250 = arith.constant 1 : index
      %c6_251 = arith.constant 6 : index
      %c126_252 = arith.constant 126 : index
      %420 = vector.load %arg7[%c1_250, %c6_251, %c126_252] : memref<2x27x147xf32, #tpu.memory_space<vmem>>, vector<1x16x16xf32>
      %421 = vector.shape_cast %420 : vector<1x16x16xf32> to vector<16x16xf32>
      %422 = vector.broadcast %419 : f32 to vector<16x16xf32>
      %423 = arith.mulf %422, %421 : vector<16x16xf32>
      %424 = arith.addf %418, %423 : vector<16x16xf32>
      %c58 = arith.constant 58 : index
      %425 = memref.load %arg3[%c58] : memref<98xf32, #tpu.memory_space<smem>>
      %c1_253 = arith.constant 1 : index
      %c6_254 = arith.constant 6 : index
      %c127_255 = arith.constant 127 : index
      %426 = vector.load %arg7[%c1_253, %c6_254, %c127_255] : memref<2x27x147xf32, #tpu.memory_space<vmem>>, vector<1x16x16xf32>
      %427 = vector.shape_cast %426 : vector<1x16x16xf32> to vector<16x16xf32>
      %428 = vector.broadcast %425 : f32 to vector<16x16xf32>
      %429 = arith.mulf %428, %427 : vector<16x16xf32>
      %430 = arith.addf %424, %429 : vector<16x16xf32>
      %c59 = arith.constant 59 : index
      %431 = memref.load %arg3[%c59] : memref<98xf32, #tpu.memory_space<smem>>
      %c1_256 = arith.constant 1 : index
      %c6_257 = arith.constant 6 : index
      %c128_258 = arith.constant 128 : index
      %432 = vector.load %arg7[%c1_256, %c6_257, %c128_258] : memref<2x27x147xf32, #tpu.memory_space<vmem>>, vector<1x16x16xf32>
      %433 = vector.shape_cast %432 : vector<1x16x16xf32> to vector<16x16xf32>
      %434 = vector.broadcast %431 : f32 to vector<16x16xf32>
      %435 = arith.mulf %434, %433 : vector<16x16xf32>
      %436 = arith.addf %430, %435 : vector<16x16xf32>
      %c60 = arith.constant 60 : index
      %437 = memref.load %arg3[%c60] : memref<98xf32, #tpu.memory_space<smem>>
      %c1_259 = arith.constant 1 : index
      %c6_260 = arith.constant 6 : index
      %c129_261 = arith.constant 129 : index
      %438 = vector.load %arg7[%c1_259, %c6_260, %c129_261] : memref<2x27x147xf32, #tpu.memory_space<vmem>>, vector<1x16x16xf32>
      %439 = vector.shape_cast %438 : vector<1x16x16xf32> to vector<16x16xf32>
      %440 = vector.broadcast %437 : f32 to vector<16x16xf32>
      %441 = arith.mulf %440, %439 : vector<16x16xf32>
      %442 = arith.addf %436, %441 : vector<16x16xf32>
      %c61 = arith.constant 61 : index
      %443 = memref.load %arg3[%c61] : memref<98xf32, #tpu.memory_space<smem>>
      %c1_262 = arith.constant 1 : index
      %c6_263 = arith.constant 6 : index
      %c130_264 = arith.constant 130 : index
      %444 = vector.load %arg7[%c1_262, %c6_263, %c130_264] : memref<2x27x147xf32, #tpu.memory_space<vmem>>, vector<1x16x16xf32>
      %445 = vector.shape_cast %444 : vector<1x16x16xf32> to vector<16x16xf32>
      %446 = vector.broadcast %443 : f32 to vector<16x16xf32>
      %447 = arith.mulf %446, %445 : vector<16x16xf32>
      %448 = arith.addf %442, %447 : vector<16x16xf32>
      %c62 = arith.constant 62 : index
      %449 = memref.load %arg3[%c62] : memref<98xf32, #tpu.memory_space<smem>>
      %c1_265 = arith.constant 1 : index
      %c6_266 = arith.constant 6 : index
      %c131_267 = arith.constant 131 : index
      %450 = vector.load %arg7[%c1_265, %c6_266, %c131_267] : memref<2x27x147xf32, #tpu.memory_space<vmem>>, vector<1x16x16xf32>
      %451 = vector.shape_cast %450 : vector<1x16x16xf32> to vector<16x16xf32>
      %452 = vector.broadcast %449 : f32 to vector<16x16xf32>
      %453 = arith.mulf %452, %451 : vector<16x16xf32>
      %454 = arith.addf %448, %453 : vector<16x16xf32>
      %c63 = arith.constant 63 : index
      %455 = memref.load %arg3[%c63] : memref<98xf32, #tpu.memory_space<smem>>
      %c1_268 = arith.constant 1 : index
      %c7_269 = arith.constant 7 : index
      %c125_270 = arith.constant 125 : index
      %456 = vector.load %arg7[%c1_268, %c7_269, %c125_270] : memref<2x27x147xf32, #tpu.memory_space<vmem>>, vector<1x16x16xf32>
      %457 = vector.shape_cast %456 : vector<1x16x16xf32> to vector<16x16xf32>
      %458 = vector.broadcast %455 : f32 to vector<16x16xf32>
      %459 = arith.mulf %458, %457 : vector<16x16xf32>
      %460 = arith.addf %454, %459 : vector<16x16xf32>
      %c64 = arith.constant 64 : index
      %461 = memref.load %arg3[%c64] : memref<98xf32, #tpu.memory_space<smem>>
      %c1_271 = arith.constant 1 : index
      %c7_272 = arith.constant 7 : index
      %c126_273 = arith.constant 126 : index
      %462 = vector.load %arg7[%c1_271, %c7_272, %c126_273] : memref<2x27x147xf32, #tpu.memory_space<vmem>>, vector<1x16x16xf32>
      %463 = vector.shape_cast %462 : vector<1x16x16xf32> to vector<16x16xf32>
      %464 = vector.broadcast %461 : f32 to vector<16x16xf32>
      %465 = arith.mulf %464, %463 : vector<16x16xf32>
      %466 = arith.addf %460, %465 : vector<16x16xf32>
      %c65 = arith.constant 65 : index
      %467 = memref.load %arg3[%c65] : memref<98xf32, #tpu.memory_space<smem>>
      %c1_274 = arith.constant 1 : index
      %c7_275 = arith.constant 7 : index
      %c127_276 = arith.constant 127 : index
      %468 = vector.load %arg7[%c1_274, %c7_275, %c127_276] : memref<2x27x147xf32, #tpu.memory_space<vmem>>, vector<1x16x16xf32>
      %469 = vector.shape_cast %468 : vector<1x16x16xf32> to vector<16x16xf32>
      %470 = vector.broadcast %467 : f32 to vector<16x16xf32>
      %471 = arith.mulf %470, %469 : vector<16x16xf32>
      %472 = arith.addf %466, %471 : vector<16x16xf32>
      %c66 = arith.constant 66 : index
      %473 = memref.load %arg3[%c66] : memref<98xf32, #tpu.memory_space<smem>>
      %c1_277 = arith.constant 1 : index
      %c7_278 = arith.constant 7 : index
      %c128_279 = arith.constant 128 : index
      %474 = vector.load %arg7[%c1_277, %c7_278, %c128_279] : memref<2x27x147xf32, #tpu.memory_space<vmem>>, vector<1x16x16xf32>
      %475 = vector.shape_cast %474 : vector<1x16x16xf32> to vector<16x16xf32>
      %476 = vector.broadcast %473 : f32 to vector<16x16xf32>
      %477 = arith.mulf %476, %475 : vector<16x16xf32>
      %478 = arith.addf %472, %477 : vector<16x16xf32>
      %c67 = arith.constant 67 : index
      %479 = memref.load %arg3[%c67] : memref<98xf32, #tpu.memory_space<smem>>
      %c1_280 = arith.constant 1 : index
      %c7_281 = arith.constant 7 : index
      %c129_282 = arith.constant 129 : index
      %480 = vector.load %arg7[%c1_280, %c7_281, %c129_282] : memref<2x27x147xf32, #tpu.memory_space<vmem>>, vector<1x16x16xf32>
      %481 = vector.shape_cast %480 : vector<1x16x16xf32> to vector<16x16xf32>
      %482 = vector.broadcast %479 : f32 to vector<16x16xf32>
      %483 = arith.mulf %482, %481 : vector<16x16xf32>
      %484 = arith.addf %478, %483 : vector<16x16xf32>
      %c68 = arith.constant 68 : index
      %485 = memref.load %arg3[%c68] : memref<98xf32, #tpu.memory_space<smem>>
      %c1_283 = arith.constant 1 : index
      %c7_284 = arith.constant 7 : index
      %c130_285 = arith.constant 130 : index
      %486 = vector.load %arg7[%c1_283, %c7_284, %c130_285] : memref<2x27x147xf32, #tpu.memory_space<vmem>>, vector<1x16x16xf32>
      %487 = vector.shape_cast %486 : vector<1x16x16xf32> to vector<16x16xf32>
      %488 = vector.broadcast %485 : f32 to vector<16x16xf32>
      %489 = arith.mulf %488, %487 : vector<16x16xf32>
      %490 = arith.addf %484, %489 : vector<16x16xf32>
      %c69 = arith.constant 69 : index
      %491 = memref.load %arg3[%c69] : memref<98xf32, #tpu.memory_space<smem>>
      %c1_286 = arith.constant 1 : index
      %c7_287 = arith.constant 7 : index
      %c131_288 = arith.constant 131 : index
      %492 = vector.load %arg7[%c1_286, %c7_287, %c131_288] : memref<2x27x147xf32, #tpu.memory_space<vmem>>, vector<1x16x16xf32>
      %493 = vector.shape_cast %492 : vector<1x16x16xf32> to vector<16x16xf32>
      %494 = vector.broadcast %491 : f32 to vector<16x16xf32>
      %495 = arith.mulf %494, %493 : vector<16x16xf32>
      %496 = arith.addf %490, %495 : vector<16x16xf32>
      %c70 = arith.constant 70 : index
      %497 = memref.load %arg3[%c70] : memref<98xf32, #tpu.memory_space<smem>>
      %c1_289 = arith.constant 1 : index
      %c8_290 = arith.constant 8 : index
      %c125_291 = arith.constant 125 : index
      %498 = vector.load %arg7[%c1_289, %c8_290, %c125_291] : memref<2x27x147xf32, #tpu.memory_space<vmem>>, vector<1x16x16xf32>
      %499 = vector.shape_cast %498 : vector<1x16x16xf32> to vector<16x16xf32>
      %500 = vector.broadcast %497 : f32 to vector<16x16xf32>
      %501 = arith.mulf %500, %499 : vector<16x16xf32>
      %502 = arith.addf %496, %501 : vector<16x16xf32>
      %c71 = arith.constant 71 : index
      %503 = memref.load %arg3[%c71] : memref<98xf32, #tpu.memory_space<smem>>
      %c1_292 = arith.constant 1 : index
      %c8_293 = arith.constant 8 : index
      %c126_294 = arith.constant 126 : index
      %504 = vector.load %arg7[%c1_292, %c8_293, %c126_294] : memref<2x27x147xf32, #tpu.memory_space<vmem>>, vector<1x16x16xf32>
      %505 = vector.shape_cast %504 : vector<1x16x16xf32> to vector<16x16xf32>
      %506 = vector.broadcast %503 : f32 to vector<16x16xf32>
      %507 = arith.mulf %506, %505 : vector<16x16xf32>
      %508 = arith.addf %502, %507 : vector<16x16xf32>
      %c72 = arith.constant 72 : index
      %509 = memref.load %arg3[%c72] : memref<98xf32, #tpu.memory_space<smem>>
      %c1_295 = arith.constant 1 : index
      %c8_296 = arith.constant 8 : index
      %c127_297 = arith.constant 127 : index
      %510 = vector.load %arg7[%c1_295, %c8_296, %c127_297] : memref<2x27x147xf32, #tpu.memory_space<vmem>>, vector<1x16x16xf32>
      %511 = vector.shape_cast %510 : vector<1x16x16xf32> to vector<16x16xf32>
      %512 = vector.broadcast %509 : f32 to vector<16x16xf32>
      %513 = arith.mulf %512, %511 : vector<16x16xf32>
      %514 = arith.addf %508, %513 : vector<16x16xf32>
      %c73 = arith.constant 73 : index
      %515 = memref.load %arg3[%c73] : memref<98xf32, #tpu.memory_space<smem>>
      %c1_298 = arith.constant 1 : index
      %c8_299 = arith.constant 8 : index
      %c128_300 = arith.constant 128 : index
      %516 = vector.load %arg7[%c1_298, %c8_299, %c128_300] : memref<2x27x147xf32, #tpu.memory_space<vmem>>, vector<1x16x16xf32>
      %517 = vector.shape_cast %516 : vector<1x16x16xf32> to vector<16x16xf32>
      %518 = vector.broadcast %515 : f32 to vector<16x16xf32>
      %519 = arith.mulf %518, %517 : vector<16x16xf32>
      %520 = arith.addf %514, %519 : vector<16x16xf32>
      %c74 = arith.constant 74 : index
      %521 = memref.load %arg3[%c74] : memref<98xf32, #tpu.memory_space<smem>>
      %c1_301 = arith.constant 1 : index
      %c8_302 = arith.constant 8 : index
      %c129_303 = arith.constant 129 : index
      %522 = vector.load %arg7[%c1_301, %c8_302, %c129_303] : memref<2x27x147xf32, #tpu.memory_space<vmem>>, vector<1x16x16xf32>
      %523 = vector.shape_cast %522 : vector<1x16x16xf32> to vector<16x16xf32>
      %524 = vector.broadcast %521 : f32 to vector<16x16xf32>
      %525 = arith.mulf %524, %523 : vector<16x16xf32>
      %526 = arith.addf %520, %525 : vector<16x16xf32>
      %c75 = arith.constant 75 : index
      %527 = memref.load %arg3[%c75] : memref<98xf32, #tpu.memory_space<smem>>
      %c1_304 = arith.constant 1 : index
      %c8_305 = arith.constant 8 : index
      %c130_306 = arith.constant 130 : index
      %528 = vector.load %arg7[%c1_304, %c8_305, %c130_306] : memref<2x27x147xf32, #tpu.memory_space<vmem>>, vector<1x16x16xf32>
      %529 = vector.shape_cast %528 : vector<1x16x16xf32> to vector<16x16xf32>
      %530 = vector.broadcast %527 : f32 to vector<16x16xf32>
      %531 = arith.mulf %530, %529 : vector<16x16xf32>
      %532 = arith.addf %526, %531 : vector<16x16xf32>
      %c76 = arith.constant 76 : index
      %533 = memref.load %arg3[%c76] : memref<98xf32, #tpu.memory_space<smem>>
      %c1_307 = arith.constant 1 : index
      %c8_308 = arith.constant 8 : index
      %c131_309 = arith.constant 131 : index
      %534 = vector.load %arg7[%c1_307, %c8_308, %c131_309] : memref<2x27x147xf32, #tpu.memory_space<vmem>>, vector<1x16x16xf32>
      %535 = vector.shape_cast %534 : vector<1x16x16xf32> to vector<16x16xf32>
      %536 = vector.broadcast %533 : f32 to vector<16x16xf32>
      %537 = arith.mulf %536, %535 : vector<16x16xf32>
      %538 = arith.addf %532, %537 : vector<16x16xf32>
      %c77 = arith.constant 77 : index
      %539 = memref.load %arg3[%c77] : memref<98xf32, #tpu.memory_space<smem>>
      %c1_310 = arith.constant 1 : index
      %c9_311 = arith.constant 9 : index
      %c125_312 = arith.constant 125 : index
      %540 = vector.load %arg7[%c1_310, %c9_311, %c125_312] : memref<2x27x147xf32, #tpu.memory_space<vmem>>, vector<1x16x16xf32>
      %541 = vector.shape_cast %540 : vector<1x16x16xf32> to vector<16x16xf32>
      %542 = vector.broadcast %539 : f32 to vector<16x16xf32>
      %543 = arith.mulf %542, %541 : vector<16x16xf32>
      %544 = arith.addf %538, %543 : vector<16x16xf32>
      %c78 = arith.constant 78 : index
      %545 = memref.load %arg3[%c78] : memref<98xf32, #tpu.memory_space<smem>>
      %c1_313 = arith.constant 1 : index
      %c9_314 = arith.constant 9 : index
      %c126_315 = arith.constant 126 : index
      %546 = vector.load %arg7[%c1_313, %c9_314, %c126_315] : memref<2x27x147xf32, #tpu.memory_space<vmem>>, vector<1x16x16xf32>
      %547 = vector.shape_cast %546 : vector<1x16x16xf32> to vector<16x16xf32>
      %548 = vector.broadcast %545 : f32 to vector<16x16xf32>
      %549 = arith.mulf %548, %547 : vector<16x16xf32>
      %550 = arith.addf %544, %549 : vector<16x16xf32>
      %c79 = arith.constant 79 : index
      %551 = memref.load %arg3[%c79] : memref<98xf32, #tpu.memory_space<smem>>
      %c1_316 = arith.constant 1 : index
      %c9_317 = arith.constant 9 : index
      %c127_318 = arith.constant 127 : index
      %552 = vector.load %arg7[%c1_316, %c9_317, %c127_318] : memref<2x27x147xf32, #tpu.memory_space<vmem>>, vector<1x16x16xf32>
      %553 = vector.shape_cast %552 : vector<1x16x16xf32> to vector<16x16xf32>
      %554 = vector.broadcast %551 : f32 to vector<16x16xf32>
      %555 = arith.mulf %554, %553 : vector<16x16xf32>
      %556 = arith.addf %550, %555 : vector<16x16xf32>
      %c80 = arith.constant 80 : index
      %557 = memref.load %arg3[%c80] : memref<98xf32, #tpu.memory_space<smem>>
      %c1_319 = arith.constant 1 : index
      %c9_320 = arith.constant 9 : index
      %c128_321 = arith.constant 128 : index
      %558 = vector.load %arg7[%c1_319, %c9_320, %c128_321] : memref<2x27x147xf32, #tpu.memory_space<vmem>>, vector<1x16x16xf32>
      %559 = vector.shape_cast %558 : vector<1x16x16xf32> to vector<16x16xf32>
      %560 = vector.broadcast %557 : f32 to vector<16x16xf32>
      %561 = arith.mulf %560, %559 : vector<16x16xf32>
      %562 = arith.addf %556, %561 : vector<16x16xf32>
      %c81 = arith.constant 81 : index
      %563 = memref.load %arg3[%c81] : memref<98xf32, #tpu.memory_space<smem>>
      %c1_322 = arith.constant 1 : index
      %c9_323 = arith.constant 9 : index
      %c129_324 = arith.constant 129 : index
      %564 = vector.load %arg7[%c1_322, %c9_323, %c129_324] : memref<2x27x147xf32, #tpu.memory_space<vmem>>, vector<1x16x16xf32>
      %565 = vector.shape_cast %564 : vector<1x16x16xf32> to vector<16x16xf32>
      %566 = vector.broadcast %563 : f32 to vector<16x16xf32>
      %567 = arith.mulf %566, %565 : vector<16x16xf32>
      %568 = arith.addf %562, %567 : vector<16x16xf32>
      %c82 = arith.constant 82 : index
      %569 = memref.load %arg3[%c82] : memref<98xf32, #tpu.memory_space<smem>>
      %c1_325 = arith.constant 1 : index
      %c9_326 = arith.constant 9 : index
      %c130_327 = arith.constant 130 : index
      %570 = vector.load %arg7[%c1_325, %c9_326, %c130_327] : memref<2x27x147xf32, #tpu.memory_space<vmem>>, vector<1x16x16xf32>
      %571 = vector.shape_cast %570 : vector<1x16x16xf32> to vector<16x16xf32>
      %572 = vector.broadcast %569 : f32 to vector<16x16xf32>
      %573 = arith.mulf %572, %571 : vector<16x16xf32>
      %574 = arith.addf %568, %573 : vector<16x16xf32>
      %c83 = arith.constant 83 : index
      %575 = memref.load %arg3[%c83] : memref<98xf32, #tpu.memory_space<smem>>
      %c1_328 = arith.constant 1 : index
      %c9_329 = arith.constant 9 : index
      %c131_330 = arith.constant 131 : index
      %576 = vector.load %arg7[%c1_328, %c9_329, %c131_330] : memref<2x27x147xf32, #tpu.memory_space<vmem>>, vector<1x16x16xf32>
      %577 = vector.shape_cast %576 : vector<1x16x16xf32> to vector<16x16xf32>
      %578 = vector.broadcast %575 : f32 to vector<16x16xf32>
      %579 = arith.mulf %578, %577 : vector<16x16xf32>
      %580 = arith.addf %574, %579 : vector<16x16xf32>
      %c84 = arith.constant 84 : index
      %581 = memref.load %arg3[%c84] : memref<98xf32, #tpu.memory_space<smem>>
      %c1_331 = arith.constant 1 : index
      %c10_332 = arith.constant 10 : index
      %c125_333 = arith.constant 125 : index
      %582 = vector.load %arg7[%c1_331, %c10_332, %c125_333] : memref<2x27x147xf32, #tpu.memory_space<vmem>>, vector<1x16x16xf32>
      %583 = vector.shape_cast %582 : vector<1x16x16xf32> to vector<16x16xf32>
      %584 = vector.broadcast %581 : f32 to vector<16x16xf32>
      %585 = arith.mulf %584, %583 : vector<16x16xf32>
      %586 = arith.addf %580, %585 : vector<16x16xf32>
      %c85 = arith.constant 85 : index
      %587 = memref.load %arg3[%c85] : memref<98xf32, #tpu.memory_space<smem>>
      %c1_334 = arith.constant 1 : index
      %c10_335 = arith.constant 10 : index
      %c126_336 = arith.constant 126 : index
      %588 = vector.load %arg7[%c1_334, %c10_335, %c126_336] : memref<2x27x147xf32, #tpu.memory_space<vmem>>, vector<1x16x16xf32>
      %589 = vector.shape_cast %588 : vector<1x16x16xf32> to vector<16x16xf32>
      %590 = vector.broadcast %587 : f32 to vector<16x16xf32>
      %591 = arith.mulf %590, %589 : vector<16x16xf32>
      %592 = arith.addf %586, %591 : vector<16x16xf32>
      %c86 = arith.constant 86 : index
      %593 = memref.load %arg3[%c86] : memref<98xf32, #tpu.memory_space<smem>>
      %c1_337 = arith.constant 1 : index
      %c10_338 = arith.constant 10 : index
      %c127_339 = arith.constant 127 : index
      %594 = vector.load %arg7[%c1_337, %c10_338, %c127_339] : memref<2x27x147xf32, #tpu.memory_space<vmem>>, vector<1x16x16xf32>
      %595 = vector.shape_cast %594 : vector<1x16x16xf32> to vector<16x16xf32>
      %596 = vector.broadcast %593 : f32 to vector<16x16xf32>
      %597 = arith.mulf %596, %595 : vector<16x16xf32>
      %598 = arith.addf %592, %597 : vector<16x16xf32>
      %c87 = arith.constant 87 : index
      %599 = memref.load %arg3[%c87] : memref<98xf32, #tpu.memory_space<smem>>
      %c1_340 = arith.constant 1 : index
      %c10_341 = arith.constant 10 : index
      %c128_342 = arith.constant 128 : index
      %600 = vector.load %arg7[%c1_340, %c10_341, %c128_342] : memref<2x27x147xf32, #tpu.memory_space<vmem>>, vector<1x16x16xf32>
      %601 = vector.shape_cast %600 : vector<1x16x16xf32> to vector<16x16xf32>
      %602 = vector.broadcast %599 : f32 to vector<16x16xf32>
      %603 = arith.mulf %602, %601 : vector<16x16xf32>
      %604 = arith.addf %598, %603 : vector<16x16xf32>
      %c88 = arith.constant 88 : index
      %605 = memref.load %arg3[%c88] : memref<98xf32, #tpu.memory_space<smem>>
      %c1_343 = arith.constant 1 : index
      %c10_344 = arith.constant 10 : index
      %c129_345 = arith.constant 129 : index
      %606 = vector.load %arg7[%c1_343, %c10_344, %c129_345] : memref<2x27x147xf32, #tpu.memory_space<vmem>>, vector<1x16x16xf32>
      %607 = vector.shape_cast %606 : vector<1x16x16xf32> to vector<16x16xf32>
      %608 = vector.broadcast %605 : f32 to vector<16x16xf32>
      %609 = arith.mulf %608, %607 : vector<16x16xf32>
      %610 = arith.addf %604, %609 : vector<16x16xf32>
      %c89 = arith.constant 89 : index
      %611 = memref.load %arg3[%c89] : memref<98xf32, #tpu.memory_space<smem>>
      %c1_346 = arith.constant 1 : index
      %c10_347 = arith.constant 10 : index
      %c130_348 = arith.constant 130 : index
      %612 = vector.load %arg7[%c1_346, %c10_347, %c130_348] : memref<2x27x147xf32, #tpu.memory_space<vmem>>, vector<1x16x16xf32>
      %613 = vector.shape_cast %612 : vector<1x16x16xf32> to vector<16x16xf32>
      %614 = vector.broadcast %611 : f32 to vector<16x16xf32>
      %615 = arith.mulf %614, %613 : vector<16x16xf32>
      %616 = arith.addf %610, %615 : vector<16x16xf32>
      %c90 = arith.constant 90 : index
      %617 = memref.load %arg3[%c90] : memref<98xf32, #tpu.memory_space<smem>>
      %c1_349 = arith.constant 1 : index
      %c10_350 = arith.constant 10 : index
      %c131_351 = arith.constant 131 : index
      %618 = vector.load %arg7[%c1_349, %c10_350, %c131_351] : memref<2x27x147xf32, #tpu.memory_space<vmem>>, vector<1x16x16xf32>
      %619 = vector.shape_cast %618 : vector<1x16x16xf32> to vector<16x16xf32>
      %620 = vector.broadcast %617 : f32 to vector<16x16xf32>
      %621 = arith.mulf %620, %619 : vector<16x16xf32>
      %622 = arith.addf %616, %621 : vector<16x16xf32>
      %c91 = arith.constant 91 : index
      %623 = memref.load %arg3[%c91] : memref<98xf32, #tpu.memory_space<smem>>
      %c1_352 = arith.constant 1 : index
      %c11_353 = arith.constant 11 : index
      %c125_354 = arith.constant 125 : index
      %624 = vector.load %arg7[%c1_352, %c11_353, %c125_354] : memref<2x27x147xf32, #tpu.memory_space<vmem>>, vector<1x16x16xf32>
      %625 = vector.shape_cast %624 : vector<1x16x16xf32> to vector<16x16xf32>
      %626 = vector.broadcast %623 : f32 to vector<16x16xf32>
      %627 = arith.mulf %626, %625 : vector<16x16xf32>
      %628 = arith.addf %622, %627 : vector<16x16xf32>
      %c92 = arith.constant 92 : index
      %629 = memref.load %arg3[%c92] : memref<98xf32, #tpu.memory_space<smem>>
      %c1_355 = arith.constant 1 : index
      %c11_356 = arith.constant 11 : index
      %c126_357 = arith.constant 126 : index
      %630 = vector.load %arg7[%c1_355, %c11_356, %c126_357] : memref<2x27x147xf32, #tpu.memory_space<vmem>>, vector<1x16x16xf32>
      %631 = vector.shape_cast %630 : vector<1x16x16xf32> to vector<16x16xf32>
      %632 = vector.broadcast %629 : f32 to vector<16x16xf32>
      %633 = arith.mulf %632, %631 : vector<16x16xf32>
      %634 = arith.addf %628, %633 : vector<16x16xf32>
      %c93 = arith.constant 93 : index
      %635 = memref.load %arg3[%c93] : memref<98xf32, #tpu.memory_space<smem>>
      %c1_358 = arith.constant 1 : index
      %c11_359 = arith.constant 11 : index
      %c127_360 = arith.constant 127 : index
      %636 = vector.load %arg7[%c1_358, %c11_359, %c127_360] : memref<2x27x147xf32, #tpu.memory_space<vmem>>, vector<1x16x16xf32>
      %637 = vector.shape_cast %636 : vector<1x16x16xf32> to vector<16x16xf32>
      %638 = vector.broadcast %635 : f32 to vector<16x16xf32>
      %639 = arith.mulf %638, %637 : vector<16x16xf32>
      %640 = arith.addf %634, %639 : vector<16x16xf32>
      %c94 = arith.constant 94 : index
      %641 = memref.load %arg3[%c94] : memref<98xf32, #tpu.memory_space<smem>>
      %c1_361 = arith.constant 1 : index
      %c11_362 = arith.constant 11 : index
      %c128_363 = arith.constant 128 : index
      %642 = vector.load %arg7[%c1_361, %c11_362, %c128_363] : memref<2x27x147xf32, #tpu.memory_space<vmem>>, vector<1x16x16xf32>
      %643 = vector.shape_cast %642 : vector<1x16x16xf32> to vector<16x16xf32>
      %644 = vector.broadcast %641 : f32 to vector<16x16xf32>
      %645 = arith.mulf %644, %643 : vector<16x16xf32>
      %646 = arith.addf %640, %645 : vector<16x16xf32>
      %c95 = arith.constant 95 : index
      %647 = memref.load %arg3[%c95] : memref<98xf32, #tpu.memory_space<smem>>
      %c1_364 = arith.constant 1 : index
      %c11_365 = arith.constant 11 : index
      %c129_366 = arith.constant 129 : index
      %648 = vector.load %arg7[%c1_364, %c11_365, %c129_366] : memref<2x27x147xf32, #tpu.memory_space<vmem>>, vector<1x16x16xf32>
      %649 = vector.shape_cast %648 : vector<1x16x16xf32> to vector<16x16xf32>
      %650 = vector.broadcast %647 : f32 to vector<16x16xf32>
      %651 = arith.mulf %650, %649 : vector<16x16xf32>
      %652 = arith.addf %646, %651 : vector<16x16xf32>
      %c96 = arith.constant 96 : index
      %653 = memref.load %arg3[%c96] : memref<98xf32, #tpu.memory_space<smem>>
      %c1_367 = arith.constant 1 : index
      %c11_368 = arith.constant 11 : index
      %c130_369 = arith.constant 130 : index
      %654 = vector.load %arg7[%c1_367, %c11_368, %c130_369] : memref<2x27x147xf32, #tpu.memory_space<vmem>>, vector<1x16x16xf32>
      %655 = vector.shape_cast %654 : vector<1x16x16xf32> to vector<16x16xf32>
      %656 = vector.broadcast %653 : f32 to vector<16x16xf32>
      %657 = arith.mulf %656, %655 : vector<16x16xf32>
      %658 = arith.addf %652, %657 : vector<16x16xf32>
      %c97 = arith.constant 97 : index
      %659 = memref.load %arg3[%c97] : memref<98xf32, #tpu.memory_space<smem>>
      %c1_370 = arith.constant 1 : index
      %c11_371 = arith.constant 11 : index
      %c131_372 = arith.constant 131 : index
      %660 = vector.load %arg7[%c1_370, %c11_371, %c131_372] : memref<2x27x147xf32, #tpu.memory_space<vmem>>, vector<1x16x16xf32>
      %661 = vector.shape_cast %660 : vector<1x16x16xf32> to vector<16x16xf32>
      %662 = vector.broadcast %659 : f32 to vector<16x16xf32>
      %663 = arith.mulf %662, %661 : vector<16x16xf32>
      %664 = arith.addf %658, %663 : vector<16x16xf32>
      %cst_373 = arith.constant 0.000000e+00 : f32
      %665 = vector.broadcast %cst_373 : f32 to vector<16x16xf32>
      %666 = arith.subf %665, %664 : vector<16x16xf32>
      %667 = math.exp %666 : vector<16x16xf32>
      %cst_374 = arith.constant 1.000000e+00 : f32
      %668 = vector.broadcast %cst_374 : f32 to vector<16x16xf32>
      %669 = arith.addf %668, %667 : vector<16x16xf32>
      %cst_375 = arith.constant 1.000000e+00 : f32
      %670 = vector.broadcast %cst_375 : f32 to vector<16x16xf32>
      %671 = arith.divf %670, %669 : vector<16x16xf32>
      %672 = vector.shape_cast %671 : vector<16x16xf32> to vector<1x1x16x16xf32>
      %c0_376 = arith.constant 0 : index
      %c0_377 = arith.constant 0 : index
      %c0_378 = arith.constant 0 : index
      %c0_379 = arith.constant 0 : index
      %673 = vector.load %arg4[%c0_376, %c0_377, %c0_378, %c0_379] : memref<1x1x16x16xf32, #tpu.memory_space<vmem>>, vector<1x1x16x16xf32>
      tpu.vector_store %arg4[%c0_376, %c0_377, %c0_378, %c0_379], %672 {strides = array<i32>} : memref<1x1x16x16xf32, #tpu.memory_space<vmem>>, vector<1x1x16x16xf32>,
    } else {
    }
    return
  }
  func.func @transform_0(%arg0: i32, %arg1: i32) -> (i32, i32, i32, i32) {
    %c0_i32 = arith.constant 0 : i32
    %c0_i32_0 = arith.constant 0 : i32
    %c0_i32_1 = arith.constant 0 : i32
    return %arg0, %arg1, %c0_i32, %c0_i32_0 : i32, i32, i32, i32
  }
  func.func @transform_1(%arg0: i32, %arg1: i32) -> i32 {
    %c0_i32 = arith.constant 0 : i32
    %c0_i32_0 = arith.constant 0 : i32
    return %c0_i32 : i32
  }
  func.func @transform_2(%arg0: i32, %arg1: i32) -> (i32, i32, i32, i32) {
    %c0_i32 = arith.constant 0 : i32
    %c0_i32_0 = arith.constant 0 : i32
    %c0_i32_1 = arith.constant 0 : i32
    %c0_i32_2 = arith.constant 0 : i32
    return %arg0, %c0_i32, %c0_i32_0, %c0_i32_1 : i32, i32, i32, i32
  }
}

</mosaic_0001>

<bundles_post_ra>
// kernel: tpu_custom_call.1
= control target key start
LH: loop header
LB: loop body
LE: loop exit
PB: predicated region body
PF: predicated region fallthrough
CT: control target
= control target key end

     0   :  { %7 = vsyncpa [#allocation6], 0  ;;  %s7209_s0 = inlined_call_operand.hbm [shape: f32[2,4,16,16], index: 0, kind: input, shape index: {}]   ;;  %s7210_s1 = inlined_call_operand.vmem [shape: f32[98], index: 1, kind: input, shape index: {}]   ;;  %s7211_s2 = inlined_call_operand.hbm [shape: f32[2,1,16,16], index: 2, kind: output, shape index: {}]  }
   0x1   :  { %9 = vsyncpa [#allocation6 + $0x1], 0 }
   0x2   :  { %10 = vsyncpa [#allocation8], 0 }
   0x3   :  { %11 = vsyncpa [#allocation7], 0 }
   0x4   :  { %13 = vsyncpa [#allocation7 + $0x1], 0  ;;  %s4296_s9 = smov 0   ;;  %s4298_s10 = smov 0  }
   0x5   :  { %s4300_s11 = smov 0   ;;  %s4302_s12 = smov 0  }
   0x6   :  { %s4304_s13 = smov 0   ;;  %s4306_s14 = smov 0  }
   0x7 LB: > { %s3871_s15 = sadd.s32 4294967295, %s4263_s14   ;;  %s3872_s16 = sadd.s32 4294967294, %s4263_s14   ;;  %s4263_s14 = sphi %s4306_s14, %s19_s14   ;;  %s4259_s13 = sphi %s4304_s13, %s7540_s13   ;;  %s4255_s12 = sphi %s4302_s12, %s7539_s12   ;;  %s4251_s11 = sphi %s4300_s11, %s7538_s11   ;;  %s4247_s10 = sphi %s4298_s10, %s7537_s10   ;;  %s4243_s9 = sphi %s4296_s9, %s7536_s9  }
   0x8   : > { %s40_s17 = sadd.s32 1, %s4251_s11  ;;  %p47_p0 = scmp.ne.s32.totalorder %s4251_s11, %s4247_s10 }
   0x9   : > { %p48_p1 = scmp.eq.s32.totalorder %s4263_s14, 0  ;;  %p53_p2 = scmp.ne.s32.totalorder %s4247_s10, %s4243_s9 }
   0xa   : > { %p4334_p3 = scmp.eq.s32.totalorder %s3871_s15, 0  ;;  %p98_p4 = scmp.eq.s32.totalorder %s3871_s15, 1 }
   0xb   : > { %p4338_p5 = por %p48_p1, %p47_p0  ;;  %p104_p6 = scmp.eq.s32.totalorder %s3872_s16, 1 }
   0xc   : > { %s7312_s18 = scalar_select %p4334_p3, 1, 0 }
   0xd   : > { %p4344_p7 = por %p4334_p3, %p53_p2  ;;  %p4348_p8 = por %p98_p4, %p47_p0 }
   0xe   : > { %p4352_p9 = por %p104_p6, %p53_p2  ;;  %p3873_p10 = scmp.ge.s32.totalorder %s4263_s14, 1 }
   0xf   : > { %s7314_s20 = scalar_select %p4344_p7, 1, 0 }
  0x10   : > { %s7315_s21 = scalar_select %p4348_p8, 1, 0 }
  0x11   : > { %s7316_s22 = scalar_select %p4352_p9, 1, 0 }
  0x12   : > { %p111_p11 = scmp.lt.s32.totalorder %s4263_s14, 3  ;;  %s124_s25 = sshll.u32 %s7210_s1, 4  ;;  %s125_s25 = int_to_ptr.vmem [resolvable:$true] %s124_s25 }
  0x13   : > { %p4008_p0 = scmp.lt.s32.totalorder %s4263_s14, 2  ;;  %s31_s29 = sadd.s32 1, %s4259_s13 }
  0x14   : > { %p4361_p12 = pnand %p3873_p10, %p111_p11  ;;  %p4382_p6 = scmp.ge.s32.totalorder %s31_s29, 2 }
  0x15   : > { %p4371_p2 = pnand %p4008_p0, %p4338_p5  ;;  %s135_s3 = sand.u32 1, %s4251_s11  }
  0x16   : > { %p3995_p1 = pneg %p4361_p12  ;;  %s4132_s4 = scalar_lea.vmem %s125_s25, 16 }
  0x17   : > { %p4133_p10 = scmp.ne.s32.totalorder %s125_s25, %s4132_s4  ;;  %p4140_p13 = scmp.lt.s32.totalorder %s125_s25, %s125_s25 }
  0x18   : > { %p4377_p4 = pnand %p3995_p1, %p4334_p3  ;;  %p4141_p9 = scmp.lt.s32.totalorder %s4132_s4, %s4132_s4 }
  0x1a   : > { %p4134_p11 = pneg %p4377_p4  ;;  %p4142_p8 = por %p4141_p9, %p4140_p13 }
  0x1c   : > { %p4135_p5 = pnand %p4134_p11, %p4133_p10 }
  0x1e   : > { %p4136_p0 = pneg %p4135_p5 }
  0x20   : > { %p4143_p1 = pnand %p4142_p8, %p4136_p0 }
  0x22   : > { %4146 = shalt.err (!%p4143_p1)
}
  0x23   : > { %s4265_s5 = smov [#allocation9]   ;;  %s7542_s29 = smov (%p4382_p6, %s31_s29), 0 }
  0x24   : > { %3998 = dma.vmem_to_smem (!%p4377_p4), %s125_s25, 16, %s4265_s5, [#allocation8]  }
  0x25   : > { %s3876_s6 = sshll.u32 %s135_s3, 6  ;;  %s35_s7 = ssub.s32 %s4259_s13, %s7542_s29 }
  0x26   : > { %p38_p9 = scmp.eq.s32.totalorder %s35_s7, 0  ;;  %s3985_s8 = sshll.u32 %s4259_s13, 10 }
  0x27   : > { %s4401_s19 = scalar_lea.hbm %s7209_s0, %s3985_s8  ;;  %s139_s23 = scalar_lea.vmem [#allocation5], %s3876_s6 }
  0x28   : > { %s149_s24 = sshll.u32 %s139_s23, 4  ;;  %s4410_s28 = scalar_lea.sflag [#allocation6], %s135_s3  ;;  %s4408_s24 = int_to_ptr.vmem [resolvable:$true] %s149_s24 }
  0x29   : > { %s4406_s25 = scalar_select %p38_p9, %s4251_s11, %s40_s17  }
  0x2a   : > { %s4147_s30 = scalar_lea.hbm %s4401_s19, 1024  ;;  %p4149_p13 = pneg %p4371_p2 }
  0x2b   : > { %p4148_p8 = scmp.ne.s32.totalorder %s4401_s19, %s4147_s30  ;;  %s4152_s6 = scalar_lea.hbm %s7209_s0, 2048 }
  0x2c   : > { %p4153_p10 = scmp.lt.u32.totalorder %s4401_s19, %s7209_s0  ;;  %p4154_p11 = scmp.lt.u32.totalorder %s4152_s6, %s4147_s30 }
  0x2d   : > { %p4150_p4 = pnand %p4149_p13, %p4148_p8  ;;  %p4156_p0 = scmp.lt.u32.totalorder %s4147_s30, %s4401_s19 }
  0x2e   : > { %p4155_p5 = por %p4154_p11, %p4153_p10 }
  0x2f   : > { %p4151_p6 = pneg %p4150_p4 }
  0x30   : > { %p4157_p1 = por %p4156_p0, %p4155_p5 }
  0x32   : > { %p4158_p9 = pnand %p4157_p1, %p4151_p6 }
  0x34   : > { %4161 = shalt.err (!%p4158_p9)
}
  0x35   : > { %s4162_s17 = scalar_lea.vmem %s4408_s24, 1024  ;;  %s4266_s3 = smov [#allocation5]  }
  0x36   : > { %p4163_p8 = scmp.ne.s32.totalorder %s4408_s24, %s4162_s17  ;;  %s4167_s15 = sshll.u32 %s4266_s3, 4  ;;  %s4168_s15 = int_to_ptr.vmem [resolvable:$false] %s4167_s15 }
  0x37   : > { %s4169_s16 = scalar_lea.vmem %s4168_s15, 2048  ;;  %p4170_p7 = scmp.lt.s32.totalorder %s4408_s24, %s4168_s15 }
  0x38   : > { %p4165_p4 = pnand %p4163_p8, %p4149_p13  ;;  %p4171_p10 = scmp.lt.s32.totalorder %s4169_s16, %s4162_s17 }
  0x3a   : > { %p4166_p3 = pneg %p4165_p4  ;;  %p4172_p11 = por %p4171_p10, %p4170_p7 }
  0x3c   : > { %p4173_p5 = pnand %p4172_p11, %p4166_p3 }
  0x3e   : > { %4176 = shalt.err (!%p4173_p5)
}
  0x3f   : > { %s4267_s23 = smov 128   ;;  %s4268_s30 = smov 8  }
  0x40   : > { %4002 = dma.hbm_to_vmem [thread:$0]  (!%p4371_p2), %s4401_s19, 1024, %s4408_s24, %s4410_s28, %s4267_s23, %s4267_s23, %s4268_s30  }
  0x41   : > { %161 = sbr.rel (%p4361_p12) target bundleno = 1053 (0x41d), region = 28 }
  0x48   : > { %s4441_s4 = sand.u32 1, %s4247_s10   ;;  %p7321_p3 = scmp.ne.s32.totalorder %s7314_s20, 0 }
  0x49   : > { %s3880_s5 = sshll.u32 %s4441_s4, 6  ;;  %s164_s6 = scalar_lea.sflag [#allocation6], %s4441_s4 }
  0x4a   : > { %s4445_s7 = scalar_lea.vmem [#allocation5], %s3880_s5 }
  0x4b   : > { %4230 = dma.done.wait (%p7321_p3), %s164_s6, 1024  }
  0x4c   : > { %4232 = vsyncadd (%p7321_p3), %s164_s6, 4294966272  ;;  %p7322_p7 = scmp.ne.s32.totalorder %s7312_s18, 0 }
  0x4e   : > { %4234 = dma.done.wait (%p7322_p7), [#allocation8], 16  }
  0x4f   : > { %4236 = vsyncadd (%p7322_p7), [#allocation8], 4294967280 }
  0x50   : > { %176 = sfence }
  0x51   : > { %s4455_s26 = sld [smem:[#allocation9 + $0x1]]  ;;  %v4269_v0 = vmov 0.0   ;;  %v203_v1 = vld [vmem:[%s4445_s7] sm:$0xff]  ;;  %v205_v2 = vld [vmem:[%s4445_s7 + $0x10] sm:$0xff]  ;;  %vm256_vm0 = vcmask 154624   ;;  %vm198_vm1 = vcmask 130048  }
  0x52   : > { %255 = vst [vmem:[#allocation4] sm:$0xff] %v4269_v0  ;;  %258 = vst [vmem:[#allocation4 + $0x10] sm:$0xff] %v4269_v0  ;;  %v207_v3 = vld [vmem:[%s4445_s7 + $0x20] sm:$0xff]  ;;  %v209_v4 = vld [vmem:[%s4445_s7 + $0x30] sm:$0xff]  ;;  %v4270_v5 = vmov -inf   ;;  %v214_v6 = vsel %vm198_vm1, %v203_v1, 0.0 }
  0x53   : > { %260 = vst [vmem:[#allocation4 + $0x20] sm:$0xff] %v4269_v0  ;;  %262 = vst [vmem:[#allocation4 + $0x30] sm:$0x7] %v4269_v0  ;;  %v215_v7 = vsel %vm198_vm1, %v205_v2, 0.0  ;;  %v217_v8 = vsel %vm198_vm1, %v207_v3, 0.0  ;;  %v234_v9 = vsel %vm198_vm1, %v203_v1, -inf }
  0x54   : > { %265 = vst [vmem:[#allocation4 + $0x40] sm:$0xff] %v4269_v0  ;;  %267 = vst [vmem:[#allocation4 + $0x50] sm:$0xff] %v4269_v0  ;;  %v216_v10 = vadd.f32 %v215_v7, %v214_v6  ;;  %v219_v11 = vsel %vm198_vm1, %v209_v4, 0.0  ;;  %v235_v12 = vsel %vm198_vm1, %v205_v2, -inf  ;;  %v236_v13 = vsel %vm198_vm1, %v207_v3, -inf  ;;  %s4494_s18 = sld [smem:[#allocation9 + $0x2]] }
  0x55   : > { %269 = vst [vmem:[#allocation4 + $0x60] sm:$0xff] %v4269_v0  ;;  %271 = vst [vmem:[#allocation4 + $0x70] sm:$0x7] %v4269_v0  ;;  %v237_v14 = vmax.f32 %v234_v9, %v236_v13  ;;  %v238_v15 = vsel %vm198_vm1, %v209_v4, -inf  ;;  %s4497_s20 = sld [smem:[#allocation9 + $0x4]]  ;;  %v204_v16 = vld [vmem:[%s4445_s7 + $0x8] sm:$0xff] }
  0x56   : > { %257 = vst.msk [vmem:[#allocation4 + $0x8] sm:$0xff] %vm256_vm0, %v4269_v0  ;;  %259 = vst.msk [vmem:[#allocation4 + $0x18] sm:$0xff] %vm256_vm0, %v4269_v0  ;;  %v206_v17 = vld [vmem:[%s4445_s7 + $0x18] sm:$0xff]  ;;  %v208_v18 = vld [vmem:[%s4445_s7 + $0x28] sm:$0xff]  ;;  %v218_v19 = vadd.f32 %v217_v8, %v216_v10  ;;  %v239_v20 = vmax.f32 %v235_v12, %v238_v15  ;;  %v221_v22 = vsel %vm198_vm1, %v204_v16, 0.0  ;;  %s4271_s28 = smov 127  }
  0x57   : > { %268 = vst.msk [vmem:[#allocation4 + $0x58] sm:$0xff] %vm256_vm0, %v4269_v0  ;;  %261 = vst.msk [vmem:[#allocation4 + $0x28] sm:$0xff] %vm256_vm0, %v4269_v0  ;;  %v210_v21 = vld [vmem:[%s4445_s7 + $0x38] sm:$0xff]  ;;  %v222_v23 = vsel %vm198_vm1, %v206_v17, 0.0  ;;  %v224_v25 = vsel %vm198_vm1, %v208_v18, 0.0  ;;  %v4507_v26 = vsel %vm198_vm1, %v206_v17, -inf }
  0x58   : > { %199 = vst.msk [vmem:[#allocation2] sm:$0xff] %vm198_vm1, %v4269_v0  ;;  %201 = vst.msk [vmem:[#allocation3] sm:$0xff] %vm198_vm1, %v4270_v5  ;;  %v223_v24 = vadd.f32 %v222_v23, %v221_v22  ;;  %s304_s27 = smul.f32 0.25, %s4455_s26  ;;  %v220_v27 = vadd.f32 %v219_v11, %v218_v19  ;;  %v240_v28 = vmax.f32 %v237_v14, %v239_v20  ;;  %v4511_v29 = vsel %vm198_vm1, %v210_v21, -inf  ;;  %s4272_s8 = smov 126  }
  0x59   : > { %200 = vst.msk [vmem:[#allocation2 + $0x8] sm:$0xff] %vm198_vm1, %v4269_v0  ;;  %202 = vst.msk [vmem:[#allocation3 + $0x8] sm:$0xff] %vm198_vm1, %v4270_v5  ;;  %v4513_v30 = vld [vmem:[#allocation4] sm:$0xe0]  ;;  %v226_v32 = vsel %vm198_vm1, %v210_v21, 0.0  ;;  %v246_v33 = vmax.f32 %v4507_v26, %v4511_v29  ;;  %s3885_s17 = sld [smem:[#allocation9 + $0x3]] }
  0x5a   : > { %266 = vst.msk [vmem:[#allocation4 + $0x48] sm:$0xff] %vm256_vm0, %v4269_v0  ;;  %270 = vst.msk [vmem:[#allocation4 + $0x68] sm:$0xff] %vm256_vm0, %v4269_v0  ;;  %v225_v31 = vadd.f32 %v224_v25, %v223_v24  ;;  %v305_v34 = vstv %s304_s27  ;;  %s347_s19 = smul.f32 0.25, %s4494_s18  ;;  %v4528_v46 = vld [vmem:[#allocation4 + $0x20] sm:$0x1f]  ;;  %s4273_s3 = smov 124  }
  0x5b   : > { %v306_v38 = vmul.f32 %v305_v34, %v4513_v30  ;;  %s414_s24 = smul.f32 0.25, %s4497_s20  ;;  %v308_v42 = vmul.f32 0.0, %v305_v34  ;;  %v310_v50 = vmul.f32 %v305_v34, %v4528_v46  ;;  %s3887_s16 = sld [smem:[#allocation9 + $0x5]]  ;;  %v4568_v9 = vld [vmem:[#allocation4] sm:$0xc0]  ;;  %vm504_vm2 = vcmask 1046528  }
  0x5c   : > { %v348_v43 = vstv %s347_s19  ;;  %v227_v44 = vadd.f32 %v226_v32, %v225_v31  ;;  %s3890_s23 = sld [smem:[#allocation9 + $0x8]]  ;;  %s4274_s30 = smov 125   ;;  %v4577_v16 = vld [vmem:[#allocation4 + $0x20] sm:$0x3f]  ;;  %vm263_vm3 = vcmask 149504   ;;  %vm766_vm4 = vcmask 1045504  }
  0x5d   : > { %v4518_v35 = vld [vmem:[#allocation4 + $0x8] sm:$0xe0]  ;;  %318 = vrot.lane.b32.xlu0 %v306_v38, %s4271_s28  ;;  %322 = vrot.lane.b32.xlu1 %v308_v42, %s4271_s28  ;;  %v415_v49 = vstv %s414_s24  ;;  %v349_v54 = vmul.f32 %v348_v43, %v4513_v30  ;;  %v351_v56 = vmul.f32 0.0, %v348_v43  ;;  %v353_v59 = vmul.f32 %v348_v43, %v4528_v46  ;;  %s3888_s6 = sld [smem:[#allocation9 + $0x6]]  ;;  %s4570_s20 = sld [smem:[#allocation9 + $0x9]] }
  0x5e   : > { %v307_v45 = vmul.f32 %v305_v34, %v4518_v35  ;;  %v350_v47 = vmul.f32 %v348_v43, %v4518_v35  ;;  %v416_v51 = vmul.f32 %v415_v49, %v4518_v35  ;;  %s4275_s27 = smov 123   ;;  %v4581_v18 = vld [vmem:[#allocation4 + $0x8] sm:$0xc0]  ;;  %s4276_s24 = smov 122   ;;  %264 = vst.msk [vmem:[#allocation4 + $0x38] sm:$0x7] %vm263_vm3, %v4269_v0 }
  0x5f   : > { %v211_v36 = vld [vmem:[#allocation2] sm:$0xff]  ;;  %v232_v37 = vld [vmem:[#allocation3] sm:$0xff]  ;;  %s390_s15 = smul.f32 0.25, %s3885_s17  ;;  %s3892_s17 = sld [smem:[#allocation9 + $0xa]]  ;;  %272 = vst.msk [vmem:[#allocation4 + $0x78] sm:$0x7] %vm263_vm3, %v4269_v0 }
  0x60   : > { %v228_v39 = vadd.f32 %v220_v27, %v211_v36  ;;  %v248_v40 = vmax.f32 %v232_v37, %v240_v28  ;;  %v212_v41 = vld [vmem:[#allocation2 + $0x8] sm:$0xff]  ;;  %vm1022_vm5 = vcmask 1044480   ;;  %vm330_vm6 = vcmask 1039360   ;;  %p7533_p2 = scmp.ne.s32.totalorder %s7315_s21, 0 }
  0x61   : > { %v229_v48 = vadd.f32 %v227_v44, %v212_v41  ;;  %320 = vrot.lane.b32.xlu0 %v307_v45, %s4271_s28  ;;  %363 = vrot.lane.b32.xlu1 %v350_v47, %s4272_s8  ;;  %v391_v60 = vstv %s390_s15  ;;  %s438_s5 = smul.f32 0.25, %s3887_s16  ;;  %s3893_s16 = sld [smem:[#allocation9 + $0xb]]  ;;  %vm373_vm7 = vcmask 1031168   ;;  %vm1250_vm8 = vcmask 1043456  }
  0x62   : > { %230 = vst.msk [vmem:[#allocation2] sm:$0xff] %vm198_vm1, %v228_v39  ;;  %250 = vst.msk [vmem:[#allocation3] sm:$0xff] %vm198_vm1, %v248_v40  ;;  %v392_v63 = vmul.f32 %v391_v60, %v4518_v35  ;;  %s528_s26 = smul.f32 0.25, %s3890_s23  ;;  %s4610_s23 = sld [smem:[#allocation9 + $0xc]]  ;;  %vm1512_vm9 = vcmask 1042432   ;;  %vm1774_vm10 = vcmask 1041408  }
  0x63   : > { %231 = vst.msk [vmem:[#allocation2 + $0x8] sm:$0xff] %vm198_vm1, %v229_v48  ;;  %v439_v5 = vstv %s438_s5  ;;  %s462_s18 = smul.f32 0.25, %s3888_s6  ;;  %vm3749_vm11 = vcmask 23552   ;;  %vm3756_vm12 = vcmask 130053   ;;  %vm3759_vm13 = vcmask 126976  }
  0x64   : > { %v440_v7 = vmul.f32 %v439_v5, %v4518_v35  ;;  %v529_v10 = vstv %s528_s26  ;;  %s580_s19 = smul.f32 0.25, %s4570_s20  ;;  %s3895_s26 = sld [smem:[#allocation9 + $0xd]] }
  0x65   : > { %326 = vrot.lane.b32.xlu0 %v310_v50, %s4271_s28  ;;  %422 = vrot.lane.b32.xlu1 %v416_v51, %s4273_s3  ;;  %v463_v12 = vstv %s462_s18  ;;  %v530_v13 = vmul.f32 %v529_v10, %v4568_v9  ;;  %v532_v14 = vmul.f32 0.0, %v529_v10  ;;  %v534_v21 = vmul.f32 %v529_v10, %v4577_v16  ;;  %s632_s15 = smul.f32 0.25, %s3892_s17  ;;  %s3897_s18 = sld [smem:[#allocation9 + $0xf]] }
  0x66   : > { %v464_v22 = vmul.f32 %v463_v12, %v4518_v35  ;;  %v531_v23 = vmul.f32 %v529_v10, %v4581_v18  ;;  %v581_v32 = vstv %s580_s19  ;;  %s4649_s17 = sld [smem:[#allocation9 + $0x10]] }
  0x67   : > { %v542_v19 = vrot.slane %v530_v13, 1  ;;  %v543_v20 = vrot.slane %v532_v14, 1  ;;  %v548_v28 = vrot.slane %v534_v21, 1  ;;  %v582_v39 = vmul.f32 %v581_v32, %v4568_v9  ;;  %s661_s5 = smul.f32 0.25, %s3893_s16  ;;  %s3899_s16 = sld [smem:[#allocation9 + $0x11]] }
  0x68   : > { %v584_v40 = vmul.f32 0.0, %v581_v32  ;;  %v586_v45 = vmul.f32 %v581_v32, %v4577_v16  ;;  %v583_v48 = vmul.f32 %v581_v32, %v4581_v18  ;;  %s690_s6 = smul.f32 0.25, %s4610_s23 }
  0x69   : > { %v273_v52 = vld [vmem:[#allocation2] sm:$0xff]  ;;  %v277_v53 = vld [vmem:[#allocation3] sm:$0xff]  ;;  %361 = vrot.lane.b32.xlu0 %v349_v54, %s4272_s8  ;;  %v544_v27 = vsel %vm504_vm2, %v542_v19, %v543_v20  ;;  %v549_v38 = vsel %vm504_vm2, %v543_v20, %v548_v28 }
  0x6a   : > { %275 = vst.msk [vmem:[#allocation4 + $0x18] sm:$0xff] %vm198_vm1, %v273_v52  ;;  %280 = vst.msk [vmem:[#allocation4 + $0x58] sm:$0xff] %vm198_vm1, %v277_v53  ;;  %v274_v55 = vld [vmem:[#allocation2 + $0x8] sm:$0xff]  ;;  %v595_v44 = vrot.slane %v584_v40, 1  ;;  %v600_v51 = vrot.slane %v586_v45, 1  ;;  %v633_v52 = vstv %s632_s15  ;;  %v597_v53 = vrot.slane %v583_v48, 1 }
  0x6b   : > { %276 = vst.msk [vmem:[#allocation4 + $0x28] sm:$0xff] %vm198_vm1, %v274_v55  ;;  %v691_v0 = vstv %s690_s6  ;;  %s719_s20 = smul.f32 0.25, %s3895_s26  ;;  %v4659_v45 = vld [vmem:[#allocation4 + $0x8] sm:$0x80]  ;;  %s4688_s6 = sld [smem:[#allocation9 + $0x13]] }
  0x6c   : > { %v692_v13 = vmul.f32 %v691_v0, %v4581_v18  ;;  %s790_s19 = smul.f32 0.25, %s3897_s18 }
  0x6d   : > { %365 = vrot.lane.b32.xlu0 %v351_v56, %s4272_s8  ;;  %v601_v56 = vsel %vm504_vm2, %v595_v44, %v600_v51  ;;  %s842_s15 = smul.f32 0.25, %s4649_s17 }
  0x6e   : > { %v698_v20 = vrot.slane %v692_v13, 1  ;;  %s894_s23 = smul.f32 0.25, %s3899_s16 }
  0x70   : > { %v895_v13 = vstv %s894_s23  ;;  %s4751_s23 = sld [smem:[#allocation9 + $0x17]] }
  0x71   : > { %v4543_v57 = vld [vmem:[#allocation4 + $0x18] sm:$0xff]  ;;  %369 = vrot.lane.b32.xlu0 %v353_v59, %s4272_s8  ;;  %s952_s18 = smul.f32 0.25, %s4688_s6  ;;  %s4758_s6 = sld [smem:[#allocation9 + $0x7]] }
  0x72   : > { %v309_v58 = vmul.f32 %v305_v34, %v4543_v57  ;;  %v4549_v61 = vld [vmem:[#allocation4 + $0x28] sm:$0x1f]  ;;  %v352_v1 = vmul.f32 %v348_v43, %v4543_v57  ;;  %v417_v4 = vmul.f32 %v415_v49, %v4543_v57  ;;  %v393_v6 = vmul.f32 %v391_v60, %v4543_v57 }
  0x73   : > { %v311_v62 = vmul.f32 %v305_v34, %v4549_v61  ;;  %v394_v2 = vmul.f32 %v391_v60, %v4549_v61  ;;  %v354_v3 = vmul.f32 %v348_v43, %v4549_v61  ;;  %v418_v8 = vmul.f32 %v415_v49, %v4549_v61  ;;  %v4590_v25 = vld [vmem:[#allocation4 + $0x28] sm:$0x3f] }
  0x74   : > { %324 = vrot.lane.b32.xlu1 %v309_v58, %s4271_s28  ;;  %v442_v11 = vmul.f32 %v439_v5, %v4549_v61  ;;  %v441_v15 = vmul.f32 %v439_v5, %v4543_v57  ;;  %v465_v17 = vmul.f32 %v463_v12, %v4543_v57  ;;  %v533_v24 = vmul.f32 %v529_v10, %v4543_v57 }
  0x75   : > { %398 = vrot.lane.b32.xlu0 %v392_v63, %s4274_s30  ;;  %v466_v31 = vmul.f32 %v463_v12, %v4549_v61  ;;  %v545_v34 = vrot.slane %v531_v23, 1  ;;  %v535_v37 = vmul.f32 %v529_v10, %v4590_v25  ;;  %v594_v43 = vrot.slane %v582_v39, 1 }
  0x76   : > { %v546_v36 = vrot.slane %v533_v24, 1  ;;  %v585_v49 = vmul.f32 %v581_v32, %v4543_v57  ;;  %v587_v55 = vmul.f32 %v581_v32, %v4590_v25  ;;  %v634_v58 = vmul.f32 %v633_v52, %v4581_v18  ;;  %v4647_v32 = vld [vmem:[#allocation4] sm:$0x80] }
  0x77   : > { %v550_v42 = vrot.slane %v535_v37, 1  ;;  %v596_v50 = vsel %vm504_vm2, %v594_v43, %v595_v44  ;;  %v635_v59 = vmul.f32 %v633_v52, %v4543_v57  ;;  %v693_v14 = vmul.f32 %v691_v0, %v4543_v57 }
  0x78   : > { %328 = vrot.lane.b32.xlu1 %v311_v62, %s4271_s28  ;;  %v547_v41 = vsel %vm504_vm2, %v545_v34, %v546_v36  ;;  %v598_v54 = vrot.slane %v585_v49, 1  ;;  %v602_v62 = vrot.slane %v587_v55, 1  ;;  %v640_v63 = vrot.slane %v634_v58, 1 }
  0x79   : > { %402 = vrot.lane.b32.xlu0 %v394_v2, %s4274_s30  ;;  %v551_v47 = vsel %vm504_vm2, %v546_v36, %v550_v42  ;;  %v662_v2 = vstv %s661_s5  ;;  %v699_v21 = vrot.slane %v693_v14, 1  ;;  %v694_v24 = vmul.f32 %v691_v0, %v4590_v25  ;;  %s3900_s5 = sld [smem:[#allocation9 + $0x12]] }
  0x7a   : > { %v599_v60 = vsel %vm504_vm2, %v597_v53, %v598_v54  ;;  %v663_v10 = vmul.f32 %v662_v2, %v4581_v18  ;;  %v791_v34 = vstv %s790_s19  ;;  %v843_v58 = vstv %s842_s15  ;;  %s4721_s19 = sld [smem:[#allocation9 + $0x16]]  ;;  %s4737_s15 = sld [smem:[#allocation9]] }
  0x7b   : > { %v701_v36 = vrot.slane %v694_v24, 1  ;;  %v792_v40 = vmul.f32 %v791_v34, %v4647_v32  ;;  %v795_v53 = vmul.f32 %v791_v34, %v4543_v57 }
  0x7c   : > { %367 = vrot.lane.b32.xlu1 %v352_v1, %s4272_s8  ;;  %v641_v1 = vrot.slane %v635_v59, 1 }
  0x7d   : > { %424 = vrot.lane.b32.xlu0 %v417_v4, %s4273_s3  ;;  %v636_v4 = vmul.f32 %v633_v52, %v4590_v25  ;;  %v702_v43 = vsel %vm504_vm2, %v699_v21, %v701_v36  ;;  %v804_v48 = vrot.slane %v792_v40, 2  ;;  %v793_v52 = vmul.f32 %v791_v34, %v4659_v45 }
  0x7e   : > { %v642_v5 = vsel %vm504_vm2, %v640_v63, %v641_v1 }
  0x7f   : > { %v807_v59 = vrot.slane %v793_v52, 2  ;;  %s923_s26 = smul.f32 0.25, %s3900_s5 }
  0x80   : > { %371 = vrot.lane.b32.xlu1 %v354_v3, %s4272_s8  ;;  %v603_v3 = vsel %vm504_vm2, %v598_v54, %v602_v62  ;;  %v4669_v54 = vld [vmem:[#allocation4 + $0x28] sm:$0x7f]  ;;  %s1042_s16 = smul.f32 0.25, %s4721_s19  ;;  %s4808_s19 = sld [smem:[#allocation9 + $0x19]] }
  0x81   : > { %446 = vrot.lane.b32.xlu0 %v440_v7, %s4275_s27  ;;  %v665_v7 = vmul.f32 %v662_v2, %v4590_v25  ;;  %s283_s5 = smul.f32 0.25, %s4737_s15  ;;  %s4835_s15 = sld [smem:[#allocation9 + $0x1a]] }
  0x83   : > { %v672_v12 = vrot.slane %v665_v7, 1 }
  0x84   : > { %400 = vrot.lane.b32.xlu1 %v393_v6, %s4274_s30  ;;  %v664_v6 = vmul.f32 %v662_v2, %v4543_v57  ;;  %v846_v2 = vmul.f32 0.0, %v843_v58 }
  0x85   : > { %450 = vrot.lane.b32.xlu0 %v442_v11, %s4275_s27 }
  0x86   : > { %v670_v11 = vrot.slane %v664_v6, 1  ;;  %v857_v6 = vrot.slane %v846_v2, 2 }
  0x88   : > { %426 = vrot.lane.b32.xlu1 %v418_v8, %s4273_s3  ;;  %v643_v8 = vrot.slane %v636_v4, 1  ;;  %v673_v19 = vsel %vm504_vm2, %v670_v11, %v672_v12 }
  0x89   : > { %472 = vrot.lane.b32.xlu0 %v465_v17, %s4276_s24  ;;  %v669_v17 = vrot.slane %v663_v10, 1  ;;  %v847_v10 = vmul.f32 %v843_v58, %v4543_v57 }
  0x8b   : > { %v671_v23 = vsel %vm504_vm2, %v669_v17, %v670_v11  ;;  %v849_v17 = vmul.f32 %v843_v58, %v4669_v54 }
  0x8c   : > { %448 = vrot.lane.b32.xlu1 %v441_v15, %s4275_s27  ;;  %v644_v15 = vsel %vm504_vm2, %v641_v1, %v643_v8  ;;  %v844_v1 = vmul.f32 %v843_v58, %v4647_v32 }
  0x8d   : > { %552 = vrot.lane.b32.xlu0 %v544_v27, %s4271_s28  ;;  %v700_v27 = vsel %vm504_vm2, %v698_v20, %v699_v21  ;;  %v896_v20 = vmul.f32 %v895_v13, %v4659_v45  ;;  %v897_v21 = vmul.f32 %v895_v13, %v4543_v57 }
  0x8f   : > { %v902_v24 = vrot.slane %v896_v20, 2 }
  0x90   : > { %470 = vrot.lane.b32.xlu1 %v464_v22, %s4276_s24  ;;  %v720_v22 = vstv %s719_s20  ;;  %s4702_s20 = sld [smem:[#allocation9 + $0x14]] }
  0x91   : > { %556 = vrot.lane.b32.xlu0 %v549_v38, %s4271_s28  ;;  %v721_v37 = vmul.f32 %v720_v22, %v4581_v18 }
  0x93   : > { %v727_v44 = vrot.slane %v721_v37, 1  ;;  %v898_v37 = vmul.f32 %v895_v13, %v4669_v54  ;;  %v1043_v13 = vstv %s1042_s16  ;;  %s1155_s16 = smul.f32 0.25, %s4808_s19 }
  0x94   : > { %474 = vrot.lane.b32.xlu1 %v466_v31, %s4276_s24  ;;  %v723_v31 = vmul.f32 %v720_v22, %v4590_v25  ;;  %v1044_v20 = vmul.f32 0.0, %v1043_v13 }
  0x95   : > { %560 = vrot.lane.b32.xlu0 %v548_v28, %s4271_s28  ;;  %v722_v28 = vmul.f32 %v720_v22, %v4543_v57 }
  0x96   : > { %v730_v39 = vrot.slane %v723_v31, 1  ;;  %v924_v31 = vstv %s923_s26  ;;  %s981_s17 = smul.f32 0.25, %s4702_s20 }
  0x97   : > { %v728_v38 = vrot.slane %v722_v28, 1  ;;  %v927_v40 = vmul.f32 %v924_v31, %v4669_v54  ;;  %s1086_s26 = smul.f32 0.25, %s4751_s23  ;;  %s4860_s23 = sld [smem:[#allocation9 + $0x1b]] }
  0x98   : > { %554 = vrot.lane.b32.xlu1 %v547_v41, %s4271_s28  ;;  %v794_v41 = vmul.f32 0.0, %v791_v34  ;;  %s486_s20 = smul.f32 0.25, %s4758_s6  ;;  %s4886_s6 = sld [smem:[#allocation9 + $0x1d]] }
  0x99   : > { %604 = vrot.lane.b32.xlu0 %v596_v50, %s4272_s8 }
  0x9a   : > { %v805_v49 = vrot.slane %v794_v41, 2 }
  0x9c   : > { %558 = vrot.lane.b32.xlu1 %v551_v47, %s4271_s28  ;;  %v731_v47 = vsel %vm504_vm2, %v728_v38, %v730_v39  ;;  %v806_v55 = vsel %vm766_vm4, %v804_v48, %v805_v49 }
  0x9d   : > { %608 = vrot.lane.b32.xlu0 %v601_v56, %s4272_s8 }
  0x9e   : > { %s1274_s19 = smul.f32 0.25, %s4886_s6 }
  0xa0   : > { %562 = vrot.lane.b32.xlu1 %v550_v42, %s4271_s28  ;;  %v4655_v42 = vld [vmem:[#allocation4 + $0x20] sm:$0x7f] }
  0xa1   : > { %612 = vrot.lane.b32.xlu0 %v600_v51, %s4272_s8  ;;  %v796_v50 = vmul.f32 %v791_v34, %v4655_v42  ;;  %v729_v51 = vsel %vm504_vm2, %v727_v44, %v728_v38  ;;  %v848_v7 = vmul.f32 %v843_v58, %v4655_v42  ;;  %v905_v44 = vrot.slane %v898_v37, 2 }
  0xa3   : > { %v810_v56 = vrot.slane %v796_v50, 2  ;;  %v934_v50 = vrot.slane %v927_v40, 2 }
  0xa4   : > { %606 = vrot.lane.b32.xlu1 %v599_v60, %s4272_s8  ;;  %v808_v60 = vrot.slane %v795_v53, 2 }
  0xa5   : > { %645 = vrot.lane.b32.xlu0 %v642_v5, %s4274_s30  ;;  %v811_v63 = vsel %vm766_vm4, %v805_v49, %v810_v56  ;;  %v856_v5 = vrot.slane %v844_v1, 2  ;;  %v982_v1 = vstv %s981_s17 }
  0xa7   : > { %v858_v11 = vsel %vm766_vm4, %v856_v5, %v857_v6  ;;  %v984_v5 = vmul.f32 %v982_v1, %v4543_v57 }
  0xa8   : > { %610 = vrot.lane.b32.xlu1 %v603_v3, %s4272_s8  ;;  %v809_v3 = vsel %vm766_vm4, %v807_v59, %v808_v60 }
  0xa9   : > { %649 = vrot.lane.b32.xlu0 %v643_v8, %s4274_s30  ;;  %v845_v8 = vmul.f32 %v843_v58, %v4659_v45 }
  0xab   : > { %v859_v14 = vrot.slane %v845_v8, 2  ;;  %v983_v8 = vmul.f32 %v982_v1, %v4659_v45 }
  0xac   : > { %614 = vrot.lane.b32.xlu1 %v602_v62, %s4272_s8  ;;  %v797_v62 = vmul.f32 %v791_v34, %v4669_v54 }
  0xad   : > { %676 = vrot.lane.b32.xlu0 %v673_v19, %s4273_s3 }
  0xae   : > { %v812_v4 = vrot.slane %v797_v62, 2 }
  0xb0   : > { %647 = vrot.lane.b32.xlu1 %v644_v15, %s4274_s30  ;;  %v813_v0 = vsel %vm766_vm4, %v808_v60, %v812_v4  ;;  %v860_v15 = vrot.slane %v847_v10, 2 }
  0xb1   : > { %703 = vrot.lane.b32.xlu0 %v700_v27, %s4275_s27  ;;  %v903_v27 = vrot.slane %v897_v21, 2 }
  0xb2   : > { %v861_v22 = vsel %vm766_vm4, %v859_v14, %v860_v15 }
  0xb3   : > { %v904_v38 = vsel %vm766_vm4, %v902_v24, %v903_v27 }
  0xb4   : > { %674 = vrot.lane.b32.xlu1 %v671_v23, %s4273_s3  ;;  %v864_v23 = vrot.slane %v849_v17, 2  ;;  %v989_v17 = vrot.slane %v983_v8, 2 }
  0xb5   : > { %707 = vrot.lane.b32.xlu0 %v701_v36, %s4275_s27 }
  0xb6   : > { %v865_v34 = vsel %vm766_vm4, %v860_v15, %v864_v23 }
  0xb8   : > { %678 = vrot.lane.b32.xlu1 %v672_v12, %s4273_s3  ;;  %v862_v12 = vrot.slane %v848_v7, 2 }
  0xb9   : > { %734 = vrot.lane.b32.xlu0 %v731_v47, %s4276_s24  ;;  %v925_v47 = vmul.f32 %v924_v31, %v4659_v45 }
  0xba   : > { %v863_v19 = vsel %vm766_vm4, %v857_v6, %v862_v12  ;;  %v985_v6 = vmul.f32 %v982_v1, %v4669_v54 }
  0xbc   : > { %705 = vrot.lane.b32.xlu1 %v702_v43, %s4275_s27  ;;  %v953_v43 = vstv %s952_s18  ;;  %s4780_s18 = sld [smem:[#allocation9 + $0x18]] }
  0xbd   : > { %814 = vrot.lane.b32.xlu0 %v806_v55, %s4271_s28  ;;  %v955_v52 = vmul.f32 %v953_v43, %v4543_v57  ;;  %v906_v55 = vsel %vm766_vm4, %v903_v27, %v905_v44  ;;  %v4764_v27 = vstv %s283_s5  ;;  %s1180_s5 = smul.f32 0.25, %s4835_s15 }
  0xbe   : > { %v292_v40 = vmul.f32 %v4764_v27, %v4518_v35 }
  0xbf   : > { %v961_v60 = vrot.slane %v955_v52, 2 }
  0xc0   : > { %732 = vrot.lane.b32.xlu1 %v729_v51, %s4276_s24  ;;  %v954_v51 = vmul.f32 %v953_v43, %v4659_v45 }
  0xc1   : > { %818 = vrot.lane.b32.xlu0 %v811_v63, %s4271_s28 }
  0xc2   : > { %v960_v59 = vrot.slane %v954_v51, 2  ;;  %s1130_s17 = smul.f32 0.25, %s4780_s18 }
  0xc3   : > { %s1205_s18 = smul.f32 0.25, %s4860_s23  ;;  %s5084_s23 = sld [smem:[#allocation9 + $0x20]] }
  0xc4   : > { %736 = vrot.lane.b32.xlu1 %v730_v39, %s4276_s24  ;;  %v926_v39 = vmul.f32 %v924_v31, %v4543_v57 }
  0xc5   : > { %822 = vrot.lane.b32.xlu0 %v810_v56, %s4271_s28  ;;  %v931_v56 = vrot.slane %v925_v47, 2  ;;  %v1087_v47 = vstv %s1086_s26  ;;  %s4888_s26 = sld [smem:[#allocation9 + $0xe]] }
  0xc6   : > { %v932_v49 = vrot.slane %v926_v39, 2 }
  0xc8   : > { %816 = vrot.lane.b32.xlu1 %v809_v3, %s4271_s28  ;;  %v935_v58 = vsel %vm766_vm4, %v932_v49, %v934_v50  ;;  %v933_v2 = vsel %vm766_vm4, %v931_v56, %v932_v49  ;;  %v956_v3 = vmul.f32 %v953_v43, %v4669_v54 }
  0xc9   : > { %866 = vrot.lane.b32.xlu0 %v858_v11, %s4272_s8  ;;  %v990_v11 = vrot.slane %v984_v5, 2  ;;  %s1407_s6 = smul.f32 0.25, %s5084_s23  ;;  %s5243_s23 = sld [smem:[#allocation9 + $0x26]] }
  0xcb   : > { %v991_v24 = vsel %vm766_vm4, %v989_v17, %v990_v11  ;;  %v1089_v17 = vmul.f32 %v1087_v47, %v4543_v57 }
  0xcc   : > { %820 = vrot.lane.b32.xlu1 %v813_v0, %s4271_s28  ;;  %v963_v0 = vrot.slane %v956_v3, 2 }
  0xcd   : > { %870 = vrot.lane.b32.xlu0 %v863_v19, %s4272_s8 }
  0xce   : > { %v964_v15 = vsel %vm766_vm4, %v961_v60, %v963_v0 }
  0xcf   : > { %v4698_v28 = vpop.permute.xlu0 %318  ;;  %v4705_v36 = vpop.permute.xlu1 %322 }
  0xd0   : > { %824 = vrot.lane.b32.xlu1 %v812_v4, %s4271_s28  ;;  %v962_v4 = vsel %vm766_vm4, %v960_v59, %v961_v60  ;;  %v1088_v59 = vmul.f32 0.0, %v1087_v47 }
  0xd1   : > { %874 = vrot.lane.b32.xlu0 %v862_v12, %s4272_s8  ;;  %v992_v12 = vrot.slane %v985_v6, 2 }
  0xd2   : > { %v1096_v5 = vrot.slane %v1088_v59, 3 }
  0xd3   : > { %v4712_v41 = vpop.permute.xlu0 %320  ;;  %v4717_v48 = vpop.permute.xlu1 %363  ;;  %v993_v21 = vsel %vm766_vm4, %v990_v11, %v992_v12 }
  0xd4   : > { %868 = vrot.lane.b32.xlu1 %v861_v22, %s4272_s8  ;;  %v331_v49 = vsel %vm330_vm6, %v4698_v28, %v4712_v41  ;;  %v341_v52 = vadd.f32 %v4712_v41, %v292_v40  ;;  %v491_v41 = vstv %s486_s20  ;;  %s4908_s20 = sld [smem:[#allocation9 + $0x1e]] }
  0xd5   : > { %907 = vrot.lane.b32.xlu0 %v904_v38, %s4274_s30  ;;  %v1045_v38 = vmul.f32 %v1043_v13, %v4543_v57  ;;  %v492_v6 = vmul.f32 %v491_v41, %v4568_v9  ;;  %v4826_v9 = vmul.f32 %v491_v41, %v4577_v16 }
  0xd7   : > { %v4723_v53 = vpop.permute.xlu0 %326  ;;  %v4733_v63 = vpop.permute.xlu1 %422  ;;  %v1053_v35 = vrot.slane %v1045_v38, 3 }
  0xd8   : > { %872 = vrot.lane.b32.xlu1 %v865_v34, %s4272_s8  ;;  %v1052_v34 = vrot.slane %v1044_v20, 3  ;;  %v505_v20 = vrot.slane %v492_v6, 1 }
  0xd9   : > { %911 = vrot.lane.b32.xlu0 %v905_v44, %s4274_s30  ;;  %v291_v44 = vmul.f32 %v4764_v27, %v4513_v30  ;;  %v296_v30 = vmul.f32 %v4764_v27, %v4549_v61 }
  0xda   : > { %s1326_s15 = smul.f32 0.25, %s4908_s20  ;;  %s5175_s20 = sld [smem:[#allocation9 + $0x24]] }
  0xdb   : > { %v4730_v62 = vpop.permute.xlu0 %361  ;;  %v340_v60 = vadd.f32 %v331_v49, %v291_v44  ;;  %v1097_v44 = vrot.slane %v1089_v17, 3 }
  0xdc   : > { %876 = vrot.lane.b32.xlu1 %v864_v23, %s4272_s8  ;;  %v4761_v23 = vld [vmem:[#allocation4 + $0x28] sm:$0xff]  ;;  %v374_v56 = vsel %vm373_vm7, %v4730_v62, %v4717_v48  ;;  %v384_v62 = vadd.f32 %v4717_v48, %v341_v52  ;;  %v4816_v48 = vmul.f32 0.0, %v491_v41 }
  0xdd   : > { %938 = vrot.lane.b32.xlu0 %v935_v58, %s4273_s3  ;;  %v4775_v39 = vmul.f32 %v4761_v23, %v1043_v13 }
  0xde   : > { %v506_v16 = vrot.slane %v4816_v48, 1 }
  0xdf   : > { %v4744_v7 = vpop.permute.xlu0 %365  ;;  %v1056_v51 = vrot.slane %v4775_v39, 3 }
  0xe0   : > { %909 = vrot.lane.b32.xlu1 %v906_v55, %s4274_s30  ;;  %v295_v55 = vmul.f32 %v4764_v27, %v4528_v46 }
  0xe1   : > { %965 = vrot.lane.b32.xlu0 %v962_v4, %s4275_s27  ;;  %v1057_v61 = vsel %vm1022_vm5, %v1053_v35, %v1056_v51 }
  0xe3   : > { %v370_v14 = vpop.permute.xlu0 %369 }
  0xe4   : > { %936 = vrot.lane.b32.xlu1 %v933_v2, %s4273_s3 }
  0xe5   : > { %969 = vrot.lane.b32.xlu0 %v963_v0, %s4275_s27  ;;  %v493_v0 = vmul.f32 %v491_v41, %v4581_v18 }
  0xe6   : > { %v4749_v10 = vpop.permute.xlu1 %324 }
  0xe7   : > { %v399_v22 = vpop.permute.xlu0 %398 }
  0xe8   : > { %940 = vrot.lane.b32.xlu1 %v934_v50, %s4273_s3  ;;  %v408_v11 = vadd.f32 %v399_v22, %v384_v62 }
  0xe9   : > { %996 = vrot.lane.b32.xlu0 %v993_v21, %s4276_s24  ;;  %v508_v21 = vrot.slane %v493_v0, 1 }
  0xea   : > { %v329_v19 = vpop.permute.xlu1 %328 }
  0xeb   : > { %v4770_v37 = vpop.permute.xlu0 %402  ;;  %v333_v28 = vsel %vm330_vm6, %v4723_v53, %v329_v19  ;;  %v383_v53 = vadd.f32 %v374_v56, %v340_v60  ;;  %v345_v3 = vadd.f32 %v329_v19, %v296_v30  ;;  %v4823_v19 = vmul.f32 %v4761_v23, %v1087_v47 }
  0xec   : > { %967 = vrot.lane.b32.xlu1 %v964_v15, %s4275_s27  ;;  %v344_v2 = vadd.f32 %v333_v28, %v295_v55  ;;  %v4819_v15 = vmul.f32 %v491_v41, %v4543_v57  ;;  %v507_v55 = vsel %vm504_vm2, %v505_v20, %v506_v16 }
  0xed   : > { %1058 = vrot.lane.b32.xlu0 %v1052_v34, %s4271_s28  ;;  %v407_v8 = vadd.f32 %v399_v22, %v383_v53  ;;  %v1131_v22 = vstv %s1130_s17  ;;  %v1100_v47 = vrot.slane %v4823_v19, 3  ;;  %s748_s17 = smul.f32 0.25, %s4888_s26  ;;  %s5148_s26 = sld [smem:[#allocation9 + $0x22]] }
  0xee   : > { %v4767_v31 = vpop.permute.xlu1 %367  ;;  %v509_v40 = vrot.slane %v4819_v15, 1  ;;  %v1132_v56 = vmul.f32 %v1131_v22, %v4543_v57 }
  0xef   : > { %v4788_v50 = vpop.permute.xlu0 %424 }
  0xf0   : > { %994 = vrot.lane.b32.xlu1 %v991_v24, %s4276_s24  ;;  %v431_v24 = vadd.f32 %v4733_v63, %v407_v8  ;;  %v1136_v6 = vrot.slane %v1132_v56, 3 }
  0xf1   : > { %1062 = vrot.lane.b32.xlu0 %v1052_v34, %s4271_s28 }
  0xf2   : > { %v372_v43 = vpop.permute.xlu1 %371 }
  0xf3   : > { %v376_v46 = vsel %vm373_vm7, %v370_v14, %v372_v43  ;;  %v447_v1 = vpop.permute.xlu0 %446  ;;  %v388_v13 = vadd.f32 %v372_v43, %v345_v3 }
  0xf4   : > { %998 = vrot.lane.b32.xlu1 %v992_v12, %s4276_s24  ;;  %v387_v12 = vadd.f32 %v376_v46, %v344_v2  ;;  %v455_v49 = vadd.f32 %v447_v1, %v431_v24  ;;  %v1156_v46 = vstv %s1155_s16  ;;  %v511_v2 = vrot.slane %v4826_v9, 1  ;;  %s5037_s16 = sld [smem:[#allocation9 + $0x1f]] }
  0xf5   : > { %1066 = vrot.lane.b32.xlu0 %v1052_v34, %s4271_s28  ;;  %v432_v34 = vadd.f32 %v4733_v63, %v408_v11  ;;  %v412_v39 = vadd.f32 %v4770_v37, %v388_v13  ;;  %v1157_v11 = vmul.f32 %v1156_v46, %v4543_v57 }
  0xf6   : > { %v4803_v58 = vpop.permute.xlu1 %400  ;;  %v411_v38 = vadd.f32 %v4770_v37, %v387_v12  ;;  %v4845_v37 = vmul.f32 %v491_v41, %v4590_v25  ;;  %v1101_v25 = vsel %vm1022_vm5, %v1097_v44, %v1100_v47  ;;  %v1133_v41 = vmul.f32 %v4761_v23, %v1131_v22 }
  0xf7   : > { %v451_v14 = vpop.permute.xlu0 %450  ;;  %v456_v63 = vadd.f32 %v447_v1, %v432_v34  ;;  %v1158_v12 = vmul.f32 %v4761_v23, %v1156_v46  ;;  %v1161_v20 = vrot.slane %v1157_v11, 3  ;;  %v1181_v22 = vstv %s1180_s5  ;;  %v4894_v34 = vld [vmem:[#allocation4] sm:$0xff] }
  0xf8   : > { %1060 = vrot.lane.b32.xlu1 %v1053_v35, %s4271_s28  ;;  %v513_v3 = vrot.slane %v4845_v37, 1  ;;  %v1137_v17 = vrot.slane %v1133_v41, 3  ;;  %v1275_v11 = vstv %s1274_s19  ;;  %s1465_s19 = smul.f32 0.25, %s5148_s26 }
  0xf9   : > { %1102 = vrot.lane.b32.xlu0 %v1096_v5, %s4272_s8 }
  0xfa   : > { %v427_v4 = vpop.permute.xlu1 %426  ;;  %s1378_s5 = smul.f32 0.25, %s5037_s16 }
  0xfb   : > { %v4839_v43 = vpop.permute.xlu0 %472  ;;  %v435_v35 = vadd.f32 %v427_v4, %v411_v38  ;;  %v436_v52 = vadd.f32 %v427_v4, %v412_v39  ;;  %v293_v38 = vmul.f32 %v4894_v34, %v4764_v27  ;;  %v294_v39 = vmul.f32 %v4764_v27, %v4543_v57 }
  0xfc   : > { %1064 = vrot.lane.b32.xlu1 %v1057_v61, %s4271_s28  ;;  %v375_v27 = vsel %vm373_vm7, %v4744_v7, %v4767_v31 }
  0xfd   : > { %1106 = vrot.lane.b32.xlu0 %v1096_v5, %s4272_s8  ;;  %v459_v1 = vadd.f32 %v451_v14, %v435_v35  ;;  %v460_v61 = vadd.f32 %v451_v14, %v436_v52 }
  0xfe   : > { %v4829_v18 = vpop.permute.xlu1 %448 }
  0xff   : > { %v4855_v60 = vpop.permute.xlu0 %552 }
 0x100   : > { %1068 = vrot.lane.b32.xlu1 %v1056_v51, %s4271_s28  ;;  %v510_v51 = vsel %vm504_vm2, %v508_v21, %v509_v40  ;;  %v1162_v21 = vrot.slane %v1158_v12, 3  ;;  %v4943_v12 = vld [vmem:[#allocation4 + $0x38] sm:$0x1] }
 0x101   : > { %1110 = vrot.lane.b32.xlu0 %v1096_v5, %s4272_s8 }
 0x102   : > { %v471_v30 = vpop.permute.xlu1 %470  ;;  %v1163_v35 = vsel %vm1022_vm5, %v1161_v20, %v1162_v21 }
 0x103   : > { %v479_v28 = vadd.f32 %v471_v30, %v455_v49  ;;  %v480_v59 = vadd.f32 %v471_v30, %v456_v63  ;;  %v4872_v13 = vpop.permute.xlu0 %556  ;;  %v332_v49 = vsel %vm330_vm6, %v4705_v36, %v4749_v10  ;;  %v1183_v36 = vmul.f32 %v4761_v23, %v1181_v22 }
 0x104   : > { %1104 = vrot.lane.b32.xlu1 %v1097_v44, %s4272_s8  ;;  %v1138_v44 = vsel %vm1022_vm5, %v1136_v6, %v1137_v17  ;;  %v343_v30 = vadd.f32 %v4749_v10, %v294_v39 }
 0x105   : > { %v4862_v62 = vadd.f32 %v507_v55, %v479_v28  ;;  %v4864_v53 = vadd.f32 %v510_v51, %v480_v59  ;;  %1139 = vrot.lane.b32.xlu0 %v1136_v6, %s4274_s30  ;;  %v1206_v55 = vstv %s1205_s18  ;;  %v342_v51 = vadd.f32 %v332_v49, %v293_v38  ;;  %v4952_v38 = vld [vmem:[#allocation4 + $0x18] sm:$0xfe] }
 0x106   : > { %v475_v4 = vpop.permute.xlu1 %474  ;;  %v1207_v7 = vmul.f32 %v1206_v55, %v4543_v57  ;;  %v4925_v41 = vmul.f32 %v4761_v23, %v1206_v55  ;;  %v1187_v10 = vrot.slane %v1183_v36, 3  ;;  %v1281_v36 = vmul.f32 %v1275_v11, %v4943_v12 }
 0x107   : > { %v483_v0 = vadd.f32 %v475_v4, %v459_v1  ;;  %v484_v8 = vadd.f32 %v475_v4, %v460_v61  ;;  %v4890_v24 = vpop.permute.xlu0 %560  ;;  %v385_v59 = vadd.f32 %v375_v27, %v342_v51  ;;  %v4962_v27 = vstv %s1326_s15  ;;  %s5209_s15 = sld [smem:[#allocation9 + $0x25]] }
 0x108   : > { %1108 = vrot.lane.b32.xlu1 %v1101_v25, %s4272_s8  ;;  %v386_v25 = vadd.f32 %v4767_v31, %v343_v30  ;;  %v4937_v31 = vld [vmem:[#allocation4 + $0x30] sm:$0x1]  ;;  %v1211_v6 = vrot.slane %v1207_v7, 3  ;;  %v4971_v30 = vmul.f32 %v1275_v11, %v4952_v38 }
 0x109   : > { %v4877_v14 = vadd.f32 %v511_v2, %v483_v0  ;;  %v4881_v5 = vadd.f32 %v513_v3, %v484_v8  ;;  %1143 = vrot.lane.b32.xlu0 %v1137_v17, %s4274_s30  ;;  %v409_v1 = vadd.f32 %v4803_v58, %v385_v59  ;;  %v1212_v0 = vrot.slane %v4925_v41, 3  ;;  %v4941_v8 = vld [vmem:[#allocation4 + $0x10] sm:$0xfe] }
 0x10a   : > { %v4884_v19 = vpop.permute.xlu1 %554  ;;  %v410_v61 = vadd.f32 %v4803_v58, %v386_v25  ;;  %v4945_v17 = vstv %s748_s17  ;;  %v1280_v49 = vmul.f32 %v1275_v11, %v4937_v31  ;;  %s1536_s17 = smul.f32 0.25, %s5175_s20 }
 0x10b   : > { %v4914_v52 = vpop.permute.xlu0 %604  ;;  %v433_v39 = vadd.f32 %v4788_v50, %v409_v1  ;;  %v4979_v25 = vmul.f32 %v4945_v17, %v4655_v42  ;;  %v5017_v48 = vmul.f32 %v4945_v17, %v4543_v57  ;;  %v5021_v9 = vmul.f32 %v4945_v17, %v4669_v54 }
 0x10c   : > { %1112 = vrot.lane.b32.xlu1 %v1100_v47, %s4272_s8  ;;  %v1182_v47 = vmul.f32 %v1181_v22, %v4543_v57  ;;  %v1278_v22 = vmul.f32 %v4894_v34, %v1275_v11  ;;  %v1294_v1 = vrot.slane %v1280_v49, 4  ;;  %v755_v41 = vmul.f32 %v4945_v17, %v4659_v45 }
 0x10d   : > { %1166 = vrot.lane.b32.xlu0 %v1163_v35, %s4273_s3  ;;  %v457_v55 = vadd.f32 %v4829_v18, %v433_v39  ;;  %s1588_s16 = smul.f32 0.25, %s5209_s15 }
 0x10e   : > { %v4905_v63 = vpop.permute.xlu1 %558  ;;  %v1186_v28 = vrot.slane %v1182_v47, 3  ;;  %v1279_v47 = vmul.f32 %v1275_v11, %v4761_v23 }
 0x10f   : > { %v4929_v46 = vpop.permute.xlu0 %608  ;;  %v481_v49 = vadd.f32 %v4839_v43, %v457_v55 }
 0x110   : > { %1141 = vrot.lane.b32.xlu1 %v1138_v44, %s4274_s30  ;;  %v1188_v58 = vsel %vm1022_vm5, %v1186_v28, %v1187_v10  ;;  %v434_v44 = vadd.f32 %v4788_v50, %v410_v61  ;;  %v1213_v50 = vsel %vm1022_vm5, %v1211_v6, %v1212_v0  ;;  %v1292_v61 = vrot.slane %v1279_v47, 4 }
 0x111   : > { %1189 = vrot.lane.b32.xlu0 %v1186_v28, %s4275_s27  ;;  %v4098_v28 = vld [vmem:[%s4445_s7 + $0x28] sm:$0xff] }
 0x112   : > { %v4920_v56 = vpop.permute.xlu1 %562  ;;  %v458_v51 = vadd.f32 %v4829_v18, %v434_v44  ;;  %v4975_v59 = vsel %vm198_vm1, %v4098_v28, -inf  ;;  %v4986_v18 = vmul.f32 %v4894_v34, %v4962_v27  ;;  %v1296_v44 = vrot.slane %v1281_v36, 4 }
 0x114   : > { %1164 = vrot.lane.b32.xlu1 %v1161_v20, %s4273_s3  ;;  %v4947_v20 = vpop.permute.xlu0 %612  ;;  %v482_v47 = vadd.f32 %v4839_v43, %v458_v51  ;;  %v564_v51 = vsel %vm330_vm6, %v4855_v60, %v4884_v19 }
 0x115   : > { %1193 = vrot.lane.b32.xlu0 %v1187_v10, %s4275_s27  ;;  %v1290_v10 = vrot.slane %v1278_v22, 4  ;;  %v512_v22 = vsel %vm504_vm2, %v506_v16, %v511_v2  ;;  %v1342_v16 = vrot.slane %v4986_v18, 4  ;;  %v565_v2 = vsel %vm330_vm6, %v4872_v13, %v4905_v63 }
 0x116   : > { %v4935_v4 = vpop.permute.xlu1 %606  ;;  %v523_v36 = vadd.f32 %v512_v22, %v481_v49  ;;  %v754_v13 = vmul.f32 %v4945_v17, %v4647_v32  ;;  %v566_v22 = vsel %vm330_vm6, %v4890_v24, %v4920_v56  ;;  %v5074_v49 = vmul.f32 %v4962_v27, %v4952_v38 }
 0x117   : > { %v1295_v15 = vsel %vm1250_vm8, %v1290_v10, %v1294_v1  ;;  %v771_v1 = vrot.slane %v5017_v48, 2  ;;  %v577_v48 = vadd.f32 %v566_v22, %v4877_v14 }
 0x118   : > { %1168 = vrot.lane.b32.xlu1 %v1162_v21, %s4273_s3  ;;  %v1276_v21 = vmul.f32 %v1275_v11, %v4941_v8  ;;  %v4981_v7 = vpop.permute.xlu0 %645  ;;  %v4990_v11 = vmul.f32 %v4962_v27, %v4941_v8  ;;  %v575_v32 = vadd.f32 %v565_v2, %v523_v36 }
 0x119   : > { %1216 = vrot.lane.b32.xlu0 %v1213_v50, %s4276_s24  ;;  %v1289_v50 = vrot.slane %v4971_v30, 4 }
 0x11a   : > { %v4959_v35 = vpop.permute.xlu1 %610  ;;  %v1288_v42 = vrot.slane %v1276_v21, 4  ;;  %v514_v21 = vsel %vm504_vm2, %v509_v40, %v513_v3  ;;  %v1340_v37 = vrot.slane %v4990_v11, 4  ;;  %v773_v3 = vrot.slane %v4979_v25, 2 }
 0x11b   : > { %v1293_v40 = vsel %vm1250_vm8, %v1289_v50, %v1292_v61  ;;  %v524_v55 = vadd.f32 %v514_v21, %v482_v47  ;;  %v617_v30 = vsel %vm373_vm7, %v4929_v46, %v4959_v35  ;;  %v616_v46 = vsel %vm373_vm7, %v4914_v52, %v4935_v4  ;;  %v4099_v21 = vld [vmem:[%s4445_s7 + $0x8] sm:$0xff]  ;;  %s5123_s7 = sld [smem:[#allocation9 + $0x21]] }
 0x11c   : > { %1191 = vrot.lane.b32.xlu1 %v1188_v58, %s4275_s27  ;;  %v4997_v58 = vmul.f32 %v4894_v34, %v4945_v17  ;;  %v5012_v28 = vpop.permute.xlu0 %649  ;;  %v1291_v43 = vsel %vm1250_vm8, %v1288_v42, %v1290_v10  ;;  %v5057_v60 = vsel %vm1250_vm8, %v1340_v37, %v1342_v16  ;;  %v627_v52 = vadd.f32 %v617_v30, %v575_v32 }
 0x11d   : > { %1298 = vrot.lane.b32.xlu0 %v1288_v42, %s4271_s28  ;;  %v576_v42 = vadd.f32 %v4905_v63, %v524_v55  ;;  %v767_v17 = vrot.slane %v754_v13, 2 }
 0x11e   : > { %v4993_v39 = vpop.permute.xlu1 %614  ;;  %v768_v54 = vrot.slane %v4997_v58, 2 }
 0x11f   : > { %v628_v45 = vadd.f32 %v4959_v35, %v576_v42  ;;  %v241_v35 = vsel %vm198_vm1, %v4099_v21, -inf  ;;  %v1341_v42 = vrot.slane %v5074_v49, 4 }
 0x120   : > { %1214 = vrot.lane.b32.xlu1 %v1211_v6, %s4276_s24  ;;  %v5035_v6 = vsel %vm1250_vm8, %v1292_v61, %v1296_v44  ;;  %v677_v10 = vpop.permute.xlu0 %676  ;;  %v775_v61 = vrot.slane %v5021_v9, 2  ;;  %v574_v44 = vadd.f32 %v4884_v19, %v4864_v53  ;;  %v618_v19 = vsel %vm373_vm7, %v4947_v20, %v4993_v39 }
 0x121   : > { %1302 = vrot.lane.b32.xlu0 %v1291_v43, %s4271_s28  ;;  %v244_v55 = vmax.f32 %v241_v35, %v4975_v59  ;;  %v774_v14 = vsel %vm766_vm4, %v768_v54, %v773_v3  ;;  %v5108_v59 = vmul.f32 %v4962_v27, %v4761_v23  ;;  %s1436_s18 = smul.f32 0.25, %s5123_s7 }
 0x122   : > { %v648_v57 = vpop.permute.xlu1 %647  ;;  %v626_v53 = vadd.f32 %v4935_v4, %v574_v44  ;;  %v1379_v44 = vstv %s1378_s5  ;;  %s5258_s5 = sld [smem:[#allocation9 + $0x27]]  ;;  %s1640_s7 = smul.f32 0.25, %s5243_s23 }
 0x123   : > { %v656_v43 = vadd.f32 %v648_v57, %v627_v52  ;;  %v657_v4 = vadd.f32 %v648_v57, %v628_v45  ;;  %v1344_v58 = vrot.slane %v5108_v59, 4 }
 0x124   : > { %1218 = vrot.lane.b32.xlu1 %v1212_v0, %s4276_s24  ;;  %v573_v0 = vadd.f32 %v564_v51, %v4862_v62  ;;  %v1332_v62 = vmul.f32 %v4962_v27, %v4937_v31  ;;  %v704_v24 = vpop.permute.xlu0 %703  ;;  %v578_v31 = vadd.f32 %v4920_v56, %v4881_v5  ;;  %v655_v36 = vadd.f32 %v4981_v7, %v626_v53  ;;  %v233_v56 = vld [vmem:[#allocation3 + $0x8] sm:$0xff] }
 0x125   : > { %1306 = vrot.lane.b32.xlu0 %v1295_v15, %s4271_s28  ;;  %v629_v51 = vadd.f32 %v618_v19, %v577_v48  ;;  %v776_v5 = vsel %vm766_vm4, %v771_v1, %v775_v61  ;;  %v685_v30 = vadd.f32 %v677_v10, %v656_v43  ;;  %v686_v32 = vadd.f32 %v677_v10, %v657_v4 }
 0x126   : > { %v675_v63 = vpop.permute.xlu1 %674  ;;  %v625_v47 = vadd.f32 %v616_v46, %v573_v0  ;;  %v630_v13 = vadd.f32 %v4993_v39, %v578_v31  ;;  %v247_v39 = vmax.f32 %v244_v55, %v246_v33  ;;  %v1346_v46 = vrot.slane %v1332_v62, 4 }
 0x127   : > { %v684_v15 = vadd.f32 %v675_v63, %v655_v36  ;;  %v658_v29 = vadd.f32 %v5012_v28, %v629_v51  ;;  %v1381_v62 = vmul.f32 %v1379_v44, %v4761_v23  ;;  %v1345_v18 = vsel %vm1250_vm8, %v1341_v42, %v1344_v58 }
 0x128   : > { %1300 = vrot.lane.b32.xlu1 %v1289_v50, %s4271_s28  ;;  %v654_v2 = vadd.f32 %v4981_v7, %v625_v47  ;;  %v770_v50 = vrot.slane %v755_v41, 2  ;;  %v708_v57 = vpop.permute.xlu0 %707  ;;  %v249_v26 = vmax.f32 %v233_v56, %v247_v39  ;;  %v659_v33 = vadd.f32 %v5012_v28, %v630_v13  ;;  %s1669_s26 = smul.f32 0.25, %s5258_s5  ;;  %s5363_s5 = sld [smem:[#allocation9 + $0x2c]] }
 0x129   : > { %1350 = vrot.lane.b32.xlu0 %v1340_v37, %s4272_s8  ;;  %v713_v37 = vadd.f32 %v704_v24, %v684_v15  ;;  %v1387_v36 = vrot.slane %v1381_v62, 4 }
 0x12a   : > { %v679_v20 = vpop.permute.xlu1 %678  ;;  %v683_v7 = vadd.f32 %v675_v63, %v654_v2  ;;  %v772_v0 = vsel %vm766_vm4, %v770_v50, %v771_v1  ;;  %251 = vst.msk [vmem:[#allocation3 + $0x8] sm:$0xff] %vm198_vm1, %v249_v26 }
 0x12b   : > { %v687_v1 = vadd.f32 %v679_v20, %v658_v29  ;;  %v688_v28 = vadd.f32 %v679_v20, %v659_v33 }
 0x12c   : > { %1304 = vrot.lane.b32.xlu1 %v1293_v40, %s4271_s28  ;;  %v769_v40 = vsel %vm766_vm4, %v767_v17, %v768_v54  ;;  %v712_v11 = vadd.f32 %v704_v24, %v683_v7  ;;  %v735_v63 = vpop.permute.xlu0 %734  ;;  %v1333_v54 = vmul.f32 %v4962_v27, %v4943_v12  ;;  %v1380_v17 = vmul.f32 %v1379_v44, %v4952_v38 }
 0x12d   : > { %1354 = vrot.lane.b32.xlu0 %v5057_v60, %s4272_s8  ;;  %v1382_v27 = vmul.f32 %v1379_v44, %v4943_v12  ;;  %v716_v35 = vadd.f32 %v708_v57, %v687_v1  ;;  %v717_v48 = vadd.f32 %v708_v57, %v688_v28  ;;  %v1466_v44 = vstv %s1465_s19  ;;  %s5304_s19 = sld [smem:[#allocation9 + $0x15]] }
 0x12e   : > { %v706_v41 = vpop.permute.xlu1 %705  ;;  %v1348_v60 = vrot.slane %v1333_v54, 4  ;;  %v1386_v2 = vrot.slane %v1380_v17, 4  ;;  %v1469_v17 = vmul.f32 %v1466_v44, %v4943_v12 }
 0x12f   : > { %v714_v10 = vadd.f32 %v706_v41, %v685_v30  ;;  %v715_v22 = vadd.f32 %v706_v41, %v686_v32  ;;  %v1389_v20 = vrot.slane %v1382_v27, 4  ;;  %v1437_v32 = vstv %s1436_s18  ;;  %s5292_s18 = sld [smem:[#allocation9 + $0x29]] }
 0x130   : > { %1308 = vrot.lane.b32.xlu1 %v5035_v6, %s4271_s28  ;;  %v1347_v6 = vsel %vm1250_vm8, %v1342_v16, %v1346_v46  ;;  %v5144_v21 = vpop.permute.xlu0 %814  ;;  %v1408_v16 = vstv %s1407_s6  ;;  %v1349_v15 = vsel %vm1250_vm8, %v1344_v58, %v1348_v60  ;;  %v1388_v9 = vsel %vm1250_vm8, %v1386_v2, %v1387_v36  ;;  %v1497_v60 = vld [vmem:[#allocation4 + $0x30] sm:$0x3]  ;;  %s5275_s6 = sld [smem:[#allocation9 + $0x28]] }
 0x131   : > { %v743_v49 = vadd.f32 %v735_v63, %v714_v10  ;;  %v744_v52 = vadd.f32 %v735_v63, %v715_v22  ;;  %1358 = vrot.lane.b32.xlu0 %v1347_v6, %s4272_s8  ;;  %v1409_v51 = vmul.f32 %v1408_v16, %v4952_v38  ;;  %v1410_v13 = vmul.f32 %v1408_v16, %v4761_v23 }
 0x132   : > { %v733_v45 = vpop.permute.xlu1 %732  ;;  %v1390_v59 = vsel %vm1250_vm8, %v1387_v36, %v1389_v20  ;;  %v1439_v41 = vmul.f32 %v1437_v32, %v4761_v23 }
 0x133   : > { %v5140_v47 = vadd.f32 %v774_v14, %v743_v49  ;;  %v5142_v53 = vadd.f32 %v776_v5, %v744_v52  ;;  %v741_v19 = vadd.f32 %v733_v45, %v712_v11  ;;  %v742_v24 = vadd.f32 %v733_v45, %v713_v37  ;;  %v278_v14 = vld [vmem:[#allocation3 + $0x8] sm:$0xff]  ;;  %v5207_v52 = vld [vmem:[#allocation4 + $0x10] sm:$0xfc] }
 0x134   : > { %1352 = vrot.lane.b32.xlu1 %v1341_v42, %s4272_s8  ;;  %v5158_v5 = vpop.permute.xlu0 %818  ;;  %281 = vst.msk [vmem:[#allocation4 + $0x68] sm:$0xff] %vm198_vm1, %v278_v14  ;;  %v1415_v39 = vrot.slane %v1409_v51, 4  ;;  %v1416_v30 = vrot.slane %v1410_v13, 4  ;;  %v1438_v42 = vmul.f32 %v1437_v32, %v4952_v38  ;;  %v1445_v10 = vrot.slane %v1439_v41, 4  ;;  %v5240_v13 = vld [vmem:[#allocation4 + $0x38] sm:$0x3] }
 0x135   : > { %7323 = vst [vmem:[#allocation14_spill] sm:$0xff] %v5142_v53  ;;  %v5150_v31 = vadd.f32 %v769_v40, %v741_v19  ;;  %v5152_v43 = vadd.f32 %v772_v0, %v742_v24  ;;  %1391 = vrot.lane.b32.xlu0 %v1386_v2, %s4274_s30  ;;  %v1440_v40 = vmul.f32 %v1437_v32, %v4943_v12  ;;  %s1727_s15 = smul.f32 0.25, %s5292_s18  ;;  %s5419_s18 = sld [smem:[#allocation9 + $0x2d]] }
 0x136   : > { %v737_v4 = vpop.permute.xlu1 %736  ;;  %v1417_v46 = vsel %vm1250_vm8, %v1415_v39, %v1416_v30  ;;  %v1444_v33 = vrot.slane %v1438_v42, 4  ;;  %v1467_v11 = vmul.f32 %v1466_v44, %v4952_v38  ;;  %v1468_v37 = vmul.f32 %v1466_v44, %v4761_v23  ;;  %s1698_s20 = smul.f32 0.25, %s5275_s6 }
 0x137   : > { %7324 = vst [vmem:[#allocation15_spill] sm:$0xff] %v5152_v43  ;;  %v745_v50 = vadd.f32 %v737_v4, %v716_v35  ;;  %v746_v55 = vadd.f32 %v737_v4, %v717_v48  ;;  %v1447_v22 = vrot.slane %v1440_v40, 4  ;;  %v1537_v38 = vstv %s1536_s17  ;;  %v5225_v35 = vld [vmem:[#allocation4 + $0x18] sm:$0xfc]  ;;  %s5311_s17 = sld [smem:[#allocation9 + $0x2b]]  ;;  %s1850_s6 = smul.f32 0.25, %s5363_s5 }
 0x138   : > { %1356 = vrot.lane.b32.xlu1 %v1345_v18, %s4272_s8  ;;  %v5177_v25 = vpop.permute.xlu0 %822  ;;  %v1473_v28 = vrot.slane %v1467_v11, 4  ;;  %v1474_v49 = vrot.slane %v1468_v37, 4  ;;  %v1446_v6 = vsel %vm1250_vm8, %v1444_v33, %v1445_v10  ;;  %v1538_v27 = vmul.f32 %v1537_v38, %v5207_v52 }
 0x139   : > { %v5164_v56 = vadd.f32 %v773_v3, %v745_v50  ;;  %v5168_v7 = vadd.f32 %v775_v61, %v746_v55  ;;  %v1411_v3 = vmul.f32 %v1408_v16, %v4943_v12  ;;  %1395 = vrot.lane.b32.xlu0 %v1390_v59, %s4274_s30  ;;  %v1448_v1 = vsel %vm1250_vm8, %v1445_v10, %v1447_v22 }
 0x13a   : > { %v5172_v57 = vpop.permute.xlu1 %816  ;;  %v1475_v19 = vsel %vm1250_vm8, %v1473_v28, %v1474_v49  ;;  %v1540_v24 = vmul.f32 %v4894_v34, %v1537_v38  ;;  %v1476_v16 = vrot.slane %v1469_v17, 4  ;;  %v1550_v48 = vrot.slane %v1538_v27, 5 }
 0x13b   : > { %7325 = vst [vmem:[#allocation16_spill] sm:$0xff] %v5168_v7  ;;  %7326 = vst [vmem:[#allocation17_spill] sm:$0xff] %v5172_v57  ;;  %v1418_v26 = vrot.slane %v1411_v3, 4  ;;  %v1542_v2 = vmul.f32 %v1537_v38, %v1497_v60  ;;  %v1539_v20 = vmul.f32 %v1537_v38, %v5225_v35  ;;  %v1541_v55 = vmul.f32 %v1537_v38, %v4761_v23 }
 0x13c   : > { %1360 = vrot.lane.b32.xlu1 %v1349_v15, %s4272_s8  ;;  %v5190_v0 = vpop.permute.xlu0 %866  ;;  %v1552_v4 = vrot.slane %v1540_v24, 5  ;;  %v1477_v50 = vsel %vm1250_vm8, %v1474_v49, %v1476_v16  ;;  %v1589_v59 = vstv %s1588_s16  ;;  %v1641_v17 = vstv %s1640_s7  ;;  %s1010_s16 = smul.f32 0.25, %s5304_s19  ;;  %s5367_s7 = sld [smem:[#allocation9 + $0x1c]] }
 0x13d   : > { %1422 = vrot.lane.b32.xlu0 %v1417_v46, %s4273_s3  ;;  %v1419_v58 = vsel %vm1250_vm8, %v1416_v30, %v1418_v26  ;;  %v1556_v15 = vrot.slane %v1542_v2, 5  ;;  %v1551_v30 = vrot.slane %v1539_v20, 5  ;;  %v1554_v32 = vrot.slane %v1541_v55, 5  ;;  %s1798_s23 = smul.f32 0.25, %s5311_s17  ;;  %s5475_s17 = sld [smem:[#allocation9 + $0x2f]] }
 0x13e   : > { %v5184_v61 = vpop.permute.xlu1 %820  ;;  %v1553_v14 = vsel %vm1512_vm9, %v1550_v48, %v1552_v4  ;;  %v1590_v42 = vmul.f32 %v1589_v59, %v5207_v52  ;;  %v1592_v41 = vmul.f32 %v4894_v34, %v1589_v59  ;;  %v1594_v11 = vmul.f32 %v1589_v59, %v1497_v60  ;;  %s1902_s19 = smul.f32 0.25, %s5419_s18 }
 0x13f   : > { %7327 = vst [vmem:[#allocation18_spill] sm:$0xff] %v5184_v61  ;;  %v1557_v46 = vsel %vm1512_vm9, %v1552_v4, %v1556_v15  ;;  %v1555_v44 = vsel %vm1512_vm9, %v1551_v30, %v1554_v32  ;;  %v1595_v60 = vmul.f32 %v1589_v59, %v5240_v13  ;;  %v1643_v2 = vmul.f32 %v1641_v17, %v4761_v23 }
 0x140   : > { %1393 = vrot.lane.b32.xlu1 %v1388_v9, %s4274_s30  ;;  %v5199_v63 = vpop.permute.xlu0 %870  ;;  %v1543_v9 = vmul.f32 %v1537_v38, %v5240_v13  ;;  %v1602_v10 = vrot.slane %v1590_v42, 5  ;;  %v1604_v22 = vrot.slane %v1592_v41, 5  ;;  %v1644_v20 = vmul.f32 %v1641_v17, %v5240_v13 }
 0x141   : > { %1449 = vrot.lane.b32.xlu0 %v1444_v33, %s4275_s27  ;;  %v1670_v55 = vstv %s1669_s26  ;;  %v1610_v15 = vrot.slane %v1595_v60, 5 }
 0x142   : > { %v5194_v29 = vpop.permute.xlu1 %824  ;;  %v1558_v26 = vrot.slane %v1543_v9, 5  ;;  %v1605_v38 = vsel %vm1512_vm9, %v1602_v10, %v1604_v22  ;;  %v1651_v9 = vrot.slane %v1644_v20, 5  ;;  %v1671_v42 = vmul.f32 %v1670_v55, %v5225_v35  ;;  %s1230_s26 = smul.f32 0.25, %s5367_s7  ;;  %s3932_s7 = sld [smem:[#allocation9 + $0x32]] }
 0x144   : > { %1420 = vrot.lane.b32.xlu1 %v1415_v39, %s4273_s3  ;;  %v5211_v45 = vpop.permute.xlu0 %874 }
 0x145   : > { %1453 = vrot.lane.b32.xlu0 %v1448_v1, %s4275_s27  ;;  %v1559_v1 = vsel %vm1512_vm9, %v1554_v32, %v1558_v26  ;;  %v1649_v32 = vrot.slane %v1643_v2, 5 }
 0x146   : > { %v5204_v54 = vpop.permute.xlu1 %868 }
 0x147   : > { %7328 = vst [vmem:[#allocation19_spill] sm:$0xff] %v5204_v54 }
 0x148   : > { %1424 = vrot.lane.b32.xlu1 %v1419_v58, %s4273_s3  ;;  %v5222_v18 = vpop.permute.xlu0 %907  ;;  %v1591_v58 = vmul.f32 %v1589_v59, %v5225_v35 }
 0x149   : > { %7330 = vst [vmem:[#allocation21_spill] sm:$0xff] %v5222_v18  ;;  %1480 = vrot.lane.b32.xlu0 %v1475_v19, %s4276_s24 }
 0x14a   : > { %v5217_v62 = vpop.permute.xlu1 %872  ;;  %v1603_v19 = vrot.slane %v1591_v58, 5  ;;  %v1699_v58 = vstv %s1698_s20  ;;  %s5452_s20 = sld [smem:[#allocation9 + $0x2e]] }
 0x14b   : > { %7329 = vst [vmem:[#allocation20_spill] sm:$0xff] %v5217_v62  ;;  %v1702_v60 = vmul.f32 %v1699_v58, %v5240_v13 }
 0x14c   : > { %1451 = vrot.lane.b32.xlu1 %v1446_v6, %s4275_s27  ;;  %v5231_v36 = vpop.permute.xlu0 %911  ;;  %v1608_v6 = vrot.slane %v1594_v11, 5 }
 0x14d   : > { %1560 = vrot.lane.b32.xlu0 %v1550_v48, %s4271_s28  ;;  %v1642_v48 = vmul.f32 %v1641_v17, %v5225_v35 }
 0x14e   : > { %v5228_v12 = vpop.permute.xlu1 %876  ;;  %v1609_v4 = vsel %vm1512_vm9, %v1604_v22, %v1608_v6  ;;  %v1677_v22 = vrot.slane %v1671_v42, 5  ;;  %v827_v6 = vsel %vm330_vm6, %v5158_v5, %v5184_v61  ;;  %v1728_v5 = vstv %s1727_s15 }
 0x14f   : > { %v837_v20 = vadd.f32 %v827_v6, %v5140_v47  ;;  %v1729_v42 = vmul.f32 %v1728_v5, %v5225_v35  ;;  %v878_v47 = vsel %vm373_vm7, %v5190_v0, %v5204_v54 }
 0x150   : > { %1478 = vrot.lane.b32.xlu1 %v1473_v28, %s4276_s24  ;;  %v5245_v39 = vpop.permute.xlu0 %938  ;;  %v1593_v28 = vmul.f32 %v1589_v59, %v4761_v23  ;;  %s1931_s15 = smul.f32 0.25, %s5452_s20  ;;  %s3934_s20 = sld [smem:[#allocation9 + $0x34]] }
 0x151   : > { %7332 = vst [vmem:[#allocation23_spill] sm:$0xff] %v5245_v39  ;;  %1564 = vrot.lane.b32.xlu0 %v1553_v14, %s4271_s28  ;;  %v1735_v0 = vrot.slane %v1729_v42, 5 }
 0x152   : > { %v5238_v51 = vpop.permute.xlu1 %909  ;;  %v1606_v24 = vrot.slane %v1593_v28, 5 }
 0x153   : > { %7331 = vst [vmem:[#allocation22_spill] sm:$0xff] %v5238_v51 }
 0x154   : > { %1482 = vrot.lane.b32.xlu1 %v1477_v50, %s4276_s24  ;;  %v5255_v40 = vpop.permute.xlu0 %965  ;;  %v1607_v14 = vsel %vm1512_vm9, %v1603_v19, %v1606_v24 }
 0x155   : > { %7334 = vst [vmem:[#allocation25_spill] sm:$0xff] %v5255_v40  ;;  %1568 = vrot.lane.b32.xlu0 %v1557_v46, %s4271_s28  ;;  %v1672_v46 = vmul.f32 %v1670_v55, %v4761_v23 }
 0x156   : > { %v5250_v3 = vpop.permute.xlu1 %936 }
 0x157   : > { %7333 = vst [vmem:[#allocation24_spill] sm:$0xff] %v5250_v3  ;;  %v1678_v11 = vrot.slane %v1672_v46, 5  ;;  %v1730_v46 = vmul.f32 %v1728_v5, %v4761_v23 }
 0x158   : > { %1562 = vrot.lane.b32.xlu1 %v1551_v30, %s4271_s28  ;;  %v5265_v37 = vpop.permute.xlu0 %969  ;;  %v1648_v30 = vrot.slane %v1642_v48, 5 }
 0x159   : > { %1612 = vrot.lane.b32.xlu0 %v1602_v10, %s4272_s8  ;;  %v1652_v10 = vsel %vm1512_vm9, %v1649_v32, %v1651_v9  ;;  %v1679_v48 = vsel %vm1512_vm9, %v1677_v22, %v1678_v11  ;;  %v1736_v6 = vrot.slane %v1730_v46, 5 }
 0x15a   : > { %v5262_v33 = vpop.permute.xlu1 %940  ;;  %v1650_v28 = vsel %vm1512_vm9, %v1648_v30, %v1649_v32  ;;  %v1709_v32 = vrot.slane %v1702_v60, 5 }
 0x15c   : > { %1566 = vrot.lane.b32.xlu1 %v1555_v44, %s4271_s28  ;;  %v5277_v27 = vpop.permute.xlu0 %996  ;;  %v1611_v44 = vsel %vm1512_vm9, %v1606_v24, %v1610_v15  ;;  %v1701_v24 = vmul.f32 %v1699_v58, %v4761_v23 }
 0x15d   : > { %7336 = vst [vmem:[#allocation27_spill] sm:$0xff] %v5277_v27  ;;  %1616 = vrot.lane.b32.xlu0 %v1605_v38, %s4272_s8  ;;  %v1673_v38 = vmul.f32 %v1670_v55, %v5240_v13 }
 0x15e   : > { %v5272_v49 = vpop.permute.xlu1 %967 }
 0x15f   : > { %7335 = vst [vmem:[#allocation26_spill] sm:$0xff] %v5272_v49  ;;  %v1680_v55 = vrot.slane %v1673_v38, 5 }
 0x160   : > { %1570 = vrot.lane.b32.xlu1 %v1559_v1, %s4271_s28  ;;  %v5289_v50 = vpop.permute.xlu0 %1058 }
 0x161   : > { %1620 = vrot.lane.b32.xlu0 %v1609_v4, %s4272_s8  ;;  %v879_v4 = vsel %vm373_vm7, %v5199_v63, %v5217_v62  ;;  %v1707_v63 = vrot.slane %v1701_v24, 5 }
 0x162   : > { %v5283_v16 = vpop.permute.xlu1 %994  ;;  %v889_v9 = vadd.f32 %v879_v4, %v837_v20  ;;  %v1731_v4 = vmul.f32 %v1728_v5, %v5240_v13  ;;  %v1759_v13 = vld [vmem:[#allocation4 + $0x30] sm:$0x7] }
 0x163   : > { %7337 = vst [vmem:[#allocation28_spill] sm:$0xff] %v5283_v16 }
 0x164   : > { %1614 = vrot.lane.b32.xlu1 %v1603_v19, %s4272_s8  ;;  %v5301_v41 = vpop.permute.xlu0 %1062  ;;  %v1700_v19 = vmul.f32 %v1699_v58, %v5225_v35  ;;  %v918_v58 = vadd.f32 %v5238_v51, %v889_v9  ;;  %v1710_v35 = vsel %vm1512_vm9, %v1707_v63, %v1709_v32  ;;  %v1737_v9 = vsel %vm1512_vm9, %v1735_v0, %v1736_v6 }
 0x165   : > { %1653 = vrot.lane.b32.xlu0 %v1648_v30, %s4274_s30  ;;  %v1738_v5 = vrot.slane %v1731_v4, 5 }
 0x166   : > { %v5296_v59 = vpop.permute.xlu1 %998  ;;  %v1706_v30 = vrot.slane %v1700_v19, 5  ;;  %v5361_v19 = vld [vmem:[#allocation4 + $0x10] sm:$0xf8]  ;;  %v947_v60 = vadd.f32 %v5245_v39, %v918_v58 }
 0x167   : > { %v1739_v4 = vsel %vm1512_vm9, %v1736_v6, %v1738_v5  ;;  %v5421_v6 = vstv %s1230_s26  ;;  %s3933_s26 = sld [smem:[#allocation9 + $0x33]] }
 0x168   : > { %1618 = vrot.lane.b32.xlu1 %v1607_v14, %s4272_s8  ;;  %v5313_v1 = vpop.permute.xlu0 %1066  ;;  %v826_v14 = vsel %vm330_vm6, %v5144_v21, %v5172_v57  ;;  %v5352_v21 = vstv %s1010_s16  ;;  %v976_v32 = vadd.f32 %v5272_v49, %v947_v60  ;;  %s5500_s16 = sld [smem:[#allocation9 + $0x30]] }
 0x169   : > { %1657 = vrot.lane.b32.xlu0 %v1652_v10, %s4274_s30  ;;  %7340 = vst [vmem:[#allocation31_spill] sm:$0xff] %v5352_v21  ;;  %v835_v10 = vadd.f32 %v826_v14, %v5150_v31  ;;  %v1016_v31 = vmul.f32 %v4894_v34, %v5352_v21  ;;  %v5698_v21 = vld [vmem:[#allocation4 + $0x48] sm:$0xc0] }
 0x16a   : > { %v5308_v26 = vpop.permute.xlu1 %1060 }
 0x16b   : > { %7338 = vst [vmem:[#allocation29_spill] sm:$0xff] %v5308_v26  ;;  %v887_v38 = vadd.f32 %v878_v47, %v835_v10  ;;  %v5384_v46 = vrot.slane %v1016_v31, 3  ;;  %v1070_v5 = vsel %vm330_vm6, %v5289_v50, %v5308_v26 }
 0x16c   : > { %1622 = vrot.lane.b32.xlu1 %v1611_v44, %s4272_s8  ;;  %v5332_v2 = vpop.permute.xlu0 %1102 }
 0x16d   : > { %1684 = vrot.lane.b32.xlu0 %v1679_v48, %s4273_s3  ;;  %v916_v24 = vadd.f32 %v5222_v18, %v887_v38  ;;  %v1708_v48 = vsel %vm1512_vm9, %v1706_v30, %v1707_v63  ;;  %v5389_v63 = vld [vmem:[#allocation4 + $0x18] sm:$0xf8]  ;;  %v1026_v31 = vsel %vm1022_vm5, %v5384_v46, %v5384_v46 }
 0x16e   : > { %v5323_v17 = vpop.permute.xlu1 %1064  ;;  %s1989_s5 = smul.f32 0.25, %s5500_s16  ;;  %s3937_s16 = sld [smem:[#allocation9 + $0x37]] }
 0x16f   : > { %7339 = vst [vmem:[#allocation30_spill] sm:$0xff] %v5323_v17  ;;  %v945_v14 = vadd.f32 %v5250_v3, %v916_v24 }
 0x170   : > { %1655 = vrot.lane.b32.xlu1 %v1650_v28, %s4274_s30  ;;  %v5349_v44 = vpop.permute.xlu0 %1106  ;;  %v1681_v28 = vsel %vm1512_vm9, %v1678_v11, %v1680_v55 }
 0x171   : > { %1711 = vrot.lane.b32.xlu0 %v1706_v30, %s4275_s27  ;;  %v974_v58 = vadd.f32 %v5255_v40, %v945_v14 }
 0x172   : > { %v5341_v15 = vpop.permute.xlu1 %1068 }
 0x174   : > { %1682 = vrot.lane.b32.xlu1 %v1677_v22, %s4273_s3  ;;  %v1799_v22 = vstv %s1798_s23  ;;  %v5369_v11 = vpop.permute.xlu0 %1110  ;;  %s1960_s23 = smul.f32 0.25, %s5475_s17  ;;  %s3936_s17 = sld [smem:[#allocation9 + $0x36]]  ;;  %v2189_v54 = vstv %s3937_s16 }
 0x175   : > { %1715 = vrot.lane.b32.xlu0 %v1710_v35, %s4275_s27  ;;  %v1800_v55 = vmul.f32 %v1799_v22, %v5361_v19  ;;  %v1802_v42 = vmul.f32 %v4894_v34, %v1799_v22  ;;  %v1804_v38 = vmul.f32 %v1799_v22, %v1759_v13  ;;  %v1801_v60 = vmul.f32 %v1799_v22, %v5389_v63  ;;  %s3949_s16 = sld [smem:[#allocation9 + $0x43]] }
 0x176   : > { %v5358_v23 = vpop.permute.xlu1 %1104 }
 0x177   : > { %7341 = vst [vmem:[#allocation32_spill] sm:$0xff] %v5358_v23  ;;  %v1812_v10 = vrot.slane %v1800_v55, 6  ;;  %v1814_v35 = vrot.slane %v1802_v42, 6  ;;  %v5407_v55 = vld [vmem:[#allocation4 + $0x28] sm:$0xff]  ;;  %v1114_v3 = vsel %vm373_vm7, %v5332_v2, %v5358_v23 }
 0x178   : > { %1686 = vrot.lane.b32.xlu1 %v1681_v28, %s4273_s3  ;;  %v5386_v30 = vpop.permute.xlu0 %1139  ;;  %v1005_v28 = vadd.f32 %v5277_v27, %v976_v32  ;;  %v1803_v14 = vmul.f32 %v5407_v55, %v1799_v22  ;;  %v1071_v32 = vsel %vm330_vm6, %v5301_v41, %v5323_v17 }
 0x179   : > { %7343 = vst [vmem:[#allocation34_spill] sm:$0xff] %v5386_v30  ;;  %1742 = vrot.lane.b32.xlu0 %v1737_v9, %s4276_s24  ;;  %v1815_v40 = vsel %vm1774_vm10, %v1812_v10, %v1814_v35 }
 0x17a   : > { %v5377_v20 = vpop.permute.xlu1 %1108  ;;  %v1037_v42 = vadd.f32 %v1026_v31, %v1005_v28  ;;  %v1813_v28 = vrot.slane %v1801_v60, 6  ;;  %v1816_v31 = vrot.slane %v1803_v14, 6 }
 0x17b   : > { %7342 = vst [vmem:[#allocation33_spill] sm:$0xff] %v5377_v20  ;;  %v1115_v41 = vsel %vm373_vm7, %v5349_v44, %v5377_v20 }
 0x17c   : > { %1713 = vrot.lane.b32.xlu1 %v1708_v48, %s4275_s27  ;;  %v5401_v24 = vpop.permute.xlu0 %1143  ;;  %v1003_v48 = vadd.f32 %v5283_v16, %v974_v58  ;;  %v1818_v58 = vrot.slane %v1804_v38, 6  ;;  %v1851_v16 = vstv %s1850_s6  ;;  %v1081_v38 = vadd.f32 %v1071_v32, %v1037_v42  ;;  %s5547_s6 = sld [smem:[#allocation9 + $0x23]] }
 0x17d   : > { %1822 = vrot.lane.b32.xlu0 %v1812_v10, %s4271_s28  ;;  %v1852_v44 = vmul.f32 %v1851_v16, %v5361_v19 }
 0x17e   : > { %v5392_v47 = vpop.permute.xlu1 %1112  ;;  %v1035_v10 = vadd.f32 %v5384_v46, %v1003_v48  ;;  %v1125_v20 = vadd.f32 %v1115_v41, %v1081_v38  ;;  %v1819_v60 = vsel %vm1774_vm10, %v1814_v35, %v1818_v58  ;;  %v1854_v48 = vmul.f32 %v4894_v34, %v1851_v16 }
 0x17f   : > { %v1817_v35 = vsel %vm1774_vm10, %v1813_v28, %v1816_v31  ;;  %v1856_v58 = vmul.f32 %v1851_v16, %v1759_v13 }
 0x180   : > { %1740 = vrot.lane.b32.xlu1 %v1735_v0, %s4276_s24  ;;  %v5416_v0 = vld [vmem:[#allocation4 + $0x38] sm:$0x7]  ;;  %v5429_v17 = vpop.permute.xlu0 %1166  ;;  %v1079_v26 = vadd.f32 %v1070_v5, %v1035_v10  ;;  %v1866_v41 = vrot.slane %v1854_v48, 6 }
 0x181   : > { %7345 = vst [vmem:[#allocation36_spill] sm:$0xff] %v5429_v17  ;;  %v1805_v27 = vmul.f32 %v1799_v22, %v5416_v0  ;;  %1826 = vrot.lane.b32.xlu0 %v1815_v40, %s4271_s28  ;;  %v1238_v22 = vmul.f32 %v5421_v6, %v4941_v8  ;;  %v5450_v40 = vmul.f32 %v4894_v34, %v5421_v6  ;;  %v1864_v8 = vrot.slane %v1852_v44, 6 }
 0x182   : > { %v5414_v9 = vpop.permute.xlu1 %1141  ;;  %v1123_v2 = vadd.f32 %v1114_v3, %v1079_v26  ;;  %v1853_v26 = vmul.f32 %v1851_v16, %v5389_v63  ;;  %v1870_v44 = vrot.slane %v1856_v58, 6  ;;  %s1494_s18 = smul.f32 0.25, %s5547_s6  ;;  %s5742_s6 = sld [smem:[#allocation9 + $0x3b]] }
 0x183   : > { %7344 = vst [vmem:[#allocation35_spill] sm:$0xff] %v5414_v9  ;;  %v1150_v14 = vadd.f32 %v5414_v9, %v1125_v20  ;;  %v1820_v32 = vrot.slane %v1805_v27, 6  ;;  %v1251_v34 = vrot.slane %v1238_v22, 4  ;;  %v7223_v3 = vrot.slane %v5450_v40, 4 }
 0x184   : > { %1744 = vrot.lane.b32.xlu1 %v1739_v4, %s4276_s24  ;;  %v5445_v4 = vpop.permute.xlu0 %1189  ;;  %v1148_v5 = vadd.f32 %v5386_v30, %v1123_v2  ;;  %v1867_v48 = vsel %vm1774_vm10, %v1864_v8, %v1866_v41  ;;  %v1903_v22 = vstv %s1902_s19  ;;  %s3935_s19 = sld [smem:[#allocation9 + $0x35]] }
 0x185   : > { %7347 = vst [vmem:[#allocation38_spill] sm:$0xff] %v5445_v4  ;;  %1830 = vrot.lane.b32.xlu0 %v1819_v60, %s4271_s28  ;;  %v1175_v27 = vadd.f32 %v5429_v17, %v1150_v14  ;;  %v1821_v13 = vsel %vm1774_vm10, %v1816_v31, %v1820_v32  ;;  %v1254_v2 = vsel %vm1250_vm8, %v1251_v34, %v7223_v3  ;;  %v1865_v31 = vrot.slane %v1853_v26, 6 }
 0x186   : > { %v5438_v50 = vpop.permute.xlu1 %1164  ;;  %v1904_v3 = vmul.f32 %v1903_v22, %v5389_v63 }
 0x187   : > { %7346 = vst [vmem:[#allocation37_spill] sm:$0xff] %v5438_v50  ;;  %v1173_v20 = vadd.f32 %v5438_v50, %v1148_v5 }
 0x188   : > { %1824 = vrot.lane.b32.xlu1 %v1813_v28, %s4271_s28  ;;  %v5461_v10 = vpop.permute.xlu0 %1193  ;;  %v1855_v28 = vmul.f32 %v5407_v55, %v1851_v16 }
 0x189   : > { %1874 = vrot.lane.b32.xlu0 %v1864_v8, %s4272_s8  ;;  %v1857_v8 = vmul.f32 %v1851_v16, %v5416_v0  ;;  %v1932_v16 = vstv %s1931_s15  ;;  %s3939_s15 = sld [smem:[#allocation9 + $0x39]] }
 0x18a   : > { %v5457_v42 = vpop.permute.xlu1 %1168  ;;  %v1868_v58 = vrot.slane %v1855_v28, 6 }
 0x18c   : > { %1828 = vrot.lane.b32.xlu1 %v1817_v35, %s4271_s28  ;;  %v5480_v14 = vpop.permute.xlu0 %1216  ;;  %v1198_v35 = vadd.f32 %v5445_v4, %v1173_v20  ;;  %v1906_v20 = vmul.f32 %v1903_v22, %v5416_v0 }
 0x18d   : > { %7349 = vst [vmem:[#allocation40_spill] sm:$0xff] %v5480_v14  ;;  %1878 = vrot.lane.b32.xlu0 %v1867_v48, %s4272_s8 }
 0x18e   : > { %v5471_v38 = vpop.permute.xlu1 %1191 }
 0x18f   : > { %7348 = vst [vmem:[#allocation39_spill] sm:$0xff] %v5471_v38  ;;  %v1200_v60 = vadd.f32 %v5471_v38, %v1175_v27  ;;  %v1871_v27 = vsel %vm1774_vm10, %v1866_v41, %v1870_v44  ;;  %v1869_v41 = vsel %vm1774_vm10, %v1865_v31, %v1868_v58  ;;  %v1872_v44 = vrot.slane %v1857_v8, 6 }
 0x190   : > { %1832 = vrot.lane.b32.xlu1 %v1821_v13, %s4271_s28  ;;  %v1905_v13 = vmul.f32 %v5407_v55, %v1903_v22  ;;  %v5497_v28 = vpop.permute.xlu0 %1298  ;;  %v1913_v22 = vrot.slane %v1906_v20, 6 }
 0x191   : > { %v1225_v32 = vadd.f32 %v5480_v14, %v1200_v60  ;;  %1882 = vrot.lane.b32.xlu0 %v1871_v27, %s4272_s8 }
 0x192   : > { %v5488_v5 = vpop.permute.xlu1 %1214 }
 0x193   : > { %7350 = vst [vmem:[#allocation41_spill] sm:$0xff] %v5488_v5  ;;  %v5492_v50 = vadd.f32 %v1254_v2, %v1225_v32  ;;  %v1223_v26 = vadd.f32 %v5488_v5, %v1198_v35  ;;  %v1910_v2 = vrot.slane %v1904_v3, 6  ;;  %v1911_v35 = vrot.slane %v1905_v13, 6 }
 0x194   : > { %1876 = vrot.lane.b32.xlu1 %v1865_v31, %s4272_s8  ;;  %v1933_v32 = vmul.f32 %v1932_v16, %v5389_v63  ;;  %v1934_v5 = vmul.f32 %v5407_v55, %v1932_v16  ;;  %v5511_v4 = vpop.permute.xlu0 %1302 }
 0x195   : > { %v5502_v60 = vadd.f32 %v1251_v34, %v1223_v26  ;;  %v1873_v34 = vsel %vm1774_vm10, %v1868_v58, %v1872_v44  ;;  %1915 = vrot.lane.b32.xlu0 %v1910_v2, %s4274_s30  ;;  %v1914_v3 = vsel %vm1774_vm10, %v1911_v35, %v1913_v22  ;;  %v1961_v26 = vstv %s1960_s23  ;;  %s3940_s23 = sld [smem:[#allocation9 + $0x3a]] }
 0x196   : > { %v5506_v48 = vpop.permute.xlu1 %1218  ;;  %v1939_v8 = vrot.slane %v1933_v32, 6  ;;  %v1940_v27 = vrot.slane %v1934_v5, 6  ;;  %v1912_v20 = vsel %vm1774_vm10, %v1910_v2, %v1911_v35  ;;  %v1962_v44 = vmul.f32 %v1961_v26, %v5389_v63 }
 0x197   : > { %v1963_v5 = vmul.f32 %v5407_v55, %v1961_v26  ;;  %v1964_v32 = vmul.f32 %v1961_v26, %v5416_v0 }
 0x198   : > { %1880 = vrot.lane.b32.xlu1 %v1869_v41, %s4272_s8  ;;  %v5519_v13 = vpop.permute.xlu0 %1306  ;;  %v1935_v41 = vmul.f32 %v1932_v16, %v5416_v0  ;;  %v1941_v22 = vsel %vm1774_vm10, %v1939_v8, %v1940_v27  ;;  %v1968_v2 = vrot.slane %v1962_v44, 6 }
 0x199   : > { %1919 = vrot.lane.b32.xlu0 %v1914_v3, %s4274_s30  ;;  %v1969_v35 = vrot.slane %v1963_v5, 6  ;;  %v1971_v3 = vrot.slane %v1964_v32, 6 }
 0x19a   : > { %v5516_v31 = vpop.permute.xlu1 %1300  ;;  %v1942_v30 = vrot.slane %v1935_v41, 6 }
 0x19b   : > { %7351 = vst [vmem:[#allocation42_spill] sm:$0xff] %v5516_v31  ;;  %v1972_v41 = vsel %vm1774_vm10, %v1969_v35, %v1971_v3 }
 0x19c   : > { %1884 = vrot.lane.b32.xlu1 %v1873_v34, %s4272_s8  ;;  %v1351_v14 = vpop.permute.xlu0 %1350  ;;  %v1990_v34 = vstv %s1989_s5  ;;  %v1943_v26 = vsel %vm1774_vm10, %v1940_v27, %v1942_v30  ;;  %v2018_v27 = vld [vmem:[#allocation4 + $0x40] sm:$0xe0]  ;;  %s5692_s5 = sld [smem:[#allocation9 + $0x2a]] }
 0x19d   : > { %1946 = vrot.lane.b32.xlu0 %v1941_v22, %s4273_s3  ;;  %v1991_v38 = vmul.f32 %v1990_v34, %v5389_v63  ;;  %v1992_v17 = vmul.f32 %v5407_v55, %v1990_v34  ;;  %v1970_v63 = vsel %vm1774_vm10, %v1968_v2, %v1969_v35  ;;  %v1993_v55 = vmul.f32 %v1990_v34, %v5416_v0  ;;  %v5566_v35 = vld [vmem:[#allocation4 + $0x48] sm:$0xe0] }
 0x19e   : > { %v5526_v58 = vpop.permute.xlu1 %1304 }
 0x19f   : > { %7352 = vst [vmem:[#allocation43_spill] sm:$0xff] %v5526_v58  ;;  %v1997_v22 = vrot.slane %v1991_v38, 6  ;;  %v1998_v44 = vrot.slane %v1992_v17, 6  ;;  %v2038_v38 = vstv %s3932_s7  ;;  %v2000_v32 = vrot.slane %v1993_v55, 6 }
 0x1a0   : > { %1917 = vrot.lane.b32.xlu1 %v1912_v20, %s4274_s30  ;;  %v1355_v23 = vpop.permute.xlu0 %1354 }
 0x1a1   : > { %1973 = vrot.lane.b32.xlu0 %v1968_v2, %s4275_s27  ;;  %v2039_v2 = vmul.f32 %v2038_v38, %v2018_v27  ;;  %v2001_v34 = vsel %vm1774_vm10, %v1998_v44, %v2000_v32 }
 0x1a2   : > { %v5534_v16 = vpop.permute.xlu1 %1308  ;;  %s1756_s7 = smul.f32 0.25, %s5692_s5  ;;  %s6002_s5 = sld [smem:[#allocation9 + $0x45]] }
 0x1a3   : > { %7353 = vst [vmem:[#allocation44_spill] sm:$0xff] %v5534_v16 }
 0x1a4   : > { %1944 = vrot.lane.b32.xlu1 %v1939_v8, %s4273_s3  ;;  %v5544_v5 = vpop.permute.xlu0 %1358  ;;  %v1999_v8 = vsel %vm1774_vm10, %v1997_v22, %v1998_v44 }
 0x1a5   : > { %1977 = vrot.lane.b32.xlu0 %v1972_v41, %s4275_s27 }
 0x1a6   : > { %v5541_v20 = vpop.permute.xlu1 %1352 }
 0x1a7   : > { %7354 = vst [vmem:[#allocation45_spill] sm:$0xff] %v5541_v20  ;;  %v1362_v49 = vsel %vm373_vm7, %v1351_v14, %v5541_v20  ;;  %v5611_v20 = vld [vmem:[#allocation4 + $0x68] sm:$0x1f] }
 0x1a8   : > { %1948 = vrot.lane.b32.xlu1 %v1943_v26, %s4273_s3  ;;  %v5555_v17 = vpop.permute.xlu0 %1391  ;;  %v1311_v26 = vsel %vm330_vm6, %v5511_v4, %v5526_v58  ;;  %v2040_v4 = vmul.f32 %v2038_v38, %v5566_v35  ;;  %v5590_v58 = vstv %s1494_s18  ;;  %s5798_s18 = sld [smem:[#allocation9 + $0x3d]] }
 0x1a9   : > { %7356 = vst [vmem:[#allocation47_spill] sm:$0xff] %v5555_v17  ;;  %2004 = vrot.lane.b32.xlu0 %v1999_v8, %s4276_s24  ;;  %v5577_v8 = vld [vmem:[#allocation4 + $0x60] sm:$0x1f]  ;;  %7362 = vst [vmem:[#allocation53_spill] sm:$0xff] %v5590_v58  ;;  %v1321_v9 = vadd.f32 %v1311_v26, %v5492_v50  ;;  %v1500_v18 = vmul.f32 %v5590_v58, %v5207_v52 }
 0x1aa   : > { %v5552_v30 = vpop.permute.xlu1 %1356  ;;  %7360 = vst [vmem:[#allocation51_spill] sm:$0xff] %v5577_v8 }
 0x1ab   : > { %7355 = vst [vmem:[#allocation46_spill] sm:$0xff] %v5552_v30  ;;  %v1363_v44 = vsel %vm373_vm7, %v1355_v23, %v5552_v30  ;;  %v2043_v23 = vmul.f32 %v2038_v38, %v5577_v8  ;;  %v2079_v30 = vstv %s3933_s26  ;;  %s3942_s26 = sld [smem:[#allocation9 + $0x3c]] }
 0x1ac   : > { %1975 = vrot.lane.b32.xlu1 %v1970_v63, %s4275_s27  ;;  %v5561_v0 = vpop.permute.xlu0 %1395  ;;  %v5574_v63 = vld [vmem:[#allocation4] sm:$0xff]  ;;  %v2080_v52 = vmul.f32 %v2079_v30, %v2018_v27 }
 0x1ad   : > { %7358 = vst [vmem:[#allocation49_spill] sm:$0xff] %v5561_v0  ;;  %2051 = vrot.lane.b32.xlu0 %v2039_v2, %s4271_s28  ;;  %v2041_v55 = vmul.f32 %v5574_v63, %v2038_v38  ;;  %v5588_v2 = vld [vmem:[#allocation4 + $0x58] sm:$0xff]  ;;  %v5608_v14 = vmul.f32 %v5574_v63, %v5590_v58  ;;  %v2082_v27 = vmul.f32 %v5574_v63, %v2079_v30 }
 0x1ae   : > { %v5559_v3 = vpop.permute.xlu1 %1360  ;;  %v2042_v50 = vmul.f32 %v2038_v38, %v5588_v2  ;;  %v2191_v51 = vmul.f32 %v2189_v54, %v5588_v2 }
 0x1af   : > { %7357 = vst [vmem:[#allocation48_spill] sm:$0xff] %v5559_v3  ;;  %7365 = vst [vmem:[#allocation56_spill] sm:$0xff] %v5608_v14 }
 0x1b0   : > { %2002 = vrot.lane.b32.xlu1 %v1997_v22, %s4276_s24  ;;  %v1310_v22 = vsel %vm330_vm6, %v5497_v28, %v5516_v31  ;;  %v5584_v32 = vpop.permute.xlu0 %1422 }
 0x1b1   : > { %7361 = vst [vmem:[#allocation52_spill] sm:$0xff] %v5584_v32  ;;  %2055 = vrot.lane.b32.xlu0 %v2041_v55, %s4271_s28  ;;  %v1319_v31 = vadd.f32 %v1310_v22, %v5502_v60 }
 0x1b2   : > { %v5572_v41 = vpop.permute.xlu1 %1393 }
 0x1b3   : > { %7359 = vst [vmem:[#allocation50_spill] sm:$0xff] %v5572_v41  ;;  %v1371_v26 = vadd.f32 %v1362_v49, %v1319_v31  ;;  %v2044_v49 = vmul.f32 %v2038_v38, %v5611_v20  ;;  %v2081_v38 = vmul.f32 %v2079_v30, %v5566_v35 }
 0x1b4   : > { %2006 = vrot.lane.b32.xlu1 %v2001_v34, %s4276_s24  ;;  %v1373_v34 = vadd.f32 %v1363_v44, %v1321_v9  ;;  %v5602_v39 = vpop.permute.xlu0 %1449  ;;  %v1513_v44 = vrot.slane %v1500_v18, 5 }
 0x1b5   : > { %7364 = vst [vmem:[#allocation55_spill] sm:$0xff] %v5602_v39  ;;  %2059 = vrot.lane.b32.xlu0 %v2043_v23, %s4271_s28  ;;  %v1400_v60 = vadd.f32 %v5555_v17, %v1371_v26 }
 0x1b6   : > { %v5596_v28 = vpop.permute.xlu1 %1420  ;;  %v1402_v55 = vadd.f32 %v5572_v41, %v1373_v34  ;;  %v2252_v41 = vstv %s3939_s15  ;;  %s3948_s15 = sld [smem:[#allocation9 + $0x42]] }
 0x1b7   : > { %7363 = vst [vmem:[#allocation54_spill] sm:$0xff] %v5596_v28  ;;  %v1429_v34 = vadd.f32 %v5596_v28, %v1400_v60 }
 0x1b8   : > { %2053 = vrot.lane.b32.xlu1 %v2040_v4, %s4271_s28  ;;  %v5617_v22 = vpop.permute.xlu0 %1453  ;;  %v7241_v4 = vrot.slane %v5608_v14, 5  ;;  %v1431_v31 = vadd.f32 %v5584_v32, %v1402_v55  ;;  %v2212_v32 = vld [vmem:[#allocation4 + $0x40] sm:$0xc0] }
 0x1b9   : > { %7367 = vst [vmem:[#allocation58_spill] sm:$0xff] %v5617_v22  ;;  %2092 = vrot.lane.b32.xlu0 %v2080_v52, %s4272_s8  ;;  %v1458_v55 = vadd.f32 %v5602_v39, %v1429_v34  ;;  %v2253_v57 = vmul.f32 %v2252_v41, %v2212_v32 }
 0x1ba   : > { %v5614_v9 = vpop.permute.xlu1 %1424  ;;  %v1516_v18 = vsel %vm1512_vm9, %v1513_v44, %v7241_v4 }
 0x1bb   : > { %7366 = vst [vmem:[#allocation57_spill] sm:$0xff] %v5614_v9  ;;  %v2265_v62 = vrot.slane %v2253_v57, 1  ;;  %v828_v57 = vsel %vm330_vm6, %v5177_v25, %v5194_v29 }
 0x1bc   : > { %2057 = vrot.lane.b32.xlu1 %v2042_v50, %s4271_s28  ;;  %v5632_v50 = vpop.permute.xlu0 %1480  ;;  %v839_v25 = vadd.f32 %v828_v57, %v5164_v56 }
 0x1bd   : > { %7369 = vst [vmem:[#allocation60_spill] sm:$0xff] %v5632_v50  ;;  %2096 = vrot.lane.b32.xlu0 %v2082_v27, %s4272_s8 }
 0x1be   : > { %v5625_v23 = vpop.permute.xlu1 %1451 }
 0x1bf   : > { %7368 = vst [vmem:[#allocation59_spill] sm:$0xff] %v5625_v23  ;;  %v1460_v26 = vadd.f32 %v5625_v23, %v1431_v31  ;;  %v2084_v31 = vmul.f32 %v2079_v30, %v5577_v8  ;;  %v2120_v23 = vstv %s3934_s20  ;;  %s3944_s20 = sld [smem:[#allocation9 + $0x3e]] }
 0x1c0   : > { %2061 = vrot.lane.b32.xlu1 %v2044_v49, %s4271_s28  ;;  %v5645_v17 = vpop.permute.xlu0 %1560  ;;  %v2083_v49 = vmul.f32 %v2079_v30, %v5588_v2 }
 0x1c1   : > { %v1489_v52 = vadd.f32 %v5632_v50, %v1460_v26  ;;  %2100 = vrot.lane.b32.xlu0 %v2084_v31, %s4272_s8  ;;  %v2121_v26 = vmul.f32 %v2120_v23, %v5566_v35  ;;  %v2122_v31 = vmul.f32 %v2120_v23, %v5588_v2 }
 0x1c2   : > { %v5639_v60 = vpop.permute.xlu1 %1478 }
 0x1c3   : > { %7370 = vst [vmem:[#allocation61_spill] sm:$0xff] %v5639_v60  ;;  %v5642_v28 = vadd.f32 %v1516_v18, %v1489_v52  ;;  %v1487_v4 = vadd.f32 %v5639_v60, %v1458_v55  ;;  %v2085_v55 = vmul.f32 %v2079_v30, %v5611_v20 }
 0x1c4   : > { %2094 = vrot.lane.b32.xlu1 %v2081_v38, %s4272_s8  ;;  %v5655_v18 = vpop.permute.xlu0 %1564 }
 0x1c5   : > { %v5649_v34 = vadd.f32 %v1513_v44, %v1487_v4  ;;  %2127 = vrot.lane.b32.xlu0 %v2121_v26, %s4274_s30  ;;  %v2123_v44 = vmul.f32 %v2120_v23, %v5611_v20  ;;  %v2143_v4 = vstv %s3935_s19  ;;  %s3946_s19 = sld [smem:[#allocation9 + $0x40]] }
 0x1c6   : > { %v5652_v27 = vpop.permute.xlu1 %1482  ;;  %v2145_v30 = vmul.f32 %v2143_v4, %v5588_v2  ;;  %v2144_v39 = vmul.f32 %v2143_v4, %v5566_v35 }
 0x1c7   : > { %7371 = vst [vmem:[#allocation62_spill] sm:$0xff] %v5652_v27 }
 0x1c8   : > { %2098 = vrot.lane.b32.xlu1 %v2083_v49, %s4272_s8  ;;  %v5663_v52 = vpop.permute.xlu0 %1568  ;;  %v2166_v49 = vstv %s3936_s17  ;;  %s3947_s17 = sld [smem:[#allocation9 + $0x41]] }
 0x1c9   : > { %7373 = vst [vmem:[#allocation64_spill] sm:$0xff] %v5663_v52  ;;  %2131 = vrot.lane.b32.xlu0 %v2123_v44, %s4274_s30  ;;  %v2167_v23 = vmul.f32 %v2166_v49, %v5566_v35  ;;  %v2146_v44 = vmul.f32 %v2143_v4, %v5611_v20  ;;  %v5690_v4 = vld [vmem:[#allocation4 + $0x60] sm:$0x3f]  ;;  %v5710_v52 = vld [vmem:[#allocation4 + $0x68] sm:$0x3f] }
 0x1ca   : > { %v5660_v38 = vpop.permute.xlu1 %1562  ;;  %7378 = vst [vmem:[#allocation69_spill] sm:$0xff] %v5690_v4  ;;  %v2257_v53 = vmul.f32 %v2252_v41, %v5690_v4  ;;  %v2258_v22 = vmul.f32 %v2252_v41, %v5710_v52 }
 0x1cb   : > { %7372 = vst [vmem:[#allocation63_spill] sm:$0xff] %v5660_v38 }
 0x1cc   : > { %2102 = vrot.lane.b32.xlu1 %v2085_v55, %s4272_s8  ;;  %v5671_v26 = vpop.permute.xlu0 %1612 }
 0x1cd   : > { %2152 = vrot.lane.b32.xlu0 %v2145_v30, %s4273_s3  ;;  %v2255_v30 = vmul.f32 %v5574_v63, %v2252_v41 }
 0x1ce   : > { %v5668_v60 = vpop.permute.xlu1 %1566 }
 0x1cf   : > { %7374 = vst [vmem:[#allocation65_spill] sm:$0xff] %v5668_v60  ;;  %v2266_v61 = vrot.slane %v2255_v30, 1 }
 0x1d0   : > { %2129 = vrot.lane.b32.xlu1 %v2122_v31, %s4274_s30  ;;  %v1617_v50 = vpop.permute.xlu0 %1616  ;;  %v2169_v31 = vmul.f32 %v2166_v49, %v5611_v20 }
 0x1d1   : > { %2173 = vrot.lane.b32.xlu0 %v2167_v23, %s4275_s27  ;;  %v2267_v30 = vsel %vm504_vm2, %v2265_v62, %v2266_v61 }
 0x1d2   : > { %v5676_v55 = vpop.permute.xlu1 %1570 }
 0x1d3   : > { %7375 = vst [vmem:[#allocation66_spill] sm:$0xff] %v5676_v55  ;;  %v2271_v55 = vrot.slane %v2257_v53, 1  ;;  %v1573_v53 = vsel %vm330_vm6, %v5655_v18, %v5668_v60  ;;  %v5744_v18 = vstv %s1756_s7  ;;  %s6038_s7 = sld [smem:[#allocation9 + $0x47]] }
 0x1d4   : > { %2150 = vrot.lane.b32.xlu1 %v2144_v39, %s4273_s3  ;;  %v5686_v43 = vpop.permute.xlu0 %1620  ;;  %v2168_v39 = vmul.f32 %v2166_v49, %v5588_v2  ;;  %v2190_v49 = vmul.f32 %v2189_v54, %v5566_v35  ;;  %v2192_v35 = vmul.f32 %v2189_v54, %v5611_v20  ;;  %7385 = vst [vmem:[#allocation76_spill] sm:$0xff] %v5744_v18 }
 0x1d5   : > { %7377 = vst [vmem:[#allocation68_spill] sm:$0xff] %v5686_v43  ;;  %2177 = vrot.lane.b32.xlu0 %v2169_v31, %s4275_s27  ;;  %v2256_v31 = vmul.f32 %v2252_v41, %v5588_v2  ;;  %v2272_v20 = vsel %vm504_vm2, %v2266_v61, %v2271_v55  ;;  %v1583_v61 = vadd.f32 %v1573_v53, %v5642_v28 }
 0x1d6   : > { %v5682_v8 = vpop.permute.xlu1 %1614 }
 0x1d7   : > { %7376 = vst [vmem:[#allocation67_spill] sm:$0xff] %v5682_v8  ;;  %v2269_v27 = vrot.slane %v2256_v31, 1  ;;  %v2273_v31 = vrot.slane %v2258_v22, 1 }
 0x1d8   : > { %2154 = vrot.lane.b32.xlu1 %v2146_v44, %s4273_s3  ;;  %v5701_v7 = vpop.permute.xlu0 %1653  ;;  %v2254_v44 = vmul.f32 %v2252_v41, %v5698_v21  ;;  %v1572_v41 = vsel %vm330_vm6, %v5645_v17, %v5660_v38  ;;  %v1624_v17 = vsel %vm373_vm7, %v5671_v26, %v5682_v8  ;;  %v5764_v26 = vmul.f32 %v5574_v63, %v5744_v18 }
 0x1d9   : > { %7380 = vst [vmem:[#allocation71_spill] sm:$0xff] %v5701_v7  ;;  %2198 = vrot.lane.b32.xlu0 %v2191_v51, %s4276_s24  ;;  %v880_v51 = vsel %vm373_vm7, %v5211_v45, %v5228_v12 }
 0x1da   : > { %v5695_v23 = vpop.permute.xlu1 %1618 }
 0x1db   : > { %7379 = vst [vmem:[#allocation70_spill] sm:$0xff] %v5695_v23  ;;  %v1625_v56 = vsel %vm373_vm7, %v1617_v50, %v5695_v23 }
 0x1dc   : > { %2175 = vrot.lane.b32.xlu1 %v2168_v39, %s4275_s27  ;;  %v2303_v39 = vstv %s3940_s23  ;;  %v5716_v14 = vpop.permute.xlu0 %1657  ;;  %s3950_s23 = sld [smem:[#allocation9 + $0x44]] }
 0x1dd   : > { %7382 = vst [vmem:[#allocation73_spill] sm:$0xff] %v5716_v14  ;;  %2275 = vrot.lane.b32.xlu0 %v2267_v30, %s4271_s28  ;;  %v2304_v54 = vmul.f32 %v2303_v39, %v2212_v32  ;;  %v2306_v45 = vmul.f32 %v5574_v63, %v2303_v39  ;;  %v1581_v30 = vadd.f32 %v1572_v41, %v5649_v34 }
 0x1de   : > { %v5708_v43 = vpop.permute.xlu1 %1622  ;;  %v2305_v53 = vmul.f32 %v2303_v39, %v5698_v21 }
 0x1df   : > { %7381 = vst [vmem:[#allocation72_spill] sm:$0xff] %v5708_v43  ;;  %v2268_v43 = vrot.slane %v2254_v44, 1  ;;  %v2316_v57 = vrot.slane %v2304_v54, 1  ;;  %v1633_v34 = vadd.f32 %v1624_v17, %v1581_v30 }
 0x1e0   : > { %2196 = vrot.lane.b32.xlu1 %v2190_v49, %s4276_s24  ;;  %v891_v49 = vadd.f32 %v880_v51, %v839_v25  ;;  %v5739_v44 = vpop.permute.xlu0 %1684  ;;  %v2317_v51 = vrot.slane %v2306_v45, 1  ;;  %v2308_v25 = vmul.f32 %v2303_v39, %v5690_v4  ;;  %v2307_v45 = vmul.f32 %v2303_v39, %v5588_v2 }
 0x1e1   : > { %7384 = vst [vmem:[#allocation75_spill] sm:$0xff] %v5739_v44  ;;  %v2270_v32 = vsel %vm504_vm2, %v2268_v43, %v2269_v27  ;;  %2279 = vrot.lane.b32.xlu0 %v2272_v20, %s4271_s28  ;;  %v1762_v43 = vmul.f32 %v5744_v18, %v5361_v19  ;;  %v2274_v20 = vsel %vm504_vm2, %v2269_v27, %v2273_v31  ;;  %v2319_v30 = vrot.slane %v2305_v53, 1 }
 0x1e2   : > { %v5730_v62 = vpop.permute.xlu1 %1655  ;;  %v920_v28 = vadd.f32 %v5231_v36, %v891_v49  ;;  %v1662_v41 = vadd.f32 %v5701_v7, %v1633_v34  ;;  %v2309_v34 = vmul.f32 %v2303_v39, %v5710_v52 }
 0x1e3   : > { %7383 = vst [vmem:[#allocation74_spill] sm:$0xff] %v5730_v62  ;;  %v1775_v17 = vrot.slane %v1762_v43, 6 }
 0x1e4   : > { %2200 = vrot.lane.b32.xlu1 %v2192_v35, %s4276_s24  ;;  %v1635_v35 = vadd.f32 %v1625_v56, %v1583_v61  ;;  %v5759_v22 = vpop.permute.xlu0 %1711  ;;  %v949_v49 = vadd.f32 %v5262_v33, %v920_v28  ;;  %v2318_v56 = vsel %vm504_vm2, %v2316_v57, %v2317_v51  ;;  %v2322_v61 = vrot.slane %v2308_v25, 1 }
 0x1e5   : > { %7387 = vst [vmem:[#allocation78_spill] sm:$0xff] %v5759_v22  ;;  %2283 = vrot.lane.b32.xlu0 %v2271_v55, %s4271_s28  ;;  %v2320_v28 = vrot.slane %v2307_v45, 1 }
 0x1e6   : > { %v5752_v50 = vpop.permute.xlu1 %1682  ;;  %v1664_v54 = vadd.f32 %v5730_v62, %v1635_v35  ;;  %v2354_v35 = vstv %s5742_s6  ;;  %v2323_v43 = vsel %vm504_vm2, %v2317_v51, %v2322_v61  ;;  %v978_v27 = vadd.f32 %v5265_v37, %v949_v49  ;;  %s6073_s6 = sld [smem:[#allocation9 + $0x31]] }
 0x1e7   : > { %7386 = vst [vmem:[#allocation77_spill] sm:$0xff] %v5752_v50  ;;  %v1691_v8 = vadd.f32 %v5752_v50, %v1662_v41  ;;  %v2356_v53 = vmul.f32 %v2354_v35, %v5588_v2 }
 0x1e8   : > { %2277 = vrot.lane.b32.xlu1 %v2270_v32, %s4271_s28  ;;  %v5776_v32 = vpop.permute.xlu0 %1715  ;;  %v1693_v55 = vadd.f32 %v5739_v44, %v1664_v54  ;;  %v7390_v54 = vrot.slane %v5764_v26, 6 }
 0x1e9   : > { %2326 = vrot.lane.b32.xlu0 %v2318_v56, %s4272_s8  ;;  %v1720_v39 = vadd.f32 %v5759_v22, %v1691_v8  ;;  %v2321_v56 = vsel %vm504_vm2, %v2319_v30, %v2320_v28  ;;  %v2362_v44 = vrot.slane %v2356_v53, 1  ;;  %v2382_v8 = vstv %s3942_s26  ;;  %s6107_s26 = sld [smem:[#allocation9 + $0x48]] }
 0x1ea   : > { %v5771_v19 = vpop.permute.xlu1 %1686  ;;  %v1778_v45 = vsel %vm1774_vm10, %v1775_v17, %v7390_v54  ;;  %v1116_v53 = vsel %vm373_vm7, %v5369_v11, %v5392_v47 }
 0x1eb   : > { %7388 = vst [vmem:[#allocation79_spill] sm:$0xff] %v5771_v19 }
 0x1ec   : > { %2281 = vrot.lane.b32.xlu1 %v2274_v20, %s4271_s28  ;;  %v2355_v20 = vmul.f32 %v2354_v35, %v5698_v21  ;;  %v5795_v41 = vpop.permute.xlu0 %1742 }
 0x1ed   : > { %7391 = vst [vmem:[#allocation81_spill] sm:$0xff] %v5795_v41  ;;  %2330 = vrot.lane.b32.xlu0 %v2323_v43, %s4272_s8 }
 0x1ee   : > { %v5785_v57 = vpop.permute.xlu1 %1713 }
 0x1ef   : > { %7389 = vst [vmem:[#allocation80_spill] sm:$0xff] %v5785_v57  ;;  %v1722_v25 = vadd.f32 %v5785_v57, %v1693_v55  ;;  %v2324_v55 = vrot.slane %v2309_v34, 1  ;;  %v1007_v57 = vadd.f32 %v5296_v59, %v978_v27  ;;  %v1072_v27 = vsel %vm330_vm6, %v5313_v1, %v5341_v15 }
 0x1f0   : > { %2285 = vrot.lane.b32.xlu1 %v2273_v31, %s4271_s28  ;;  %v2361_v31 = vrot.slane %v2355_v20, 1  ;;  %v5810_v7 = vpop.permute.xlu0 %1822  ;;  %v2384_v1 = vmul.f32 %v2382_v8, %v5588_v2 }
 0x1f1   : > { %v1751_v51 = vadd.f32 %v5795_v41, %v1722_v25  ;;  %7393 = vst [vmem:[#allocation83_spill] sm:$0xff] %v5810_v7  ;;  %v2325_v34 = vsel %vm504_vm2, %v2320_v28, %v2324_v55  ;;  %v2357_v25 = vmul.f32 %v2354_v35, %v5710_v52  ;;  %v1039_v43 = vadd.f32 %v5384_v46, %v1007_v57 }
 0x1f2   : > { %v5805_v49 = vpop.permute.xlu1 %1740  ;;  %2334 = vrot.lane.b32.xlu0 %v2322_v61, %s4272_s8  ;;  %v2410_v46 = vstv %s5798_s18  ;;  %v2383_v35 = vmul.f32 %v2382_v8, %v5698_v21  ;;  %s6113_s18 = sld [smem:[#allocation9 + $0x38]] }
 0x1f3   : > { %7392 = vst [vmem:[#allocation82_spill] sm:$0xff] %v5805_v49  ;;  %v5807_v54 = vadd.f32 %v1778_v45, %v1751_v51  ;;  %v1749_v50 = vadd.f32 %v5805_v49, %v1720_v39  ;;  %v2363_v45 = vsel %vm504_vm2, %v2361_v31, %v2362_v44  ;;  %v2364_v61 = vrot.slane %v2357_v25, 1 }
 0x1f4   : > { %2328 = vrot.lane.b32.xlu1 %v2321_v56, %s4272_s8  ;;  %v5830_v28 = vpop.permute.xlu0 %1826  ;;  %v2390_v39 = vrot.slane %v2384_v1, 1  ;;  %v2411_v56 = vmul.f32 %v2410_v46, %v5698_v21  ;;  %v2412_v31 = vmul.f32 %v2410_v46, %v5588_v2  ;;  %v2389_v25 = vrot.slane %v2383_v35, 1 }
 0x1f5   : > { %v5816_v30 = vadd.f32 %v1775_v17, %v1749_v50  ;;  %v2385_v50 = vmul.f32 %v2382_v8, %v5710_v52  ;;  %v1083_v17 = vadd.f32 %v1072_v27, %v1039_v43 }
 0x1f6   : > { %v5822_v20 = vpop.permute.xlu1 %1744  ;;  %2366 = vrot.lane.b32.xlu0 %v2363_v45, %s4274_s30  ;;  %v2417_v45 = vrot.slane %v2411_v56, 1  ;;  %v2418_v1 = vrot.slane %v2412_v31, 1 }
 0x1f7   : > { %7394 = vst [vmem:[#allocation84_spill] sm:$0xff] %v5816_v30  ;;  %v1127_v57 = vadd.f32 %v1116_v53, %v1083_v17  ;;  %v2392_v51 = vrot.slane %v2385_v50, 1  ;;  %v2438_v50 = vstv %s3944_s20  ;;  %v4102_v17 = vld [vmem:[#allocation4 + $0x30] sm:$0x1]  ;;  %s6188_s20 = sld [smem:[#allocation9 + $0x49]] }
 0x1f8   : > { %2332 = vrot.lane.b32.xlu1 %v2325_v34, %s4272_s8  ;;  %v5840_v27 = vpop.permute.xlu0 %1830  ;;  %v2365_v34 = vsel %vm504_vm2, %v2362_v44, %v2364_v61  ;;  %v1242_v30 = vmul.f32 %v4102_v17, %v5421_v6  ;;  %v2441_v56 = vmul.f32 %v2438_v50, %v5710_v52  ;;  %v2419_v31 = vsel %vm504_vm2, %v2417_v45, %v2418_v1 }
 0x1f9   : > { %v1152_v8 = vadd.f32 %v5401_v24, %v1127_v57  ;;  %v2393_v53 = vsel %vm504_vm2, %v2390_v39, %v2392_v51  ;;  %v2440_v57 = vmul.f32 %v2438_v50, %v5588_v2 }
 0x1fa   : > { %v5836_v11 = vpop.permute.xlu1 %1824  ;;  %2370 = vrot.lane.b32.xlu0 %v2364_v61, %s4274_s30  ;;  %v2413_v61 = vmul.f32 %v2410_v46, %v5710_v52  ;;  %v1257_v17 = vrot.slane %v1242_v30, 4  ;;  %v2448_v52 = vrot.slane %v2441_v56, 1  ;;  %v5888_v56 = vld [vmem:[#allocation4 + $0x48] sm:$0x80] }
 0x1fb   : > { %7395 = vst [vmem:[#allocation85_spill] sm:$0xff] %v5836_v11  ;;  %v1177_v44 = vadd.f32 %v5457_v42, %v1152_v8  ;;  %v2506_v8 = vstv %s3946_s19  ;;  %v2446_v11 = vrot.slane %v2440_v57, 1  ;;  %s6220_s19 = sld [smem:[#allocation9 + $0x4a]] }
 0x1fc   : > { %2336 = vrot.lane.b32.xlu1 %v2324_v55, %s4272_s8  ;;  %v5850_v7 = vpop.permute.xlu0 %1874  ;;  %v2391_v55 = vsel %vm504_vm2, %v2389_v25, %v2390_v39  ;;  %v2420_v46 = vrot.slane %v2413_v61, 1  ;;  %v2439_v25 = vmul.f32 %v2438_v50, %v5698_v21  ;;  %v2509_v49 = vmul.f32 %v5574_v63, %v2506_v8  ;;  %v5878_v21 = vld [vmem:[#allocation4 + $0x60] sm:$0x7f] }
 0x1fd   : > { %7396 = vst [vmem:[#allocation86_spill] sm:$0xff] %v5850_v7  ;;  %v1202_v39 = vadd.f32 %v5461_v10, %v1177_v44  ;;  %7399 = vst [vmem:[#allocation88_spill] sm:$0xff] %v5878_v21  ;;  %v1312_v61 = vsel %vm330_vm6, %v5519_v13, %v5534_v16 }
 0x1fe   : > { %v5846_v43 = vpop.permute.xlu1 %1828  ;;  %2396 = vrot.lane.b32.xlu0 %v2393_v53, %s4273_s3  ;;  %v2421_v50 = vsel %vm504_vm2, %v2418_v1, %v2420_v46  ;;  %v2445_v44 = vrot.slane %v2439_v25, 1  ;;  %v1364_v1 = vsel %vm373_vm7, %v5544_v5, %v5559_v3  ;;  %v7414_v3 = vld [vmem:[#allocation18_spill] sm:$0xff] }
 0x1ff   : > { %v1227_v45 = vadd.f32 %v5506_v48, %v1202_v39  ;;  %v2511_v39 = vmul.f32 %v2506_v8, %v5878_v21 }
 0x200   : > { %2368 = vrot.lane.b32.xlu1 %v2365_v34, %s4274_s30  ;;  %v5862_v7 = vpop.permute.xlu0 %1878  ;;  %v2466_v34 = vld [vmem:[#allocation4 + $0x40] sm:$0x80] }
 0x201   : > { %v2507_v30 = vmul.f32 %v2506_v8, %v2466_v34 }
 0x202   : > { %v5857_v35 = vpop.permute.xlu1 %1832  ;;  %2422 = vrot.lane.b32.xlu0 %v2419_v31, %s4275_s27 }
 0x204   : > { %2394 = vrot.lane.b32.xlu1 %v2391_v55, %s4273_s3  ;;  %v7398_v55 = vrot.slane %v5450_v40, 4  ;;  %v5875_v22 = vpop.permute.xlu0 %1882  ;;  %v2449_v40 = vsel %vm504_vm2, %v2446_v11, %v2448_v52 }
 0x206   : > { %v5868_v53 = vpop.permute.xlu1 %1876  ;;  %v1258_v41 = vsel %vm1250_vm8, %v7398_v55, %v1257_v17  ;;  %2426 = vrot.lane.b32.xlu0 %v2420_v46, %s4275_s27  ;;  %v2520_v17 = vrot.slane %v2509_v49, 2  ;;  %v2447_v46 = vsel %vm504_vm2, %v2445_v44, %v2446_v11  ;;  %v2508_v55 = vmul.f32 %v2506_v8, %v5888_v56  ;;  %v5903_v49 = vld [vmem:[#allocation4 + $0x68] sm:$0x7f] }
 0x207   : > { %7397 = vst [vmem:[#allocation87_spill] sm:$0xff] %v5868_v53  ;;  %v1271_v31 = vadd.f32 %v1258_v41, %v1227_v45  ;;  %v2510_v53 = vmul.f32 %v2506_v8, %v5588_v2 }
 0x208   : > { %2398 = vrot.lane.b32.xlu1 %v2392_v51, %s4273_s3  ;;  %v2519_v51 = vrot.slane %v2507_v30, 2  ;;  %v5894_v25 = vpop.permute.xlu0 %1915  ;;  %v2525_v30 = vrot.slane %v2511_v39, 2  ;;  %v2522_v11 = vrot.slane %v2508_v55, 2  ;;  %v4103_v39 = vld [vmem:[#allocation4 + $0x30] sm:$0x3] }
 0x209   : > { %7400 = vst [vmem:[#allocation89_spill] sm:$0xff] %v5894_v25  ;;  %v1323_v13 = vadd.f32 %v1312_v61, %v1271_v31  ;;  %v2523_v44 = vrot.slane %v2510_v53, 2  ;;  %v2512_v61 = vmul.f32 %v2506_v8, %v5903_v49 }
 0x20a   : > { %v5885_v57 = vpop.permute.xlu1 %1880  ;;  %2452 = vrot.lane.b32.xlu0 %v2449_v40, %s4276_s24  ;;  %v2521_v5 = vsel %vm766_vm4, %v2519_v51, %v2520_v17 }
 0x20b   : > { %v1375_v45 = vadd.f32 %v1364_v1, %v1323_v13  ;;  %v2526_v1 = vsel %vm766_vm4, %v2520_v17, %v2525_v30  ;;  %v2524_v53 = vsel %vm766_vm4, %v2522_v11, %v2523_v44  ;;  %v2527_v55 = vrot.slane %v2512_v61, 2 }
 0x20c   : > { %2424 = vrot.lane.b32.xlu1 %v2421_v50, %s4275_s27  ;;  %v5906_v25 = vpop.permute.xlu0 %1919  ;;  %v2557_v50 = vstv %s3947_s17  ;;  %s6257_s17 = sld [smem:[#allocation9 + $0x4b]] }
 0x20d   : > { %v1404_v31 = vadd.f32 %v5561_v0, %v1375_v45  ;;  %v2558_v13 = vmul.f32 %v2557_v50, %v2466_v34  ;;  %v2560_v51 = vmul.f32 %v5574_v63, %v2557_v50  ;;  %v2559_v11 = vmul.f32 %v2557_v50, %v5888_v56 }
 0x20e   : > { %v5901_v41 = vpop.permute.xlu1 %1884  ;;  %2529 = vrot.lane.b32.xlu0 %v2521_v5, %s4271_s28  ;;  %v2562_v5 = vmul.f32 %v2557_v50, %v5878_v21  ;;  %v2561_v61 = vmul.f32 %v2557_v50, %v5588_v2  ;;  %v7405_v21 = vld [vmem:[#allocation56_spill] sm:$0xff] }
 0x20f   : > { %v1433_v8 = vadd.f32 %v5614_v9, %v1404_v31  ;;  %v2570_v34 = vrot.slane %v2558_v13, 2  ;;  %v2571_v17 = vrot.slane %v2560_v51, 2  ;;  %v2528_v31 = vsel %vm766_vm4, %v2523_v44, %v2527_v55  ;;  %v7404_v13 = vld [vmem:[#allocation62_spill] sm:$0xff] }
 0x210   : > { %2450 = vrot.lane.b32.xlu1 %v2447_v46, %s4276_s24  ;;  %v1504_v46 = vmul.f32 %v4103_v39, %v5590_v58  ;;  %v5917_v62 = vpop.permute.xlu0 %1946  ;;  %v7403_v39 = vld [vmem:[#allocation58_spill] sm:$0xff]  ;;  %v2573_v44 = vrot.slane %v2559_v11, 2  ;;  %v7411_v58 = vld [vmem:[#allocation16_spill] sm:$0xff] }
 0x211   : > { %v7407_v9 = vld [vmem:[#allocation66_spill] sm:$0xff]  ;;  %v840_v0 = vadd.f32 %v5194_v29, %v7411_v58 }
 0x212   : > { %v5911_v40 = vpop.permute.xlu1 %1917  ;;  %2533 = vrot.lane.b32.xlu0 %v2526_v1, %s4271_s28  ;;  %v1519_v38 = vrot.slane %v1504_v46, 5  ;;  %v2572_v46 = vsel %vm766_vm4, %v2570_v34, %v2571_v17 }
 0x214   : > { %2454 = vrot.lane.b32.xlu1 %v2448_v52, %s4276_s24  ;;  %v5926_v23 = vpop.permute.xlu0 %1973  ;;  %v1462_v52 = vadd.f32 %v7403_v39, %v1433_v8  ;;  %v2574_v39 = vrot.slane %v2561_v61, 2  ;;  %v7409_v61 = vld [vmem:[#allocation72_spill] sm:$0xff] }
 0x215   : > { %7402 = vst [vmem:[#allocation91_spill] sm:$0xff] %v5926_v23  ;;  %v2608_v23 = vstv %s3948_s15  ;;  %s6286_s15 = sld [smem:[#allocation9 + $0x4c]] }
 0x216   : > { %v5923_v45 = vpop.permute.xlu1 %1944  ;;  %2537 = vrot.lane.b32.xlu0 %v2525_v30, %s4271_s28  ;;  %v1491_v51 = vadd.f32 %v7404_v13, %v1462_v52  ;;  %v5945_v30 = vmul.f32 %v2557_v50, %v5903_v49  ;;  %v7408_v52 = vld [vmem:[#allocation64_spill] sm:$0xff]  ;;  %v2611_v58 = vmul.f32 %v2608_v23, %v5903_v49 }
 0x217   : > { %7401 = vst [vmem:[#allocation90_spill] sm:$0xff] %v5923_v45  ;;  %v2576_v45 = vrot.slane %v2562_v5, 2  ;;  %v1574_v34 = vsel %vm330_vm6, %v7408_v52, %v7407_v9  ;;  %v7410_v50 = vld [vmem:[#allocation68_spill] sm:$0xff]  ;;  %v2575_v52 = vsel %vm766_vm4, %v2573_v44, %v2574_v39  ;;  %v2636_v44 = vstv %s3949_s16  ;;  %s3960_s16 = sld [smem:[#allocation9 + $0x4e]] }
 0x218   : > { %2531 = vrot.lane.b32.xlu1 %v2524_v53, %s4271_s28  ;;  %v7406_v53 = vrot.slane %v7405_v21, 5  ;;  %v5941_v60 = vpop.permute.xlu0 %1977  ;;  %v5955_v21 = vmul.f32 %v2608_v23, %v5588_v2  ;;  %v2578_v9 = vrot.slane %v5945_v30, 2  ;;  %v7416_v30 = vld [vmem:[#allocation20_spill] sm:$0xff] }
 0x219   : > { %v2577_v11 = vsel %vm766_vm4, %v2571_v17, %v2576_v45 }
 0x21a   : > { %v5934_v1 = vpop.permute.xlu1 %1948  ;;  %v1520_v8 = vsel %vm1512_vm9, %v7406_v53, %v1519_v38  ;;  %2580 = vrot.lane.b32.xlu0 %v2572_v46, %s4272_s8  ;;  %v2609_v38 = vmul.f32 %v2608_v23, %v5888_v56  ;;  %v1626_v53 = vsel %vm373_vm7, %v7410_v50, %v7409_v61  ;;  %v7413_v61 = vld [vmem:[#allocation14_spill] sm:$0xff]  ;;  %v2579_v29 = vsel %vm766_vm4, %v2574_v39, %v2578_v9  ;;  %v7417_v23 = vld [vmem:[#allocation31_spill] sm:$0xff] }
 0x21b   : > { %v838_v16 = vadd.f32 %v7414_v3, %v7413_v61  ;;  %v4104_v61 = vld [vmem:[#allocation4 + $0x18] sm:$0xff] }
 0x21c   : > { %2535 = vrot.lane.b32.xlu1 %v2528_v31, %s4271_s28  ;;  %v1533_v31 = vadd.f32 %v1520_v8, %v1491_v51  ;;  %v5961_v13 = vpop.permute.xlu0 %2004  ;;  %v2615_v51 = vrot.slane %v2609_v38, 2  ;;  %v2616_v8 = vrot.slane %v5955_v21, 2 }
 0x21e   : > { %v5951_v5 = vpop.permute.xlu1 %1975  ;;  %v1585_v46 = vadd.f32 %v1574_v34, %v1533_v31  ;;  %2584 = vrot.lane.b32.xlu0 %v2577_v11, %s4272_s8  ;;  %v890_v31 = vadd.f32 %v7416_v30, %v838_v16  ;;  %v2617_v21 = vsel %vm766_vm4, %v2615_v51, %v2616_v8  ;;  %v2664_v11 = vstv %s3950_s23  ;;  %v5994_v16 = vld [vmem:[#allocation4 + $0x28] sm:$0xff]  ;;  %s6345_s23 = sld [smem:[#allocation9 + $0x4f]] }
 0x21f   : > { %v2618_v30 = vrot.slane %v2611_v58, 2  ;;  %v7422_v58 = vld [vmem:[#allocation19_spill] sm:$0xff] }
 0x220   : > { %2539 = vrot.lane.b32.xlu1 %v2527_v55, %s4271_s28  ;;  %v1637_v50 = vadd.f32 %v1626_v53, %v1585_v46  ;;  %v892_v55 = vadd.f32 %v5228_v12, %v840_v0  ;;  %v5975_v34 = vpop.permute.xlu0 %2051  ;;  %v2638_v12 = vmul.f32 %v2636_v44, %v5588_v2  ;;  %v5988_v0 = vmul.f32 %v2636_v44, %v5903_v49  ;;  %v4106_v46 = vld [vmem:[#allocation4 + $0x30] sm:$0x7] }
 0x221   : > { %7415 = vst [vmem:[#allocation64_spill] sm:$0xff] %v5975_v34  ;;  %v5992_v53 = vmul.f32 %v4104_v61, %v7417_v23  ;;  %v2637_v61 = vmul.f32 %v2636_v44, %v5888_v56  ;;  %v7419_v34 = vld [vmem:[#allocation15_spill] sm:$0xff] }
 0x222   : > { %v5969_v17 = vpop.permute.xlu1 %2002  ;;  %2588 = vrot.lane.b32.xlu0 %v2576_v45, %s4272_s8  ;;  %v1666_v3 = vadd.f32 %v5716_v14, %v1637_v50  ;;  %v921_v39 = vadd.f32 %v5231_v36, %v892_v55  ;;  %v1017_v45 = vmul.f32 %v5994_v16, %v7417_v23  ;;  %v7418_v50 = vld [vmem:[#allocation22_spill] sm:$0xff] }
 0x223   : > { %7412 = vst [vmem:[#allocation56_spill] sm:$0xff] %v5969_v17  ;;  %v919_v36 = vadd.f32 %v7418_v50, %v890_v31  ;;  %v7420_v17 = vld [vmem:[#allocation17_spill] sm:$0xff]  ;;  %v2644_v31 = vrot.slane %v2638_v12, 2  ;;  %v1024_v44 = vrot.slane %v5992_v53, 3  ;;  %v2643_v4 = vrot.slane %v2637_v61, 2 }
 0x224   : > { %2582 = vrot.lane.b32.xlu1 %v2575_v52, %s4272_s8  ;;  %v1766_v52 = vmul.f32 %v4106_v46, %v5744_v18  ;;  %v5999_v51 = vpop.permute.xlu0 %2055  ;;  %v1695_v55 = vadd.f32 %v5771_v19, %v1666_v3  ;;  %v836_v14 = vadd.f32 %v7420_v17, %v7419_v34  ;;  %v950_v23 = vadd.f32 %v5262_v33, %v921_v39  ;;  %v7423_v33 = vld [vmem:[#allocation23_spill] sm:$0xff]  ;;  %v7435_v53 = vld [vmem:[#allocation29_spill] sm:$0xff] }
 0x225   : > { %v6015_v18 = vmul.f32 %v2664_v11, %v5588_v2  ;;  %v2646_v3 = vrot.slane %v5988_v0, 2  ;;  %v1027_v19 = vrot.slane %v1017_v45, 3 }
 0x226   : > { %v5982_v38 = vpop.permute.xlu1 %2006  ;;  %2620 = vrot.lane.b32.xlu0 %v2617_v21, %s4274_s30  ;;  %v888_v50 = vadd.f32 %v7422_v58, %v836_v14  ;;  %v1781_v17 = vrot.slane %v1766_v52, 6  ;;  %v948_v21 = vadd.f32 %v7423_v33, %v919_v36  ;;  %v1724_v39 = vadd.f32 %v5776_v32, %v1695_v55  ;;  %v7424_v52 = vld [vmem:[#allocation21_spill] sm:$0xff]  ;;  %v7425_v55 = vld [vmem:[#allocation26_spill] sm:$0xff] }
 0x227   : > { %v979_v12 = vadd.f32 %v5265_v37, %v950_v23  ;;  %v1835_v14 = vsel %vm330_vm6, %v5830_v28, %v5846_v43  ;;  %v2647_v37 = vsel %vm766_vm4, %v2644_v31, %v2646_v3  ;;  %v7426_v28 = vrot.slane %v5764_v26, 6 }
 0x228   : > { %2586 = vrot.lane.b32.xlu1 %v2579_v29, %s4272_s8  ;;  %v2665_v29 = vmul.f32 %v2664_v11, %v5888_v56  ;;  %v6020_v34 = vpop.permute.xlu0 %2059  ;;  %v917_v36 = vadd.f32 %v7424_v52, %v888_v50  ;;  %v977_v58 = vadd.f32 %v7425_v55, %v948_v21  ;;  %v1845_v50 = vadd.f32 %v1835_v14, %v5807_v54 }
 0x229   : > { %v1008_v61 = vadd.f32 %v5296_v59, %v979_v12  ;;  %v2645_v33 = vsel %vm766_vm4, %v2643_v4, %v2644_v31  ;;  %v2667_v21 = vmul.f32 %v2664_v11, %v5903_v49  ;;  %v7427_v59 = vld [vmem:[#allocation24_spill] sm:$0xff]  ;;  %v1836_v26 = vsel %vm330_vm6, %v5840_v27, %v5857_v35  ;;  %v7428_v31 = vld [vmem:[#allocation27_spill] sm:$0xff] }
 0x22a   : > { %v6011_v46 = vpop.permute.xlu1 %2053  ;;  %2624 = vrot.lane.b32.xlu0 %v2618_v30, %s4274_s30  ;;  %v2671_v45 = vrot.slane %v2665_v29, 2  ;;  %v2692_v29 = vstv %s6002_s5  ;;  %v1028_v11 = vsel %vm1022_vm5, %v1024_v44, %v1027_v19  ;;  %v1006_v14 = vadd.f32 %v7428_v31, %v977_v58  ;;  %v7432_v31 = vld [vmem:[#allocation33_spill] sm:$0xff]  ;;  %s6348_s5 = sld [smem:[#allocation9 + $0x3f]] }
 0x22b   : > { %7421 = vst [vmem:[#allocation68_spill] sm:$0xff] %v6011_v46  ;;  %v2619_v46 = vsel %vm766_vm4, %v2616_v8, %v2618_v30  ;;  %v1753_v8 = vadd.f32 %v5822_v20, %v1724_v39  ;;  %v1782_v30 = vsel %vm1774_vm10, %v7426_v28, %v1781_v17  ;;  %v946_v39 = vadd.f32 %v7427_v59, %v917_v36 }
 0x22c   : > { %2590 = vrot.lane.b32.xlu1 %v2578_v9, %s4272_s8  ;;  %v2672_v9 = vrot.slane %v6015_v18, 2  ;;  %v1887_v18 = vsel %vm373_vm7, %v5862_v7, %v5885_v57  ;;  %v6047_v23 = vpop.permute.xlu0 %2092  ;;  %v2694_v54 = vmul.f32 %v2692_v29, %v5588_v2  ;;  %v6064_v4 = vmul.f32 %v2692_v29, %v5903_v49 }
 0x22d   : > { %v1897_v12 = vadd.f32 %v1887_v18, %v1845_v50  ;;  %v1040_v27 = vadd.f32 %v1027_v19, %v1008_v61  ;;  %v1888_v52 = vsel %vm373_vm7, %v5875_v22, %v5901_v41  ;;  %v2674_v55 = vrot.slane %v2667_v21, 2 }
 0x22e   : > { %v6031_v0 = vpop.permute.xlu1 %2057  ;;  %2650 = vrot.lane.b32.xlu0 %v2647_v37, %s4273_s3  ;;  %v2673_v17 = vsel %vm766_vm4, %v2671_v45, %v2672_v9  ;;  %v7429_v37 = vld [vmem:[#allocation25_spill] sm:$0xff]  ;;  %v2700_v28 = vrot.slane %v2694_v54, 2  ;;  %v2750_v18 = vstv %s6038_s7  ;;  %v1038_v50 = vadd.f32 %v1028_v11, %v1006_v14  ;;  %s6424_s7 = sld [smem:[#allocation9 + $0x50]] }
 0x22f   : > { %v1926_v36 = vadd.f32 %v5911_v40, %v1897_v12  ;;  %v975_v58 = vadd.f32 %v7429_v37, %v946_v39  ;;  %v1084_v19 = vadd.f32 %v5341_v15, %v1040_v27  ;;  %v2675_v21 = vsel %vm766_vm4, %v2672_v9, %v2674_v55  ;;  %v4107_v12 = vld [vmem:[#allocation4 + $0x18] sm:$0xfe] }
 0x230   : > { %2622 = vrot.lane.b32.xlu1 %v2619_v46, %s4274_s30  ;;  %v1795_v46 = vadd.f32 %v1782_v30, %v1753_v8  ;;  %v6075_v45 = vpop.permute.xlu0 %2096  ;;  %v2693_v8 = vmul.f32 %v2692_v29, %v5888_v56  ;;  %v2702_v30 = vrot.slane %v6064_v4, 2  ;;  %v7430_v56 = vld [vmem:[#allocation28_spill] sm:$0xff]  ;;  %v6100_v54 = vmul.f32 %v4107_v12, %v5421_v6  ;;  %v6181_v4 = vld [vmem:[#allocation4] sm:$0xff] }
 0x231   : > { %v1004_v29 = vadd.f32 %v7430_v56, %v975_v58  ;;  %v1955_v15 = vadd.f32 %v5917_v62, %v1926_v36 }
 0x232   : > { %v6059_v7 = vpop.permute.xlu1 %2061  ;;  %v1847_v49 = vadd.f32 %v1836_v26, %v1795_v46  ;;  %2676 = vrot.lane.b32.xlu0 %v2673_v17, %s4275_s27  ;;  %v2699_v39 = vrot.slane %v2693_v8, 2  ;;  %v7431_v26 = vld [vmem:[#allocation30_spill] sm:$0xff]  ;;  %v2703_v9 = vsel %vm766_vm4, %v2700_v28, %v2702_v30  ;;  %v4108_v8 = vld [vmem:[#allocation4 + $0x38] sm:$0x1] }
 0x233   : > { %v1082_v17 = vadd.f32 %v7431_v26, %v1038_v50  ;;  %v1984_v11 = vadd.f32 %v5951_v5, %v1955_v15  ;;  %v1243_v37 = vmul.f32 %v4108_v8, %v5421_v6  ;;  %v7436_v26 = vld [vmem:[#allocation32_spill] sm:$0xff]  ;;  %v7440_v8 = vld [vmem:[#allocation39_spill] sm:$0xff] }
 0x234   : > { %2648 = vrot.lane.b32.xlu1 %v2645_v33, %s4273_s3  ;;  %v1899_v22 = vadd.f32 %v1888_v52, %v1847_v49  ;;  %v1128_v33 = vadd.f32 %v5392_v47, %v1084_v19  ;;  %v6088_v59 = vpop.permute.xlu0 %2100  ;;  %v2751_v47 = vmul.f32 %v5574_v63, %v2750_v18  ;;  %v1241_v52 = vmul.f32 %v5994_v16, %v5421_v6  ;;  %v7434_v19 = vld [vmem:[#allocation35_spill] sm:$0xff] }
 0x235   : > { %v1126_v14 = vadd.f32 %v7432_v31, %v1082_v17  ;;  %v6116_v49 = vstv %s6073_s6  ;;  %v7438_v31 = vld [vmem:[#allocation51_spill] sm:$0xff]  ;;  %s6464_s6 = sld [smem:[#allocation9 + $0x51]] }
 0x236   : > { %v6083_v61 = vpop.permute.xlu1 %2094  ;;  %2680 = vrot.lane.b32.xlu0 %v2674_v55, %s4275_s27  ;;  %v1153_v27 = vadd.f32 %v5401_v24, %v1128_v33  ;;  %v1036_v55 = vadd.f32 %v1024_v44, %v1004_v29  ;;  %v2701_v24 = vsel %vm766_vm4, %v2699_v39, %v2700_v28  ;;  %v6128_v33 = vld [vmem:[#allocation4 + $0x68] sm:$0xff]  ;;  %v2759_v15 = vrot.slane %v2751_v47, 3 }
 0x237   : > { %v2027_v6 = vmul.f32 %v5574_v63, %v6116_v49  ;;  %v2013_v29 = vadd.f32 %v5961_v13, %v1984_v11  ;;  %v1252_v28 = vrot.slane %v6100_v54, 4  ;;  %v1259_v47 = vrot.slane %v1243_v37, 4 }
 0x238   : > { %2652 = vrot.lane.b32.xlu1 %v2646_v3, %s4273_s3  ;;  %v1928_v3 = vadd.f32 %v5906_v25, %v1899_v22  ;;  %v6118_v36 = vpop.permute.xlu0 %2127  ;;  %v1151_v22 = vadd.f32 %v7434_v19, %v1126_v14  ;;  %v1178_v50 = vadd.f32 %v5457_v42, %v1153_v27  ;;  %v1080_v44 = vadd.f32 %v7435_v53, %v1036_v55  ;;  %v7443_v19 = vld [vmem:[#allocation34_spill] sm:$0xff] }
 0x239   : > { %7433 = vst [vmem:[#allocation16_spill] sm:$0xff] %v6118_v36  ;;  %v2752_v42 = vmul.f32 %v2750_v18, %v5588_v2  ;;  %v6145_v63 = vmul.f32 %v6128_v33, %v2750_v18  ;;  %v2029_v14 = vmul.f32 %v6116_v49, %v7438_v31  ;;  %v2064_v27 = vsel %vm330_vm6, %v5999_v51, %v6031_v0  ;;  %v7497_v36 = vld [vmem:[#allocation82_spill] sm:$0xff] }
 0x23a   : > { %v6096_v46 = vpop.permute.xlu1 %2098  ;;  %v1957_v58 = vadd.f32 %v5934_v1, %v1928_v3  ;;  %2706 = vrot.lane.b32.xlu0 %v2703_v9, %s4276_s24  ;;  %v1124_v17 = vadd.f32 %v7436_v26, %v1080_v44  ;;  %v7437_v3 = vld [vmem:[#allocation36_spill] sm:$0xff]  ;;  %v1203_v9 = vadd.f32 %v5461_v10, %v1178_v50  ;;  %v2793_v18 = vstv %s6107_s26  ;;  %s6503_s26 = sld [smem:[#allocation9 + $0x52]] }
 0x23b   : > { %v1176_v11 = vadd.f32 %v7437_v3, %v1151_v22  ;;  %v2105_v10 = vsel %vm373_vm7, %v6075_v45, %v6096_v46  ;;  %v2760_v51 = vrot.slane %v2752_v42, 3  ;;  %v2763_v44 = vrot.slane %v6145_v63, 3  ;;  %v7445_v42 = vld [vmem:[#allocation37_spill] sm:$0xff] }
 0x23c   : > { %2678 = vrot.lane.b32.xlu1 %v2675_v21, %s4275_s27  ;;  %v1255_v21 = vrot.slane %v1241_v52, 4  ;;  %v6138_v39 = vpop.permute.xlu0 %2131  ;;  %v1986_v12 = vadd.f32 %v5941_v60, %v1957_v58  ;;  %v2033_v52 = vadd.f32 %v2027_v6, %v2013_v29  ;;  %v6161_v58 = vstv %s6113_s18  ;;  %v7447_v63 = vld [vmem:[#allocation69_spill] sm:$0xff]  ;;  %s6544_s18 = sld [smem:[#allocation9 + $0x53]] }
 0x23d   : > { %v1201_v37 = vadd.f32 %v7440_v8, %v1176_v11  ;;  %7441 = vst [vmem:[#allocation18_spill] sm:$0xff] %v6161_v58  ;;  %v1149_v22 = vadd.f32 %v7443_v19, %v1124_v17  ;;  %v1228_v50 = vadd.f32 %v5506_v48, %v1203_v9  ;;  %v2065_v45 = vsel %vm330_vm6, %v6020_v34, %v6059_v7 }
 0x23e   : > { %v6131_v56 = vpop.permute.xlu1 %2102  ;;  %2765 = vrot.lane.b32.xlu0 %v2759_v15, %s4271_s28  ;;  %v2015_v55 = vadd.f32 %v5982_v38, %v1986_v12  ;;  %v2074_v53 = vadd.f32 %v2064_v27, %v2033_v52  ;;  %v1260_v6 = vsel %vm1250_vm8, %v1255_v21, %v1259_v47  ;;  %v1256_v48 = vsel %vm1250_vm8, %v1252_v28, %v1255_v21  ;;  %v7446_v12 = vld [vmem:[#allocation40_spill] sm:$0xff] }
 0x23f   : > { %v1174_v26 = vadd.f32 %v7445_v42, %v1149_v22  ;;  %v1226_v34 = vadd.f32 %v7446_v12, %v1201_v37  ;;  %v6193_v3 = vmul.f32 %v6161_v58, %v7447_v63  ;;  %v2106_v11 = vsel %vm373_vm7, %v6088_v59, %v6131_v56  ;;  %v7450_v59 = vld [vmem:[#allocation38_spill] sm:$0xff]  ;;  %v7455_v12 = vld [vmem:[#allocation43_spill] sm:$0xff] }
 0x240   : > { %2704 = vrot.lane.b32.xlu1 %v2701_v24, %s4276_s24  ;;  %v6166_v24 = vpop.permute.xlu0 %2152  ;;  %v2035_v17 = vadd.f32 %v2029_v14, %v2015_v55  ;;  %v2115_v47 = vadd.f32 %v2105_v10, %v2074_v53  ;;  %v6203_v21 = vmul.f32 %v6181_v4, %v6161_v58  ;;  %v1272_v31 = vadd.f32 %v1260_v6, %v1228_v50  ;;  %v7451_v10 = vld [vmem:[#allocation44_spill] sm:$0xff]  ;;  %v6217_v6 = vld [vmem:[#allocation4 + $0x58] sm:$0xff] }
 0x241   : > { %7442 = vst [vmem:[#allocation20_spill] sm:$0xff] %v6166_v24  ;;  %v2764_v52 = vsel %vm1022_vm5, %v2760_v51, %v2763_v44  ;;  %v1199_v37 = vadd.f32 %v7450_v59, %v1174_v26  ;;  %v1270_v53 = vadd.f32 %v1256_v48, %v1226_v34  ;;  %v6225_v48 = vmul.f32 %v6128_v33, %v2793_v18 }
 0x242   : > { %v6155_v2 = vpop.permute.xlu1 %2129  ;;  %2769 = vrot.lane.b32.xlu0 %v2759_v15, %s4271_s28  ;;  %7449 = vst [vmem:[#allocation15_spill] sm:$0xff] %v6203_v21  ;;  %v2076_v14 = vadd.f32 %v2065_v45, %v2035_v17  ;;  %v1324_v19 = vadd.f32 %v7451_v10, %v1272_v31  ;;  %v7293_v50 = vrot.slane %v6203_v21, 1  ;;  %v7453_v45 = vld [vmem:[#allocation48_spill] sm:$0xff]  ;;  %v7454_v17 = vld [vmem:[#allocation41_spill] sm:$0xff]  ;;  %v2836_v31 = vstv %s6188_s20  ;;  %s6586_s20 = sld [smem:[#allocation9 + $0x55]] }
 0x243   : > { %7439 = vst [vmem:[#allocation14_spill] sm:$0xff] %v6155_v2  ;;  %v2138_v27 = vadd.f32 %v6155_v2, %v2115_v47  ;;  %v1224_v47 = vadd.f32 %v7454_v17, %v1199_v37  ;;  %v1322_v34 = vadd.f32 %v7455_v12, %v1270_v53  ;;  %v7459_v37 = vld [vmem:[#allocation49_spill] sm:$0xff]  ;;  %v2806_v53 = vrot.slane %v6225_v48, 3  ;;  %v7464_v48 = vld [vmem:[#allocation42_spill] sm:$0xff] }
 0x244   : > { %2708 = vrot.lane.b32.xlu1 %v2702_v30, %s4276_s24  ;;  %v2794_v30 = vmul.f32 %v6181_v4, %v2793_v18  ;;  %v6198_v9 = vpop.permute.xlu0 %2173  ;;  %v2117_v22 = vadd.f32 %v2106_v11, %v2076_v14  ;;  %v7457_v14 = vld [vmem:[#allocation46_spill] sm:$0xff]  ;;  %v4111_v12 = vld [vmem:[#allocation4 + $0x38] sm:$0x3] }
 0x245   : > { %7448 = vst [vmem:[#allocation22_spill] sm:$0xff] %v6198_v9  ;;  %v2161_v26 = vadd.f32 %v6166_v24, %v2138_v27 }
 0x246   : > { %v6179_v29 = vpop.permute.xlu1 %2150  ;;  %2773 = vrot.lane.b32.xlu0 %v2759_v15, %s4271_s28  ;;  %v2802_v8 = vrot.slane %v2794_v30, 3  ;;  %v2795_v15 = vmul.f32 %v6217_v6, %v2793_v18  ;;  %v1376_v30 = vadd.f32 %v7453_v45, %v1324_v19  ;;  %v1268_v45 = vadd.f32 %v1252_v28, %v1224_v47 }
 0x247   : > { %7444 = vst [vmem:[#allocation31_spill] sm:$0xff] %v6179_v29  ;;  %v2974_v29 = vstv %s3960_s16  ;;  %s6793_s16 = sld [smem:[#allocation9 + $0x58]] }
 0x248   : > { %2767 = vrot.lane.b32.xlu1 %v2760_v51, %s4271_s28  ;;  %v6212_v42 = vpop.permute.xlu0 %2177  ;;  %v2235_v51 = vrot.slane %v6193_v3, 1  ;;  %v2140_v3 = vadd.f32 %v6138_v39, %v2117_v22  ;;  %v2803_v59 = vrot.slane %v2795_v15, 3  ;;  %v1405_v10 = vadd.f32 %v7459_v37, %v1376_v30  ;;  %v7463_v30 = vld [vmem:[#allocation57_spill] sm:$0xff] }
 0x249   : > { %7452 = vst [vmem:[#allocation17_spill] sm:$0xff] %v6212_v42  ;;  %v2837_v15 = vmul.f32 %v6217_v6, %v2836_v31  ;;  %v1320_v54 = vadd.f32 %v7464_v48, %v1268_v45  ;;  %v4112_v37 = vld [vmem:[#allocation4 + $0x18] sm:$0xfc]  ;;  %v7467_v45 = vld [vmem:[#allocation52_spill] sm:$0xff] }
 0x24a   : > { %v6208_v55 = vpop.permute.xlu1 %2154  ;;  %2808 = vrot.lane.b32.xlu0 %v2802_v8, %s4272_s8  ;;  %v2236_v18 = vsel %vm504_vm2, %v7293_v50, %v2235_v51 }
 0x24b   : > { %v2163_v19 = vadd.f32 %v6208_v55, %v2140_v3  ;;  %v1434_v3 = vadd.f32 %v7463_v30, %v1405_v10  ;;  %v2838_v10 = vmul.f32 %v6128_v33, %v2836_v31  ;;  %v2841_v21 = vrot.slane %v2837_v15, 3  ;;  %v7470_v31 = vld [vmem:[#allocation47_spill] sm:$0xff] }
 0x24c   : > { %2771 = vrot.lane.b32.xlu1 %v2764_v52, %s4271_s28  ;;  %v1374_v52 = vadd.f32 %v7457_v14, %v1322_v34  ;;  %v6239_v27 = vpop.permute.xlu0 %2198  ;;  %v7461_v34 = vld [vmem:[#allocation53_spill] sm:$0xff] }
 0x24d   : > { %7458 = vst [vmem:[#allocation23_spill] sm:$0xff] %v6239_v27  ;;  %v1505_v14 = vmul.f32 %v4111_v12, %v7461_v34  ;;  %v1503_v28 = vmul.f32 %v5994_v16, %v7461_v34  ;;  %v2186_v12 = vadd.f32 %v6212_v42, %v2163_v19 }
 0x24e   : > { %v6230_v63 = vpop.permute.xlu1 %2175  ;;  %2812 = vrot.lane.b32.xlu0 %v2802_v8, %s4272_s8 }
 0x24f   : > { %7456 = vst [vmem:[#allocation19_spill] sm:$0xff] %v6230_v63  ;;  %v2184_v11 = vadd.f32 %v6230_v63, %v2161_v26  ;;  %v7460_v26 = vld [vmem:[#allocation50_spill] sm:$0xff]  ;;  %v1521_v50 = vrot.slane %v1505_v14, 5  ;;  %v1517_v14 = vrot.slane %v1503_v28, 5  ;;  %v7486_v63 = vld [vmem:[#allocation76_spill] sm:$0xff] }
 0x250   : > { %2775 = vrot.lane.b32.xlu1 %v2763_v44, %s4271_s28  ;;  %v1403_v17 = vadd.f32 %v7460_v26, %v1374_v52  ;;  %v6262_v47 = vpop.permute.xlu0 %2275  ;;  %v2860_v52 = vstv %s6220_s19  ;;  %v1501_v26 = vmul.f32 %v4112_v37, %v7461_v34  ;;  %s6616_s19 = sld [smem:[#allocation9 + $0x46]] }
 0x251   : > { %v2207_v22 = vadd.f32 %v6239_v27, %v2184_v11  ;;  %7465 = vst [vmem:[#allocation26_spill] sm:$0xff] %v6262_v47  ;;  %v2861_v19 = vmul.f32 %v6217_v6, %v2860_v52 }
 0x252   : > { %v6251_v44 = vpop.permute.xlu1 %2196  ;;  %v1432_v48 = vadd.f32 %v7467_v45, %v1403_v17  ;;  %2816 = vrot.lane.b32.xlu0 %v2802_v8, %s4272_s8  ;;  %v1514_v8 = vrot.slane %v1501_v26, 5 }
 0x253   : > { %7462 = vst [vmem:[#allocation21_spill] sm:$0xff] %v6251_v44  ;;  %v6255_v11 = vadd.f32 %v2236_v18, %v2207_v22  ;;  %v2807_v18 = vsel %vm1022_vm5, %v2803_v59, %v2806_v53  ;;  %v7466_v22 = vld [vmem:[#allocation45_spill] sm:$0xff]  ;;  %v7469_v44 = vld [vmem:[#allocation58_spill] sm:$0xff]  ;;  %v2865_v28 = vrot.slane %v2861_v19, 3 }
 0x254   : > { %2810 = vrot.lane.b32.xlu1 %v2803_v59, %s4272_s8  ;;  %v1372_v30 = vadd.f32 %v7466_v22, %v1320_v54  ;;  %v1463_v27 = vadd.f32 %v7469_v44, %v1434_v3  ;;  %v6279_v59 = vmul.f32 %v6128_v33, %v2860_v52  ;;  %v7471_v54 = vld [vmem:[#allocation59_spill] sm:$0xff]  ;;  %v6283_v22 = vpop.permute.xlu0 %2279  ;;  %v7472_v44 = vld [vmem:[#allocation62_spill] sm:$0xff] }
 0x255   : > { %v1461_v17 = vadd.f32 %v7471_v54, %v1432_v48  ;;  %v7473_v52 = vld [vmem:[#allocation54_spill] sm:$0xff]  ;;  %v7475_v54 = vld [vmem:[#allocation60_spill] sm:$0xff] }
 0x256   : > { %v6273_v47 = vpop.permute.xlu1 %2200  ;;  %v1401_v37 = vadd.f32 %v7470_v31, %v1372_v30  ;;  %v1492_v15 = vadd.f32 %v7472_v44, %v1463_v27  ;;  %v1522_v30 = vsel %vm1512_vm9, %v1517_v14, %v1521_v50  ;;  %2844 = vrot.lane.b32.xlu0 %v2841_v21, %s4274_s30  ;;  %v2866_v31 = vrot.slane %v6279_v59, 3 }
 0x257   : > { %7468 = vst [vmem:[#allocation24_spill] sm:$0xff] %v6273_v47  ;;  %v2209_v34 = vadd.f32 %v6273_v47, %v2186_v12  ;;  %v2842_v12 = vrot.slane %v2838_v10, 3  ;;  %v1490_v9 = vadd.f32 %v7475_v54, %v1461_v17  ;;  %v7476_v10 = vld [vmem:[#allocation55_spill] sm:$0xff] }
 0x258   : > { %2814 = vrot.lane.b32.xlu1 %v2807_v18, %s4272_s8  ;;  %v1430_v45 = vadd.f32 %v7473_v52, %v1401_v37  ;;  %v2884_v18 = vstv %s6257_s17  ;;  %v6299_v26 = vpop.permute.xlu0 %2283  ;;  %v1534_v27 = vadd.f32 %v1522_v30, %v1492_v15  ;;  %v7477_v37 = vld [vmem:[#allocation66_spill] sm:$0xff]  ;;  %v2867_v44 = vsel %vm1022_vm5, %v2865_v28, %v2866_v31  ;;  %v7480_v15 = vld [vmem:[#allocation72_spill] sm:$0xff]  ;;  %v7481_v30 = vld [vmem:[#allocation65_spill] sm:$0xff]  ;;  %s6662_s17 = sld [smem:[#allocation9 + $0x56]] }
 0x259   : > { %v6289_v3 = vadd.f32 %v2235_v51, %v2209_v34  ;;  %v1518_v51 = vsel %vm1512_vm9, %v1514_v8, %v1517_v14  ;;  %v2843_v50 = vsel %vm1022_vm5, %v2841_v21, %v2842_v12  ;;  %v2885_v59 = vmul.f32 %v6217_v6, %v2884_v18 }
 0x25a   : > { %v6294_v48 = vpop.permute.xlu1 %2277  ;;  %v1459_v34 = vadd.f32 %v7476_v10, %v1430_v45  ;;  %2848 = vrot.lane.b32.xlu0 %v2842_v12, %s4274_s30  ;;  %v1586_v17 = vadd.f32 %v7477_v37, %v1534_v27  ;;  %v1532_v52 = vadd.f32 %v1518_v51, %v1490_v9  ;;  %v2908_v21 = vstv %s6286_s15  ;;  %s6721_s15 = sld [smem:[#allocation9 + $0x57]] }
 0x25b   : > { %7474 = vst [vmem:[#allocation27_spill] sm:$0xff] %v6294_v48  ;;  %v2886_v12 = vmul.f32 %v6128_v33, %v2884_v18  ;;  %v2889_v37 = vrot.slane %v2885_v59, 3  ;;  %v2909_v9 = vmul.f32 %v6217_v6, %v2908_v21  ;;  %v6324_v51 = vmul.f32 %v6128_v33, %v2908_v21  ;;  %v7483_v18 = vld [vmem:[#allocation73_spill] sm:$0xff] }
 0x25c   : > { %2818 = vrot.lane.b32.xlu1 %v2806_v53, %s4272_s8  ;;  %v7478_v53 = vld [vmem:[#allocation61_spill] sm:$0xff]  ;;  %v6312_v14 = vpop.permute.xlu0 %2326  ;;  %v1638_v45 = vadd.f32 %v7480_v15, %v1586_v17  ;;  %v1584_v10 = vadd.f32 %v7481_v30, %v1532_v52  ;;  %v7484_v15 = vld [vmem:[#allocation63_spill] sm:$0xff]  ;;  %v7485_v30 = vld [vmem:[#allocation74_spill] sm:$0xff] }
 0x25d   : > { %v1488_v54 = vadd.f32 %v7478_v53, %v1459_v34  ;;  %7479 = vst [vmem:[#allocation25_spill] sm:$0xff] %v6312_v14  ;;  %v7482_v53 = vld [vmem:[#allocation70_spill] sm:$0xff]  ;;  %v2890_v52 = vrot.slane %v2886_v12, 3  ;;  %v4113_v59 = vld [vmem:[#allocation4 + $0x38] sm:$0x7] }
 0x25e   : > { %v6306_v19 = vpop.permute.xlu1 %2281  ;;  %2870 = vrot.lane.b32.xlu0 %v2867_v44, %s4273_s3  ;;  %v1667_v17 = vadd.f32 %v7483_v18, %v1638_v45  ;;  %v1767_v47 = vmul.f32 %v4113_v59, %v7486_v63  ;;  %v7489_v45 = vld [vmem:[#allocation67_spill] sm:$0xff]  ;;  %v4114_v18 = vld [vmem:[#allocation4 + $0x18] sm:$0xf8]  ;;  %v2977_v59 = vmul.f32 %v6181_v4, %v2974_v29 }
 0x25f   : > { %v1530_v34 = vadd.f32 %v1514_v8, %v1488_v54  ;;  %v7488_v8 = vld [vmem:[#allocation79_spill] sm:$0xff] }
 0x260   : > { %2846 = vrot.lane.b32.xlu1 %v2843_v50, %s4274_s30  ;;  %v1636_v50 = vadd.f32 %v7482_v53, %v1584_v10  ;;  %v6327_v14 = vpop.permute.xlu0 %2330  ;;  %v1696_v54 = vadd.f32 %v7488_v8, %v1667_v17  ;;  %v2913_v10 = vrot.slane %v2909_v9, 3  ;;  %v2914_v53 = vrot.slane %v6324_v51, 3  ;;  %v7490_v51 = vld [vmem:[#allocation71_spill] sm:$0xff] }
 0x261   : > { %v1582_v44 = vadd.f32 %v7484_v15, %v1530_v34  ;;  %v1765_v34 = vmul.f32 %v5994_v16, %v7486_v63  ;;  %v1763_v15 = vmul.f32 %v4114_v18, %v7486_v63  ;;  %v2891_v9 = vsel %vm1022_vm5, %v2889_v37, %v2890_v52  ;;  %v6359_v18 = vld [vmem:[#allocation4 + $0x70] sm:$0x1] }
 0x262   : > { %v6320_v27 = vpop.permute.xlu1 %2285  ;;  %v1665_v48 = vadd.f32 %v7485_v30, %v1636_v50  ;;  %2892 = vrot.lane.b32.xlu0 %v2889_v37, %s4275_s27  ;;  %v1783_v30 = vrot.slane %v1767_v47, 6  ;;  %v2915_v63 = vsel %vm1022_vm5, %v2913_v10, %v2914_v53  ;;  %v7494_v47 = vld [vmem:[#allocation80_spill] sm:$0xff] }
 0x263   : > { %v1634_v12 = vadd.f32 %v7489_v45, %v1582_v44  ;;  %v1725_v45 = vadd.f32 %v5776_v32, %v1696_v54  ;;  %v1779_v24 = vrot.slane %v1765_v34, 6  ;;  %v2989_v34 = vrot.slane %v2977_v59, 4  ;;  %v7496_v59 = vld [vmem:[#allocation81_spill] sm:$0xff] }
 0x264   : > { %2868 = vrot.lane.b32.xlu1 %v2865_v28, %s4273_s3  ;;  %v2932_v28 = vld [vmem:[#allocation4 + $0x50] sm:$0xfe]  ;;  %v6342_v50 = vpop.permute.xlu0 %2334 }
 0x265   : > { %v1663_v17 = vadd.f32 %v7490_v51, %v1634_v12  ;;  %v2975_v16 = vmul.f32 %v2974_v29, %v2932_v28  ;;  %v1776_v51 = vrot.slane %v1763_v15, 6  ;;  %v1754_v42 = vadd.f32 %v5822_v20, %v1725_v45  ;;  %v6385_v45 = vld [vmem:[#allocation4 + $0x78] sm:$0x1] }
 0x266   : > { %v6335_v21 = vpop.permute.xlu1 %2328  ;;  %2896 = vrot.lane.b32.xlu0 %v2890_v52, %s4275_s27  ;;  %v1784_v32 = vsel %vm1774_vm10, %v1779_v24, %v1783_v30  ;;  %v6383_v30 = vstv %s6345_s23  ;;  %s6831_s23 = sld [smem:[#allocation9 + $0x59]] }
 0x267   : > { %7487 = vst [vmem:[#allocation28_spill] sm:$0xff] %v6335_v21  ;;  %v7492_v21 = vld [vmem:[#allocation77_spill] sm:$0xff] }
 0x268   : > { %2872 = vrot.lane.b32.xlu1 %v2866_v31, %s4273_s3  ;;  %v7491_v31 = vld [vmem:[#allocation75_spill] sm:$0xff]  ;;  %v1692_v37 = vadd.f32 %v7492_v21, %v1663_v17  ;;  %v6362_v12 = vpop.permute.xlu0 %2366  ;;  %v2987_v21 = vrot.slane %v2975_v16, 4  ;;  %v2979_v17 = vmul.f32 %v2974_v29, %v6359_v18  ;;  %v1780_v16 = vsel %vm1774_vm10, %v1776_v51, %v1779_v24 }
 0x269   : > { %v1694_v8 = vadd.f32 %v7491_v31, %v1665_v48  ;;  %7493 = vst [vmem:[#allocation30_spill] sm:$0xff] %v6362_v12  ;;  %v6367_v48 = vld [vmem:[#allocation4 + $0x58] sm:$0xfe]  ;;  %v7495_v31 = vld [vmem:[#allocation78_spill] sm:$0xff]  ;;  %v6390_v12 = vstv %s6348_s5  ;;  %s6866_s5 = sld [smem:[#allocation9 + $0x5a]] }
 0x26a   : > { %v6353_v44 = vpop.permute.xlu1 %2332  ;;  %2918 = vrot.lane.b32.xlu0 %v2915_v63, %s4276_s24  ;;  %v1721_v15 = vadd.f32 %v7495_v31, %v1692_v37  ;;  %v2976_v20 = vmul.f32 %v2974_v29, %v6367_v48  ;;  %v2288_v37 = vsel %vm330_vm6, %v6283_v22, %v6306_v19  ;;  %v2990_v31 = vsel %vm1250_vm8, %v2987_v21, %v2989_v34 }
 0x26b   : > { %v1723_v52 = vadd.f32 %v7494_v47, %v1694_v8  ;;  %v1796_v47 = vadd.f32 %v1784_v32, %v1754_v42  ;;  %v2993_v2 = vrot.slane %v2979_v17, 4  ;;  %v3026_v42 = vmul.f32 %v6383_v30, %v2932_v28 }
 0x26c   : > { %2894 = vrot.lane.b32.xlu1 %v2891_v9, %s4275_s27  ;;  %v6375_v9 = vmul.f32 %v2974_v29, %v6128_v33  ;;  %v6378_v8 = vpop.permute.xlu0 %2370  ;;  %v1750_v58 = vadd.f32 %v7497_v36, %v1721_v15  ;;  %v2980_v32 = vmul.f32 %v2974_v29, %v6385_v45  ;;  %v7498_v36 = vld [vmem:[#allocation88_spill] sm:$0xff]  ;;  %v2339_v22 = vsel %vm373_vm7, %v6327_v14, %v6353_v44 }
 0x26d   : > { %v1752_v63 = vadd.f32 %v7496_v59, %v1723_v52  ;;  %v1848_v24 = vadd.f32 %v5857_v35, %v1796_v47  ;;  %v6406_v15 = vmul.f32 %v6390_v12, %v7498_v36  ;;  %v6416_v35 = vmul.f32 %v6181_v4, %v6383_v30  ;;  %v7499_v47 = vld [vmem:[#allocation85_spill] sm:$0xff]  ;;  %v7500_v36 = vld [vmem:[#allocation83_spill] sm:$0xff] }
 0x26e   : > { %v6371_v54 = vpop.permute.xlu1 %2336  ;;  %2997 = vrot.lane.b32.xlu0 %v2987_v21, %s4271_s28  ;;  %v2991_v52 = vrot.slane %v6375_v9, 4  ;;  %v2988_v21 = vrot.slane %v2976_v20, 4  ;;  %v2298_v17 = vadd.f32 %v2288_v37, %v6255_v11  ;;  %v6422_v9 = vmul.f32 %v6181_v4, %v6390_v12 }
 0x26f   : > { %v1794_v28 = vadd.f32 %v1780_v16, %v1752_v63  ;;  %v1900_v29 = vadd.f32 %v5901_v41, %v1848_v24  ;;  %v1792_v14 = vadd.f32 %v1776_v51, %v1750_v58  ;;  %v2289_v20 = vsel %vm330_vm6, %v6299_v26, %v6320_v27 }
 0x270   : > { %2916 = vrot.lane.b32.xlu1 %v2913_v10, %s4276_s24  ;;  %v6411_v59 = vpop.permute.xlu0 %2396  ;;  %v2994_v11 = vsel %vm1250_vm8, %v2989_v34, %v2993_v2  ;;  %v2349_v16 = vadd.f32 %v2339_v22, %v2298_v17  ;;  %v2992_v63 = vsel %vm1250_vm8, %v2988_v21, %v2991_v52  ;;  %v3038_v37 = vrot.slane %v3026_v42, 4 }
 0x271   : > { %v2995_v24 = vrot.slane %v2980_v32, 4  ;;  %v1846_v58 = vadd.f32 %v5846_v43, %v1794_v28  ;;  %v2340_v51 = vsel %vm373_vm7, %v6342_v50, %v6371_v54  ;;  %v2489_v26 = vrot.slane %v6406_v15, 2 }
 0x272   : > { %v6397_v10 = vpop.permute.xlu1 %2368  ;;  %3001 = vrot.lane.b32.xlu0 %v2990_v31, %s4271_s28  ;;  %v3040_v31 = vrot.slane %v6416_v35, 4  ;;  %v1929_v2 = vadd.f32 %v5906_v25, %v1900_v29  ;;  %v2300_v34 = vadd.f32 %v2289_v20, %v6289_v3  ;;  %v7310_v43 = vrot.slane %v6422_v9, 2  ;;  %v4115_v35 = vld [vmem:[#allocation4 + $0x68] sm:$0x1f]  ;;  %v7501_v29 = vld [vmem:[#allocation84_spill] sm:$0xff] }
 0x273   : > { %v2377_v42 = vadd.f32 %v6397_v10, %v2349_v16  ;;  %v1898_v32 = vadd.f32 %v5885_v57, %v1846_v58  ;;  %v3027_v22 = vmul.f32 %v6383_v30, %v6367_v48  ;;  %v6460_v25 = vmul.f32 %v6383_v30, %v6128_v33  ;;  %v7502_v58 = vld [vmem:[#allocation87_spill] sm:$0xff] }
 0x274   : > { %2920 = vrot.lane.b32.xlu1 %v2914_v53, %s4276_s24  ;;  %v1834_v53 = vsel %vm330_vm6, %v7500_v36, %v7499_v47  ;;  %v6441_v36 = vpop.permute.xlu0 %2422  ;;  %v1958_v3 = vadd.f32 %v5934_v1, %v1929_v2  ;;  %v2030_v57 = vmul.f32 %v4115_v35, %v6116_v49  ;;  %v2351_v28 = vadd.f32 %v2340_v51, %v2300_v34  ;;  %v7503_v1 = vld [vmem:[#allocation86_spill] sm:$0xff] }
 0x275   : > { %v1843_v17 = vadd.f32 %v1834_v53, %v7501_v29  ;;  %v1844_v20 = vadd.f32 %v7499_v47, %v1792_v14  ;;  %v2996_v16 = vsel %vm1250_vm8, %v2991_v52, %v2995_v24  ;;  %v1886_v2 = vsel %vm373_vm7, %v7503_v1, %v7502_v58 }
 0x276   : > { %v6433_v41 = vpop.permute.xlu1 %2394  ;;  %3005 = vrot.lane.b32.xlu0 %v2994_v11, %s4271_s28  ;;  %v1927_v11 = vadd.f32 %v5911_v40, %v1898_v32  ;;  %v2405_v51 = vadd.f32 %v6411_v59, %v2377_v42  ;;  %v3041_v34 = vsel %vm1250_vm8, %v3038_v37, %v3040_v31  ;;  %v3076_v35 = vstv %s6424_s7  ;;  %s6902_s7 = sld [smem:[#allocation9 + $0x5c]] }
 0x277   : > { %v2490_v40 = vsel %vm766_vm4, %v7310_v43, %v2489_v26  ;;  %v3039_v52 = vrot.slane %v3027_v22, 4  ;;  %v3042_v53 = vrot.slane %v6460_v25, 4  ;;  %v1987_v24 = vadd.f32 %v5941_v60, %v1958_v3  ;;  %v7504_v25 = vld [vmem:[#allocation89_spill] sm:$0xff] }
 0x278   : > { %2999 = vrot.lane.b32.xlu1 %v2988_v21, %s4271_s28  ;;  %v3030_v21 = vmul.f32 %v6383_v30, %v6359_v18  ;;  %v6469_v18 = vpop.permute.xlu0 %2426  ;;  %v2379_v42 = vadd.f32 %v6378_v8, %v2351_v28  ;;  %v1895_v32 = vadd.f32 %v1886_v2, %v1843_v17  ;;  %v1956_v29 = vadd.f32 %v5917_v62, %v1927_v11 }
 0x279   : > { %v3077_v22 = vmul.f32 %v3076_v35, %v6367_v48  ;;  %v2016_v60 = vadd.f32 %v5982_v38, %v1987_v24 }
 0x27a   : > { %v6452_v50 = vpop.permute.xlu1 %2398  ;;  %3048 = vrot.lane.b32.xlu0 %v3038_v37, %s4272_s8  ;;  %v3044_v47 = vrot.slane %v3030_v21, 4  ;;  %v3031_v21 = vmul.f32 %v6383_v30, %v6385_v45  ;;  %v1924_v62 = vadd.f32 %v7504_v25, %v1895_v32  ;;  %v1985_v17 = vadd.f32 %v5951_v5, %v1956_v29 }
 0x27b   : > { %v2407_v3 = vadd.f32 %v6452_v50, %v2379_v42  ;;  %v3078_v30 = vmul.f32 %v3076_v35, %v6128_v33  ;;  %v2028_v5 = vmul.f32 %v6217_v6, %v6116_v49  ;;  %v3043_v32 = vsel %vm1250_vm8, %v3039_v52, %v3042_v53 }
 0x27c   : > { %3003 = vrot.lane.b32.xlu1 %v2992_v63, %s4271_s28  ;;  %v1896_v63 = vadd.f32 %v7502_v58, %v1844_v20  ;;  %v6493_v1 = vpop.permute.xlu0 %2452  ;;  %v7505_v58 = vld [vmem:[#allocation90_spill] sm:$0xff]  ;;  %v2014_v29 = vadd.f32 %v5961_v13, %v1985_v17 }
 0x27d   : > { %v1953_v24 = vadd.f32 %v7505_v58, %v1924_v62 }
 0x27e   : > { %v6480_v14 = vpop.permute.xlu1 %2424  ;;  %v1925_v20 = vadd.f32 %v7504_v25, %v1896_v63  ;;  %3052 = vrot.lane.b32.xlu0 %v3041_v34, %s4272_s8  ;;  %v3104_v63 = vstv %s6464_s6  ;;  %v3046_v34 = vrot.slane %v3031_v21, 4  ;;  %s6946_s6 = sld [smem:[#allocation9 + $0x5d]] }
 0x27f   : > { %v2433_v37 = vadd.f32 %v6480_v14, %v2405_v51  ;;  %v3045_v51 = vsel %vm1250_vm8, %v3040_v31, %v3044_v47  ;;  %v3084_v47 = vrot.slane %v3078_v30, 4  ;;  %v7507_v30 = vld [vmem:[#allocation56_spill] sm:$0xff] }
 0x280   : > { %3007 = vrot.lane.b32.xlu1 %v2996_v16, %s4271_s28  ;;  %v3079_v16 = vmul.f32 %v3076_v35, %v6385_v45  ;;  %v1954_v38 = vadd.f32 %v7505_v58, %v1925_v20  ;;  %v6520_v42 = vpop.permute.xlu0 %2529  ;;  %v2435_v35 = vadd.f32 %v6469_v18, %v2407_v3  ;;  %v6530_v20 = vmul.f32 %v3104_v63, %v6367_v48 }
 0x281   : > { %v2461_v28 = vadd.f32 %v6493_v1, %v2433_v37  ;;  %v2036_v37 = vadd.f32 %v2030_v57, %v2016_v60  ;;  %v3047_v17 = vsel %vm1250_vm8, %v3042_v53, %v3046_v34 }
 0x282   : > { %v6508_v11 = vpop.permute.xlu1 %2450  ;;  %3056 = vrot.lane.b32.xlu0 %v3045_v51, %s4272_s8  ;;  %v3086_v25 = vrot.slane %v3079_v16, 4  ;;  %v2034_v51 = vadd.f32 %v2028_v5, %v2014_v29 }
 0x283   : > { %v6513_v2 = vadd.f32 %v2490_v40, %v2461_v28  ;;  %v3083_v40 = vrot.slane %v3077_v22, 4  ;;  %v7506_v28 = vld [vmem:[#allocation91_spill] sm:$0xff]  ;;  %v2077_v57 = vadd.f32 %v6059_v7, %v2036_v37 }
 0x284   : > { %3050 = vrot.lane.b32.xlu1 %v3039_v52, %s4272_s8  ;;  %v1983_v21 = vadd.f32 %v7506_v28, %v1954_v38  ;;  %v6536_v52 = vmul.f32 %v3104_v63, %v6128_v33  ;;  %v1982_v13 = vadd.f32 %v7506_v28, %v1953_v24  ;;  %v4116_v22 = vld [vmem:[#allocation4 + $0x48] sm:$0xe0]  ;;  %v6540_v62 = vpop.permute.xlu0 %2533  ;;  %v3132_v38 = vstv %s6503_s26  ;;  %v4117_v24 = vld [vmem:[#allocation4 + $0x40] sm:$0xe0]  ;;  %v7508_v28 = vld [vmem:[#allocation68_spill] sm:$0xff]  ;;  %s3959_s26 = sld [smem:[#allocation9 + $0x4d]] }
 0x285   : > { %v2026_v3 = vmul.f32 %v4116_v22, %v6116_v49  ;;  %v2118_v16 = vadd.f32 %v6131_v56, %v2077_v57  ;;  %v2025_v37 = vmul.f32 %v4117_v24, %v6116_v49  ;;  %v3087_v34 = vsel %vm1250_vm8, %v3084_v47, %v3086_v25 }
 0x286   : > { %v6527_v31 = vpop.permute.xlu1 %2454  ;;  %v2012_v7 = vadd.f32 %v7507_v30, %v1983_v21  ;;  %3088 = vrot.lane.b32.xlu0 %v3083_v40, %s4274_s30  ;;  %v3112_v56 = vrot.slane %v6536_v52, 4  ;;  %v2075_v15 = vadd.f32 %v6031_v0, %v2034_v51  ;;  %v3085_v49 = vsel %vm1250_vm8, %v3083_v40, %v3084_v47  ;;  %v7509_v21 = vld [vmem:[#allocation64_spill] sm:$0xff] }
 0x287   : > { %v2463_v60 = vadd.f32 %v6527_v31, %v2435_v35  ;;  %v2011_v35 = vadd.f32 %v7507_v30, %v1982_v13  ;;  %v6567_v5 = vmul.f32 %v3132_v38, %v6367_v48  ;;  %v2063_v25 = vsel %vm330_vm6, %v7509_v21, %v7508_v28  ;;  %v7513_v21 = vld [vmem:[#allocation17_spill] sm:$0xff] }
 0x288   : > { %3054 = vrot.lane.b32.xlu1 %v3043_v32, %s4272_s8  ;;  %v3111_v32 = vrot.slane %v6530_v20, 4  ;;  %v2032_v29 = vadd.f32 %v2026_v3, %v2012_v7  ;;  %v2141_v20 = vadd.f32 %v6138_v39, %v2118_v16  ;;  %v3107_v57 = vmul.f32 %v3104_v63, %v6385_v45  ;;  %v7510_v3 = vld [vmem:[#allocation14_spill] sm:$0xff] }
 0x289   : > { %v6550_v58 = vadd.f32 %v2489_v26, %v2463_v60  ;;  %v6562_v26 = vpop.permute.xlu0 %2537  ;;  %v2031_v0 = vadd.f32 %v2025_v37, %v2011_v35  ;;  %v2116_v60 = vadd.f32 %v6096_v46, %v2075_v15  ;;  %v3134_v40 = vmul.f32 %v3132_v38, %v6128_v33 }
 0x28a   : > { %v6556_v53 = vpop.permute.xlu1 %2531  ;;  %3092 = vrot.lane.b32.xlu0 %v3087_v34, %s4274_s30  ;;  %v3135_v47 = vmul.f32 %v3132_v38, %v6385_v45  ;;  %v2073_v13 = vadd.f32 %v7508_v28, %v2032_v29  ;;  %v2104_v39 = vsel %vm373_vm7, %v6047_v23, %v6083_v61  ;;  %v2164_v63 = vadd.f32 %v6208_v55, %v2141_v20  ;;  %v7511_v38 = vld [vmem:[#allocation18_spill] sm:$0xff]  ;;  %v4118_v23 = vld [vmem:[#allocation4 + $0x68] sm:$0x3f] }
 0x28b   : > { %v3113_v22 = vsel %vm1250_vm8, %v3111_v32, %v3112_v56  ;;  %v2072_v46 = vadd.f32 %v2063_v25, %v2031_v0  ;;  %v3160_v7 = vstv %s6544_s18  ;;  %v2220_v51 = vmul.f32 %v6217_v6, %v7511_v38  ;;  %v7514_v0 = vld [vmem:[#allocation20_spill] sm:$0xff]  ;;  %s6971_s18 = sld [smem:[#allocation9 + $0x5e]] }
 0x28c   : > { %3058 = vrot.lane.b32.xlu1 %v3047_v17, %s4272_s8  ;;  %v2139_v17 = vadd.f32 %v7510_v3, %v2116_v60  ;;  %v2114_v16 = vadd.f32 %v6083_v61, %v2073_v13  ;;  %v2222_v55 = vmul.f32 %v4118_v23, %v7511_v38  ;;  %v3114_v24 = vrot.slane %v3107_v57, 4  ;;  %v4119_v13 = vld [vmem:[#allocation4 + $0x40] sm:$0xc0] }
 0x28d   : > { %v6589_v30 = vpop.permute.xlu0 %2580  ;;  %v2113_v37 = vadd.f32 %v2104_v39, %v2072_v46  ;;  %v3139_v34 = vrot.slane %v6567_v5, 4  ;;  %v3140_v15 = vrot.slane %v3134_v40, 4  ;;  %v3142_v29 = vrot.slane %v3135_v47, 4  ;;  %v4120_v5 = vld [vmem:[#allocation4 + $0x48] sm:$0xc0] }
 0x28e   : > { %v6576_v52 = vpop.permute.xlu1 %2535  ;;  %3118 = vrot.lane.b32.xlu0 %v3113_v22, %s4273_s3  ;;  %v2187_v61 = vadd.f32 %v7513_v21, %v2164_v63  ;;  %v6604_v25 = vmul.f32 %v3160_v7, %v6367_v48  ;;  %v6607_v20 = vmul.f32 %v3160_v7, %v6128_v33  ;;  %v2162_v60 = vadd.f32 %v7514_v0, %v2139_v17  ;;  %v7515_v48 = vld [vmem:[#allocation31_spill] sm:$0xff]  ;;  %v7516_v22 = vld [vmem:[#allocation24_spill] sm:$0xff] }
 0x28f   : > { %v2217_v39 = vmul.f32 %v4119_v13, %v7511_v38  ;;  %v2218_v40 = vmul.f32 %v4120_v5, %v7511_v38  ;;  %v3115_v3 = vsel %vm1250_vm8, %v3112_v56, %v3114_v24  ;;  %v6629_v0 = vld [vmem:[#allocation4 + $0x50] sm:$0xfc] }
 0x290   : > { %3090 = vrot.lane.b32.xlu1 %v3085_v49, %s4274_s30  ;;  %v7512_v49 = vld [vmem:[#allocation16_spill] sm:$0xff]  ;;  %v2210_v46 = vadd.f32 %v7516_v22, %v2187_v61  ;;  %v3167_v21 = vrot.slane %v6604_v25, 4  ;;  %v6632_v61 = vstv %s6586_s20  ;;  %s6977_s20 = sld [smem:[#allocation9 + $0x5f]] }
 0x291   : > { %v2137_v28 = vadd.f32 %v7512_v49, %v2114_v16  ;;  %v2136_v57 = vadd.f32 %v7512_v49, %v2113_v37  ;;  %v6613_v47 = vpop.permute.xlu0 %2584  ;;  %v7517_v16 = vld [vmem:[#allocation19_spill] sm:$0xff]  ;;  %v2233_v37 = vrot.slane %v2220_v51, 1  ;;  %v2237_v49 = vrot.slane %v2222_v55, 1 }
 0x292   : > { %v6598_v35 = vpop.permute.xlu1 %2539  ;;  %v2185_v23 = vadd.f32 %v7517_v16, %v2162_v60  ;;  %3144 = vrot.lane.b32.xlu0 %v3139_v34, %s4275_s27  ;;  %v2229_v56 = vrot.slane %v2217_v39, 1  ;;  %v2232_v24 = vrot.slane %v2218_v40, 1  ;;  %v6636_v51 = vmul.f32 %v6217_v6, %v6390_v12  ;;  %v7519_v40 = vld [vmem:[#allocation23_spill] sm:$0xff] }
 0x293   : > { %v2160_v63 = vadd.f32 %v7515_v48, %v2137_v28  ;;  %v2159_v17 = vadd.f32 %v7515_v48, %v2136_v57  ;;  %v3168_v28 = vrot.slane %v6607_v20, 4  ;;  %v7518_v57 = vld [vmem:[#allocation22_spill] sm:$0xff]  ;;  %v2250_v60 = vadd.f32 %v2237_v49, %v2210_v46  ;;  %v4121_v20 = vld [vmem:[#allocation4 + $0x68] sm:$0x7f]  ;;  %v7520_v46 = vld [vmem:[#allocation21_spill] sm:$0xff] }
 0x294   : > { %3116 = vrot.lane.b32.xlu1 %v3111_v32, %s4273_s3  ;;  %v3143_v32 = vsel %vm1250_vm8, %v3140_v15, %v3142_v29  ;;  %v3163_v29 = vmul.f32 %v3160_v7, %v6385_v45  ;;  %v6644_v13 = vmul.f32 %v4121_v20, %v6390_v12  ;;  %v3141_v39 = vsel %vm1250_vm8, %v3139_v34, %v3140_v15 }
 0x295   : > { %v6638_v55 = vpop.permute.xlu0 %2588  ;;  %v2183_v25 = vadd.f32 %v7518_v57, %v2160_v63  ;;  %v2182_v5 = vadd.f32 %v7518_v57, %v2159_v17  ;;  %v2208_v48 = vadd.f32 %v7519_v40, %v2185_v23  ;;  %v3229_v45 = vmul.f32 %v6632_v61, %v6629_v0  ;;  %v6669_v57 = vld [vmem:[#allocation4 + $0x70] sm:$0x3] }
 0x296   : > { %v6624_v38 = vpop.permute.xlu1 %2582  ;;  %3148 = vrot.lane.b32.xlu0 %v3143_v32, %s4275_s27  ;;  %v6656_v7 = vmul.f32 %v6181_v4, %v6632_v61  ;;  %v2238_v63 = vsel %vm504_vm2, %v2233_v37, %v2237_v49  ;;  %v2301_v15 = vadd.f32 %v6320_v27, %v2250_v60  ;;  %v2234_v17 = vsel %vm504_vm2, %v2232_v24, %v2233_v37  ;;  %v6679_v37 = vld [vmem:[#allocation4 + $0x58] sm:$0xfc] }
 0x297   : > { %v2206_v34 = vadd.f32 %v7520_v46, %v2183_v25  ;;  %v2205_v16 = vadd.f32 %v7520_v46, %v2182_v5  ;;  %v3170_v32 = vrot.slane %v3163_v29, 4  ;;  %v6672_v49 = vstv %s6616_s19  ;;  %v7522_v25 = vld [vmem:[#allocation15_spill] sm:$0xff]  ;;  %s7008_s19 = sld [smem:[#allocation9 + $0x61]] }
 0x298   : > { %3120 = vrot.lane.b32.xlu1 %v3115_v3, %s4273_s3  ;;  %v3169_v3 = vsel %vm1250_vm8, %v3167_v21, %v3168_v28  ;;  %v7523_v20 = vrot.slane %v7522_v25, 1  ;;  %v2352_v60 = vadd.f32 %v6371_v54, %v2301_v15  ;;  %v2248_v24 = vadd.f32 %v2238_v63, %v2208_v48  ;;  %v7524_v25 = vld [vmem:[#allocation27_spill] sm:$0xff]  ;;  %v4122_v54 = vld [vmem:[#allocation4 + $0x40] sm:$0x80] }
 0x299   : > { %v6666_v23 = vpop.permute.xlu0 %2620  ;;  %v2491_v5 = vrot.slane %v6644_v13, 2  ;;  %v3243_v46 = vrot.slane %v6656_v7, 5  ;;  %v2246_v43 = vadd.f32 %v2234_v17, %v2206_v34  ;;  %v2471_v15 = vmul.f32 %v4122_v54, %v6390_v12  ;;  %v7526_v17 = vld [vmem:[#allocation28_spill] sm:$0xff] }
 0x29a   : > { %v6650_v22 = vpop.permute.xlu1 %2586  ;;  %7521 = vst [vmem:[#allocation33_spill] sm:$0xff] %v6666_v23  ;;  %v2231_v27 = vsel %vm504_vm2, %v2229_v56, %v7523_v20  ;;  %3174 = vrot.lane.b32.xlu0 %v3169_v3, %s4276_s24  ;;  %v7525_v23 = vld [vmem:[#allocation26_spill] sm:$0xff]  ;;  %v3233_v48 = vmul.f32 %v6632_v61, %v6669_v57  ;;  %v2299_v20 = vadd.f32 %v6306_v19, %v2248_v24  ;;  %v6719_v40 = vstv %s6662_s17 }
 0x29b   : > { %v2287_v56 = vsel %vm330_vm6, %v7525_v23, %v7524_v25  ;;  %v2245_v63 = vadd.f32 %v2231_v27, %v2205_v16  ;;  %v3230_v7 = vmul.f32 %v6632_v61, %v6679_v37  ;;  %v2297_v34 = vadd.f32 %v7524_v25, %v2246_v43  ;;  %v7527_v23 = vld [vmem:[#allocation25_spill] sm:$0xff] }
 0x29c   : > { %3146 = vrot.lane.b32.xlu1 %v3141_v39, %s4275_s27  ;;  %v3241_v39 = vrot.slane %v3229_v45, 5  ;;  %v3171_v45 = vsel %vm1250_vm8, %v3168_v28, %v3170_v32  ;;  %v2338_v54 = vsel %vm373_vm7, %v7527_v23, %v7526_v17  ;;  %v2380_v16 = vadd.f32 %v6378_v8, %v2352_v60  ;;  %v4123_v28 = vld [vmem:[#allocation4 + $0x48] sm:$0x80]  ;;  %v6714_v25 = vld [vmem:[#allocation4 + $0x78] sm:$0x3] }
 0x29d   : > { %v6693_v3 = vpop.permute.xlu0 %2624  ;;  %v6706_v19 = vmul.f32 %v6632_v61, %v6128_v33  ;;  %v2296_v27 = vadd.f32 %v2287_v56, %v2245_v63  ;;  %v2472_v32 = vmul.f32 %v4123_v28, %v6390_v12  ;;  %v2348_v8 = vadd.f32 %v7526_v17, %v2297_v34 }
 0x29e   : > { %v6683_v29 = vpop.permute.xlu1 %2590  ;;  %3251 = vrot.lane.b32.xlu0 %v3241_v39, %s4271_s28  ;;  %v3244_v43 = vsel %vm1512_vm9, %v3241_v39, %v3243_v46  ;;  %v2408_v60 = vadd.f32 %v6452_v50, %v2380_v16  ;;  %v3247_v23 = vrot.slane %v3233_v48, 5  ;;  %v3242_v39 = vrot.slane %v3230_v7, 5 }
 0x29f   : > { %v2347_v12 = vadd.f32 %v2338_v54, %v2296_v27  ;;  %v2483_v50 = vrot.slane %v2471_v15, 2  ;;  %v3245_v48 = vrot.slane %v6706_v19, 5  ;;  %v3234_v17 = vmul.f32 %v6632_v61, %v6714_v25 }
 0x2a0   : > { %3172 = vrot.lane.b32.xlu1 %v3167_v21, %s4276_s24  ;;  %v2350_v21 = vadd.f32 %v6353_v44, %v2299_v20  ;;  %v6725_v44 = vmul.f32 %v6181_v4, %v6672_v49  ;;  %v7528_v20 = vld [vmem:[#allocation30_spill] sm:$0xff]  ;;  %v7529_v54 = vrot.slane %v6636_v51, 2  ;;  %v2486_v27 = vrot.slane %v2472_v32, 2 }
 0x2a1   : > { %v6728_v63 = vpop.permute.xlu0 %2650  ;;  %v2376_v34 = vadd.f32 %v7528_v20, %v2348_v8  ;;  %v2375_v16 = vadd.f32 %v7528_v20, %v2347_v12  ;;  %v3280_v15 = vmul.f32 %v6719_v40, %v6629_v0  ;;  %v2436_v61 = vadd.f32 %v6469_v18, %v2408_v60 }
 0x2a2   : > { %v6711_v24 = vpop.permute.xlu1 %2622  ;;  %v2378_v56 = vadd.f32 %v6397_v10, %v2350_v21  ;;  %v2492_v10 = vsel %vm766_vm4, %v7529_v54, %v2491_v5  ;;  %3255 = vrot.lane.b32.xlu0 %v3244_v43, %s4271_s28  ;;  %v3248_v19 = vsel %vm1512_vm9, %v3243_v46, %v3247_v23  ;;  %v3282_v21 = vmul.f32 %v6181_v4, %v6719_v40 }
 0x2a3   : > { %v2404_v7 = vadd.f32 %v6433_v41, %v2376_v34  ;;  %v2403_v32 = vadd.f32 %v6433_v41, %v2375_v16  ;;  %v3284_v0 = vmul.f32 %v6719_v40, %v6669_v57  ;;  %v6760_v18 = vmul.f32 %v6719_v40, %v6128_v33 }
 0x2a4   : > { %3176 = vrot.lane.b32.xlu1 %v3171_v45, %s4276_s24  ;;  %v2406_v28 = vadd.f32 %v6411_v59, %v2378_v56  ;;  %v7530_v46 = vrot.slane %v6422_v9, 2  ;;  %v2464_v59 = vadd.f32 %v6527_v31, %v2436_v61  ;;  %v3246_v41 = vsel %vm1512_vm9, %v3242_v39, %v3245_v48 }
 0x2a5   : > { %v6753_v8 = vpop.permute.xlu0 %2676  ;;  %v3249_v43 = vrot.slane %v3234_v17, 5  ;;  %v7531_v23 = vmov %v7529_v54  ;;  %v3292_v33 = vrot.slane %v3280_v15, 5  ;;  %v3281_v9 = vmul.f32 %v6719_v40, %v6679_v37  ;;  %v6787_v17 = vld [vmem:[#allocation4 + $0x68] sm:$0xff] }
 0x2a6   : > { %v6742_v45 = vpop.permute.xlu1 %2648  ;;  %v2485_v4 = vsel %vm766_vm4, %v2483_v50, %v7530_v46  ;;  %v2434_v60 = vadd.f32 %v6480_v14, %v2406_v28  ;;  %v2488_v12 = vsel %vm766_vm4, %v2486_v27, %v7531_v23  ;;  %3259 = vrot.lane.b32.xlu0 %v3248_v19, %s4271_s28  ;;  %v2432_v56 = vadd.f32 %v6441_v36, %v2404_v7 }
 0x2a7   : > { %v3294_v31 = vrot.slane %v3282_v21, 5  ;;  %v3330_v20 = vstv %s6721_s15  ;;  %v2431_v14 = vadd.f32 %v6441_v36, %v2403_v32  ;;  %v3298_v34 = vrot.slane %v3284_v0, 5  ;;  %s3986_s15 = sshll.u32 %s4255_s12, 8  ;;  %s3762_s12 = scalar_lea.sflag [#allocation7], %s4441_s4 }
 0x2a8   : > { %3253 = vrot.lane.b32.xlu1 %v3242_v39, %s4271_s28  ;;  %v6780_v39 = vmul.f32 %v6217_v6, %v6672_v49  ;;  %v3296_v50 = vrot.slane %v6760_v18, 5  ;;  %v6791_v16 = vmul.f32 %v6787_v17, %v6672_v49  ;;  %v2460_v6 = vadd.f32 %v6508_v11, %v2432_v56 }
 0x2a9   : > { %v6783_v51 = vpop.permute.xlu0 %2680  ;;  %v2504_v36 = vadd.f32 %v2491_v5, %v2464_v59  ;;  %v2543_v54 = vsel %vm330_vm6, %v6562_v26, %v6598_v35  ;;  %v3250_v27 = vsel %vm1512_vm9, %v3245_v48, %v3249_v43  ;;  %v2462_v15 = vadd.f32 %v6493_v1, %v2434_v60 }
 0x2aa   : > { %v6772_v57 = vpop.permute.xlu1 %2652  ;;  %v2459_v7 = vadd.f32 %v6508_v11, %v2431_v14  ;;  %3302 = vrot.lane.b32.xlu0 %v3292_v33, %s4272_s8  ;;  %v3293_v61 = vrot.slane %v3281_v9, 5  ;;  %v6808_v19 = vmul.f32 %v3330_v20, %v6679_v37  ;;  %v2594_v26 = vsel %vm373_vm7, %v6638_v55, %v6683_v29 }
 0x2ab   : > { %v2555_v13 = vadd.f32 %v6598_v35, %v2504_v36  ;;  %v3295_v5 = vsel %vm1512_vm9, %v3292_v33, %v3294_v31  ;;  %v3285_v1 = vmul.f32 %v6719_v40, %v6714_v25  ;;  %v2554_v11 = vadd.f32 %v2543_v54, %v6550_v58 }
 0x2ac   : > { %3257 = vrot.lane.b32.xlu1 %v3246_v41, %s4271_s28  ;;  %v3299_v21 = vsel %vm1512_vm9, %v3294_v31, %v3298_v34  ;;  %v3297_v35 = vsel %vm1512_vm9, %v3293_v61, %v3296_v50  ;;  %v3332_v28 = vmul.f32 %v6787_v17, %v3330_v20  ;;  %v2500_v55 = vadd.f32 %v2488_v12, %v2460_v6  ;;  %v7532_v6 = vld [vmem:[#allocation33_spill] sm:$0xff] }
 0x2ad   : > { %v6818_v48 = vpop.permute.xlu0 %2706  ;;  %v2541_v32 = vsel %vm330_vm6, %v6520_v42, %v6556_v53  ;;  %v2606_v40 = vadd.f32 %v6683_v29, %v2555_v13  ;;  %v3333_v58 = vmul.f32 %v3330_v20, %v6714_v25  ;;  %v2502_v0 = vadd.f32 %v2492_v10, %v2462_v15 }
 0x2ae   : > { %v6805_v49 = vpop.permute.xlu1 %2678  ;;  %v2499_v46 = vadd.f32 %v2485_v4, %v2459_v7  ;;  %v2605_v59 = vadd.f32 %v2594_v26, %v2554_v11  ;;  %3306 = vrot.lane.b32.xlu0 %v3295_v5, %s4272_s8  ;;  %v3337_v43 = vrot.slane %v6808_v19, 5  ;;  %v2551_v60 = vadd.f32 %v6556_v53, %v2500_v55 }
 0x2af   : > { %v2542_v42 = vsel %vm330_vm6, %v6540_v62, %v6576_v52  ;;  %v2592_v29 = vsel %vm373_vm7, %v6589_v30, %v6624_v38  ;;  %v3300_v23 = vrot.slane %v3285_v1, 5  ;;  %v2553_v4 = vadd.f32 %v6576_v52, %v2502_v0 }
 0x2b0   : > { %3261 = vrot.lane.b32.xlu1 %v3250_v27, %s4271_s28  ;;  %v2550_v10 = vadd.f32 %v2541_v32, %v2499_v46  ;;  %v3338_v33 = vrot.slane %v3332_v28, 5  ;;  %v3358_v9 = vstv %s6793_s16  ;;  %v2602_v53 = vadd.f32 %v6624_v38, %v2551_v60 }
 0x2b1   : > { %v6845_v12 = vpop.permute.xlu0 %2765  ;;  %v2593_v62 = vsel %vm373_vm7, %v6613_v47, %v6650_v22  ;;  %v2634_v56 = vadd.f32 %v6693_v3, %v2606_v40  ;;  %v3340_v31 = vrot.slane %v3333_v58, 5  ;;  %v2552_v30 = vadd.f32 %v2542_v42, %v6513_v2 }
 0x2b2   : > { %v6834_v41 = vpop.permute.xlu1 %2704  ;;  %v2601_v20 = vadd.f32 %v2592_v29, %v2550_v10  ;;  %v2604_v52 = vadd.f32 %v6650_v22, %v2553_v4  ;;  %v2633_v14 = vadd.f32 %v6693_v3, %v2605_v59  ;;  %3310 = vrot.lane.b32.xlu0 %v3299_v21, %s4272_s8  ;;  %v2630_v38 = vadd.f32 %v7532_v6, %v2602_v53 }
 0x2b3   : > { %v2662_v36 = vadd.f32 %v6772_v57, %v2634_v56  ;;  %v6861_v47 = vmul.f32 %v3358_v9, %v6679_v37  ;;  %v6864_v54 = vmul.f32 %v6787_v17, %v3358_v9  ;;  %v2603_v2 = vadd.f32 %v2593_v62, %v2552_v30 }
 0x2b4   : > { %3304 = vrot.lane.b32.xlu1 %v3293_v61, %s4272_s8  ;;  %v2629_v22 = vadd.f32 %v7532_v6, %v2601_v20  ;;  %v2632_v3 = vadd.f32 %v6711_v24, %v2604_v52  ;;  %v2661_v27 = vadd.f32 %v6772_v57, %v2633_v14  ;;  %v2658_v7 = vadd.f32 %v6742_v45, %v2630_v38 }
 0x2b5   : > { %v6871_v15 = vpop.permute.xlu0 %2769  ;;  %v2731_v61 = vrot.slane %v6725_v44, 3  ;;  %v3301_v19 = vsel %vm1512_vm9, %v3296_v50, %v3300_v23  ;;  %v3386_v13 = vstv %s6831_s23  ;;  %v2631_v26 = vadd.f32 %v6711_v24, %v2603_v2 }
 0x2b6   : > { %v2709_v34 = vpop.permute.xlu1 %2708  ;;  %v2657_v5 = vadd.f32 %v6742_v45, %v2629_v22  ;;  %3342 = vrot.lane.b32.xlu0 %v3337_v43, %s4274_s30  ;;  %v3341_v1 = vsel %vm1512_vm9, %v3338_v33, %v3340_v31  ;;  %v2690_v11 = vadd.f32 %v6783_v51, %v2662_v36  ;;  %v3339_v21 = vsel %vm1512_vm9, %v3337_v43, %v3338_v33 }
 0x2b7   : > { %v3365_v44 = vrot.slane %v6861_v47, 5  ;;  %v3366_v18 = vrot.slane %v6864_v54, 5  ;;  %v2660_v50 = vadd.f32 %v6728_v63, %v2632_v3  ;;  %v6892_v45 = vmul.f32 %v3386_v13, %v6679_v37 }
 0x2b8   : > { %3308 = vrot.lane.b32.xlu1 %v3297_v35, %s4272_s8  ;;  %v2689_v35 = vadd.f32 %v6783_v51, %v2661_v27  ;;  %v3361_v28 = vmul.f32 %v3358_v9, %v6714_v25  ;;  %v2686_v55 = vadd.f32 %v6753_v8, %v2658_v7  ;;  %v2718_v32 = vadd.f32 %v2709_v34, %v2690_v11 }
 0x2b9   : > { %v2774_v24 = vpop.permute.xlu0 %2773  ;;  %v3388_v40 = vmul.f32 %v6787_v17, %v3386_v13  ;;  %v3389_v58 = vmul.f32 %v3386_v13, %v6714_v25  ;;  %v2659_v0 = vadd.f32 %v6728_v63, %v2631_v26  ;;  %v2685_v51 = vadd.f32 %v6753_v8, %v2657_v5 }
 0x2ba   : > { %v2768_v57 = vpop.permute.xlu1 %2767  ;;  %v2688_v46 = vadd.f32 %v6805_v49, %v2660_v50  ;;  %v2717_v59 = vadd.f32 %v2709_v34, %v2689_v35  ;;  %3346 = vrot.lane.b32.xlu0 %v3341_v1, %s4274_s30  ;;  %v2714_v60 = vadd.f32 %v6834_v41, %v2686_v55  ;;  %v2735_v42 = vrot.slane %v6791_v16, 3 }
 0x2bb   : > { %v3367_v29 = vsel %vm1512_vm9, %v3365_v44, %v3366_v18  ;;  %v3414_v23 = vstv %s6866_s5  ;;  %v2687_v10 = vadd.f32 %v6805_v49, %v2659_v0  ;;  %v2713_v63 = vadd.f32 %v6834_v41, %v2685_v51  ;;  %v6949_v51 = vld [vmem:[#allocation4 + $0x70] sm:$0x7]  ;;  %s7159_s5 = scalar_lea.hbm %s7211_s2, %s3986_s15 }
 0x2bc   : > { %3312 = vrot.lane.b32.xlu1 %v3301_v19, %s4272_s8  ;;  %v2732_v8 = vrot.slane %v6780_v39, 3  ;;  %v3393_v33 = vrot.slane %v6892_v45, 5  ;;  %v2748_v9 = vadd.f32 %v2735_v42, %v2718_v32  ;;  %v3368_v53 = vrot.slane %v3361_v28, 5  ;;  %v6941_v45 = vld [vmem:[#allocation4] sm:$0xff] }
 0x2bd   : > { %v2809_v4 = vpop.permute.xlu0 %2808  ;;  %v3394_v62 = vrot.slane %v3388_v40, 5  ;;  %v3396_v56 = vrot.slane %v3389_v58, 5  ;;  %v2716_v16 = vadd.f32 %v6818_v48, %v2688_v46  ;;  %v2747_v31 = vadd.f32 %v2731_v61, %v2717_v59 }
 0x2be   : > { %v2772_v43 = vpop.permute.xlu1 %2771  ;;  %3372 = vrot.lane.b32.xlu0 %v3367_v29, %s4273_s3  ;;  %v3415_v49 = vmul.f32 %v3414_v23, %v6679_v37  ;;  %v6917_v41 = vmul.f32 %v6787_v17, %v3414_v23  ;;  %v2744_v39 = vadd.f32 %v2732_v8, %v2714_v60  ;;  %v2777_v20 = vsel %vm330_vm6, %v6845_v12, %v2768_v57  ;;  %v6951_v60 = vld [vmem:[#allocation4 + $0x58] sm:$0xf8] }
 0x2bf   : > { %v2715_v34 = vadd.f32 %v6818_v48, %v2687_v10  ;;  %v2743_v6 = vadd.f32 %v2731_v61, %v2713_v63  ;;  %v2736_v38 = vsel %vm1022_vm5, %v2732_v8, %v2735_v42  ;;  %v2734_v54 = vsel %vm1022_vm5, %v2731_v61, %v2731_v61 }
 0x2c0   : > { %3344 = vrot.lane.b32.xlu1 %v3339_v21, %s4274_s30  ;;  %v2787_v2 = vadd.f32 %v2768_v57, %v2744_v39  ;;  %v3369_v22 = vsel %vm1512_vm9, %v3366_v18, %v3368_v53  ;;  %v3397_v12 = vsel %vm1512_vm9, %v3394_v62, %v3396_v56  ;;  %v3421_v7 = vrot.slane %v3415_v49, 5  ;;  %v6934_v57 = vld [vmem:[#allocation4 + $0x50] sm:$0xf8]  ;;  %v6962_v49 = vld [vmem:[#allocation4 + $0x78] sm:$0x7] }
 0x2c1   : > { %v2813_v47 = vpop.permute.xlu0 %2812  ;;  %v2786_v3 = vadd.f32 %v2777_v20, %v2743_v6  ;;  %v3422_v48 = vrot.slane %v6917_v41, 5  ;;  %v3482_v19 = vstv %s6902_s7  ;;  %v2746_v13 = vadd.f32 %v2736_v38, %v2716_v16 }
 0x2c2   : > { %v2776_v30 = vpop.permute.xlu1 %2775  ;;  %3398 = vrot.lane.b32.xlu0 %v3393_v33, %s4275_s27  ;;  %v2778_v26 = vsel %vm330_vm6, %v6871_v15, %v2772_v43  ;;  %v2745_v1 = vadd.f32 %v2734_v54, %v2715_v34  ;;  %v3395_v18 = vsel %vm1512_vm9, %v3393_v33, %v3394_v62  ;;  %v3417_v50 = vmul.f32 %v3414_v23, %v6714_v25 }
 0x2c3   : > { %v2779_v52 = vsel %vm330_vm6, %v2774_v24, %v2776_v30  ;;  %v2791_v14 = vadd.f32 %v2776_v30, %v2748_v9  ;;  %v3483_v15 = vmul.f32 %v3482_v19, %v6934_v57  ;;  %v3485_v28 = vmul.f32 %v6941_v45, %v3482_v19 }
 0x2c4   : > { %v2790_v36 = vadd.f32 %v2779_v52, %v2747_v31  ;;  %3370 = vrot.lane.b32.xlu1 %v3365_v44, %s4273_s3  ;;  %v2789_v44 = vadd.f32 %v2772_v43, %v2746_v13  ;;  %v2788_v35 = vadd.f32 %v2778_v26, %v2745_v1  ;;  %v3423_v40 = vsel %vm1512_vm9, %v3421_v7, %v3422_v48 }
 0x2c5   : > { %v2817_v21 = vpop.permute.xlu0 %2816  ;;  %v3424_v43 = vrot.slane %v3417_v50, 5  ;;  %v3495_v29 = vrot.slane %v3483_v15, 6  ;;  %v3497_v23 = vrot.slane %v3485_v28, 6  ;;  %v3487_v8 = vmul.f32 %v3482_v19, %v6949_v51 }
 0x2c6   : > { %v2811_v27 = vpop.permute.xlu1 %2810  ;;  %3402 = vrot.lane.b32.xlu0 %v3397_v12, %s4275_s27  ;;  %v3484_v9 = vmul.f32 %v3482_v19, %v6951_v60  ;;  %v3486_v56 = vmul.f32 %v6787_v17, %v3482_v19  ;;  %v3533_v52 = vstv %s6946_s6  ;;  %s4278_s6 = smov [#allocation10]  }
 0x2c7   : > { %v2820_v5 = vsel %vm373_vm7, %v2809_v4, %v2811_v27  ;;  %v2830_v61 = vadd.f32 %v2811_v27, %v2787_v2  ;;  %v3425_v62 = vsel %vm1512_vm9, %v3422_v48, %v3424_v43  ;;  %v3498_v30 = vsel %vm1774_vm10, %v3495_v29, %v3497_v23 }
 0x2c8   : > { %v2829_v11 = vadd.f32 %v2820_v5, %v2786_v3  ;;  %3374 = vrot.lane.b32.xlu1 %v3369_v22, %s4273_s3  ;;  %v3501_v20 = vrot.slane %v3487_v8, 6  ;;  %v3496_v34 = vrot.slane %v3484_v9, 6  ;;  %v3534_v2 = vmul.f32 %v3533_v52, %v6934_v57 }
 0x2c9   : > { %v2845_v0 = vpop.permute.xlu0 %2844  ;;  %v3536_v22 = vmul.f32 %v6941_v45, %v3533_v52 }
 0x2ca   : > { %v2815_v24 = vpop.permute.xlu1 %2814  ;;  %v2853_v46 = vadd.f32 %v2845_v0, %v2829_v11  ;;  %v2854_v59 = vadd.f32 %v2845_v0, %v2830_v61  ;;  %3428 = vrot.lane.b32.xlu0 %v3423_v40, %s4276_s24  ;;  %v3502_v27 = vsel %vm1774_vm10, %v3497_v23, %v3501_v20  ;;  %v3546_v61 = vrot.slane %v3534_v2, 6  ;;  %v4126_v40 = vld [vmem:[#allocation4 + $0x50] sm:$0xfe] }
 0x2cb   : > { %v2821_v55 = vsel %vm373_vm7, %v2813_v47, %v2815_v24  ;;  %v2832_v32 = vadd.f32 %v2815_v24, %v2789_v44  ;;  %v3488_v47 = vmul.f32 %v3482_v19, %v6962_v49  ;;  %v3548_v1 = vrot.slane %v3536_v22, 6 }
 0x2cc   : > { %v2831_v58 = vadd.f32 %v2821_v55, %v2788_v35  ;;  %3400 = vrot.lane.b32.xlu1 %v3395_v18, %s4275_s27  ;;  %v2938_v44 = vstv %s3959_s26  ;;  %v3538_v18 = vmul.f32 %v3533_v52, %v6949_v51  ;;  %v3535_v35 = vmul.f32 %v3533_v52, %v6951_v60  ;;  %s4181_s26 = sshll.u32 %s4278_s6, 4  ;;  %s4182_s26 = int_to_ptr.vmem [resolvable:$false] %s4181_s26 }
 0x2cd   : > { %v2849_v33 = vpop.permute.xlu0 %2848  ;;  %v3503_v26 = vrot.slane %v3488_v47, 6  ;;  %v3537_v55 = vmul.f32 %v6787_v17, %v3533_v52  ;;  %v3549_v0 = vsel %vm1774_vm10, %v3546_v61, %v3548_v1  ;;  %v4128_v47 = vld [vmem:[#allocation4 + $0x70] sm:$0x1] }
 0x2ce   : > { %v2819_v42 = vpop.permute.xlu1 %2818  ;;  %3505 = vrot.lane.b32.xlu0 %v3495_v29, %s4271_s28  ;;  %v3552_v43 = vrot.slane %v3538_v18, 6  ;;  %v6987_v29 = vmul.f32 %v6941_v45, %v2938_v44 }
 0x2cf   : > { %v2822_v10 = vsel %vm373_vm7, %v2817_v21, %v2819_v42  ;;  %v2834_v63 = vadd.f32 %v2819_v42, %v2791_v14  ;;  %v3584_v42 = vstv %s6971_s18  ;;  %s4183_s18 = scalar_lea.vmem %s4182_s26, 512 }
 0x2d0   : > { %v2833_v4 = vadd.f32 %v2822_v10, %v2790_v36  ;;  %3426 = vrot.lane.b32.xlu1 %v3421_v7, %s4276_s24  ;;  %v3499_v36 = vrot.slane %v3486_v56, 6  ;;  %v3547_v10 = vrot.slane %v3535_v35, 6  ;;  %v3553_v20 = vsel %vm1774_vm10, %v3548_v1, %v3552_v43 }
 0x2d1   : > { %v2858_v53 = vadd.f32 %v2849_v33, %v2834_v63  ;;  %v2871_v14 = vpop.permute.xlu0 %2870  ;;  %v4127_v63 = vld [vmem:[#allocation4 + $0x58] sm:$0xfe] }
 0x2d2   : > { %v2857_v16 = vadd.f32 %v2849_v33, %v2833_v4  ;;  %v2847_v31 = vpop.permute.xlu1 %2846  ;;  %3509 = vrot.lane.b32.xlu0 %v3498_v30, %s4271_s28  ;;  %v3500_v19 = vsel %vm1774_vm10, %v3496_v34, %v3499_v36  ;;  %v3504_v28 = vsel %vm1774_vm10, %v3499_v36, %v3503_v26  ;;  %v2940_v8 = vmul.f32 %v4127_v63, %v2938_v44 }
 0x2d3   : > { %v2855_v41 = vadd.f32 %v2847_v31, %v2831_v58  ;;  %v2856_v39 = vadd.f32 %v2847_v31, %v2832_v32  ;;  %v2939_v58 = vmul.f32 %v4126_v40, %v2938_v44  ;;  %v2942_v4 = vmul.f32 %v6787_v17, %v2938_v44 }
 0x2d4   : > { %3430 = vrot.lane.b32.xlu1 %v3425_v62, %s4276_s24  ;;  %v3539_v62 = vmul.f32 %v3533_v52, %v6962_v49  ;;  %v3586_v31 = vmul.f32 %v6787_v17, %v3584_v42  ;;  %v3587_v30 = vmul.f32 %v3584_v42, %v6962_v49 }
 0x2d5   : > { %v2879_v6 = vadd.f32 %v2871_v14, %v2855_v41  ;;  %v2880_v38 = vadd.f32 %v2871_v14, %v2856_v39  ;;  %v2893_v7 = vpop.permute.xlu0 %2892  ;;  %v3612_v14 = vstv %s6977_s20  ;;  %v2955_v36 = vrot.slane %v2942_v4, 4 }
 0x2d6   : > { %v2869_v54 = vpop.permute.xlu1 %2868  ;;  %3513 = vrot.lane.b32.xlu0 %v3502_v27, %s4271_s28  ;;  %v3554_v22 = vrot.slane %v3539_v62, 6 }
 0x2d7   : > { %v2877_v12 = vadd.f32 %v2869_v54, %v2853_v46  ;;  %v2878_v3 = vadd.f32 %v2869_v54, %v2854_v59  ;;  %v2943_v54 = vmul.f32 %v4128_v47, %v2938_v44 }
 0x2d8   : > { %3507 = vrot.lane.b32.xlu1 %v3496_v34, %s4271_s28  ;;  %v2951_v34 = vrot.slane %v2939_v58, 4 }
 0x2d9   : > { %v2901_v48 = vadd.f32 %v2893_v7, %v2877_v12  ;;  %v2902_v13 = vadd.f32 %v2893_v7, %v2878_v3  ;;  %v2897_v50 = vpop.permute.xlu0 %2896  ;;  %v4129_v12 = vld [vmem:[#allocation4 + $0x78] sm:$0x1] }
 0x2da   : > { %v2873_v5 = vpop.permute.xlu1 %2872  ;;  %3556 = vrot.lane.b32.xlu0 %v3546_v61, %s4272_s8  ;;  %v2944_v3 = vmul.f32 %v4129_v12, %v2938_v44  ;;  %v3614_v61 = vmul.f32 %v6787_v17, %v3612_v14 }
 0x2db   : > { %v2881_v11 = vadd.f32 %v2873_v5, %v2857_v16  ;;  %v2882_v21 = vadd.f32 %v2873_v5, %v2858_v53  ;;  %v3550_v53 = vrot.slane %v3537_v55, 6  ;;  %v3585_v16 = vmul.f32 %v3584_v42, %v6951_v60 }
 0x2dc   : > { %3511 = vrot.lane.b32.xlu1 %v3500_v19, %s4271_s28  ;;  %v3613_v19 = vmul.f32 %v3612_v14, %v6951_v60  ;;  %v3620_v58 = vrot.slane %v3614_v61, 6 }
 0x2dd   : > { %v2905_v24 = vadd.f32 %v2897_v50, %v2881_v11  ;;  %v2906_v15 = vadd.f32 %v2897_v50, %v2882_v21  ;;  %v2919_v23 = vpop.permute.xlu0 %2918  ;;  %v3551_v2 = vsel %vm1774_vm10, %v3547_v10, %v3550_v53  ;;  %v3591_v7 = vrot.slane %v3585_v16, 6 }
 0x2de   : > { %v2895_v32 = vpop.permute.xlu1 %2894  ;;  %3560 = vrot.lane.b32.xlu0 %v3549_v0, %s4272_s8  ;;  %v3555_v44 = vsel %vm1774_vm10, %v3550_v53, %v3554_v22  ;;  %v2959_v50 = vrot.slane %v2944_v3, 4  ;;  %v3619_v55 = vrot.slane %v3613_v19, 6 }
 0x2df   : > { %v2903_v46 = vadd.f32 %v2895_v32, %v2879_v6  ;;  %v2904_v59 = vadd.f32 %v2895_v32, %v2880_v38  ;;  %v2953_v6 = vrot.slane %v6987_v29, 4  ;;  %v2952_v38 = vrot.slane %v2940_v8, 4 }
 0x2e0   : > { %3515 = vrot.lane.b32.xlu1 %v3504_v28, %s4271_s28  ;;  %s6998_s28 = sld [smem:[#allocation9 + $0x60]]  ;;  %v2957_v28 = vrot.slane %v2943_v54, 4  ;;  %v2960_v29 = vsel %vm1250_vm8, %v2955_v36, %v2959_v50  ;;  %v3621_v16 = vsel %vm1774_vm10, %v3619_v55, %v3620_v58 }
 0x2e1   : > { %v2927_v33 = vadd.f32 %v2919_v23, %v2903_v46  ;;  %v2928_v9 = vadd.f32 %v2919_v23, %v2904_v59  ;;  %v2998_v52 = vpop.permute.xlu0 %2997  ;;  %v2954_v1 = vsel %vm1250_vm8, %v2951_v34, %v2953_v6  ;;  %v2956_v18 = vsel %vm1250_vm8, %v2952_v38, %v2955_v36 }
 0x2e2   : > { %v2917_v56 = vpop.permute.xlu1 %2916  ;;  %3564 = vrot.lane.b32.xlu0 %v3553_v20, %s4272_s8  ;;  %v3615_v23 = vmul.f32 %v3612_v14, %v6962_v49  ;;  %v2958_v62 = vsel %vm1250_vm8, %v2953_v6, %v2957_v28 }
 0x2e3   : > { %v2925_v41 = vadd.f32 %v2917_v56, %v2901_v48  ;;  %v2926_v39 = vadd.f32 %v2917_v56, %v2902_v13  ;;  %v3592_v48 = vrot.slane %v3586_v31, 6  ;;  %v3594_v13 = vrot.slane %v3587_v30, 6 }
 0x2e4   : > { %3558 = vrot.lane.b32.xlu1 %v3547_v10, %s4272_s8  ;;  %v2970_v43 = vadd.f32 %v2956_v18, %v2928_v9  ;;  %v2969_v10 = vadd.f32 %v2954_v1, %v2927_v33  ;;  %v3668_v33 = vstv %s7008_s19 }
 0x2e5   : > { %v3002_v11 = vpop.permute.xlu0 %3001  ;;  %v2968_v21 = vadd.f32 %v2952_v38, %v2926_v39  ;;  %v2967_v35 = vadd.f32 %v2951_v34, %v2925_v41  ;;  %v3593_v42 = vsel %vm1774_vm10, %v3591_v7, %v3592_v48  ;;  %v3622_v39 = vrot.slane %v3615_v23, 6 }
 0x2e6   : > { %v2921_v27 = vpop.permute.xlu1 %2920  ;;  %3596 = vrot.lane.b32.xlu0 %v3591_v7, %s4274_s30  ;;  %v3640_v0 = vstv %s6998_s28  ;;  %v3669_v47 = vmul.f32 %v3668_v33, %v6951_v60  ;;  %v3670_v54 = vmul.f32 %v6787_v17, %v3668_v33  ;;  %v3671_v1 = vmul.f32 %v3668_v33, %v6962_v49 }
 0x2e7   : > { %v2929_v26 = vadd.f32 %v2921_v27, %v2905_v24  ;;  %v2930_v5 = vadd.f32 %v2921_v27, %v2906_v15  ;;  %v3595_v15 = vsel %vm1774_vm10, %v3592_v48, %v3594_v13  ;;  %v3641_v8 = vmul.f32 %v3640_v0, %v6951_v60 }
 0x2e8   : > { %3562 = vrot.lane.b32.xlu1 %v3551_v2, %s4272_s8  ;;  %v3642_v4 = vmul.f32 %v6787_v17, %v3640_v0  ;;  %v3643_v53 = vmul.f32 %v3640_v0, %v6962_v49  ;;  %v3623_v12 = vsel %vm1774_vm10, %v3620_v58, %v3622_v39  ;;  %v3675_v13 = vrot.slane %v3669_v47, 6 }
 0x2e9   : > { %v3006_v59 = vpop.permute.xlu0 %3005  ;;  %v2972_v41 = vadd.f32 %v2960_v29, %v2930_v5  ;;  %v2971_v20 = vadd.f32 %v2958_v62, %v2929_v26  ;;  %v3647_v34 = vrot.slane %v3641_v8, 6  ;;  %v3676_v19 = vrot.slane %v3670_v54, 6 }
 0x2ea   : > { %v3000_v24 = vpop.permute.xlu1 %2999  ;;  %3600 = vrot.lane.b32.xlu0 %v3595_v15, %s4274_s30  ;;  %v3650_v38 = vrot.slane %v3643_v53, 6  ;;  %v3678_v15 = vrot.slane %v3671_v1, 6 }
 0x2eb   : > { %v3009_v32 = vsel %vm330_vm6, %v2998_v52, %v3000_v24  ;;  %v3019_v40 = vadd.f32 %v3000_v24, %v2968_v21  ;;  %v3648_v52 = vrot.slane %v3642_v4, 6  ;;  %v3677_v18 = vsel %vm1774_vm10, %v3675_v13, %v3676_v19 }
 0x2ec   : > { %v3018_v46 = vadd.f32 %v3009_v32, %v2967_v35  ;;  %3566 = vrot.lane.b32.xlu1 %v3555_v44, %s4272_s8  ;;  %s3966_s8 = sld [smem:[#allocation9 + $0x54]] }
 0x2ed   : > { %v3049_v30 = vpop.permute.xlu0 %3048  ;;  %v3651_v27 = vsel %vm1774_vm10, %v3648_v52, %v3650_v38  ;;  %v3649_v61 = vsel %vm1774_vm10, %v3647_v34, %v3648_v52 }
 0x2ee   : > { %v3004_v63 = vpop.permute.xlu1 %3003  ;;  %3626 = vrot.lane.b32.xlu0 %v3621_v16, %s4273_s3 }
 0x2ef   : > { %v3010_v9 = vsel %vm330_vm6, %v3002_v11, %v3004_v63  ;;  %v3021_v56 = vadd.f32 %v3004_v63, %v2970_v43 }
 0x2f0   : > { %v3020_v31 = vadd.f32 %v3010_v9, %v2969_v10  ;;  %3598 = vrot.lane.b32.xlu1 %v3593_v42, %s4274_s30  ;;  %s4277_s30 = smov 3  }
 0x2f1   : > { %v3053_v22 = vpop.permute.xlu0 %3052 }
 0x2f2   : > { %v3008_v14 = vpop.permute.xlu1 %3007  ;;  %3652 = vrot.lane.b32.xlu0 %v3647_v34, %s4275_s27  ;;  %v3192_v38 = vstv %s3966_s8 }
 0x2f3   : > { %v3011_v6 = vsel %vm330_vm6, %v3006_v59, %v3008_v14  ;;  %v3023_v36 = vadd.f32 %v3008_v14, %v2972_v41  ;;  %v3679_v59 = vsel %vm1774_vm10, %v3676_v19, %v3678_v15  ;;  %v3198_v19 = vmul.f32 %v3192_v38, %v6714_v25 }
 0x2f4   : > { %v3022_v2 = vadd.f32 %v3011_v6, %v2971_v20  ;;  %3624 = vrot.lane.b32.xlu1 %v3619_v55, %s4273_s3 }
 0x2f5   : > { %v3057_v5 = vpop.permute.xlu0 %3056 }
 0x2f6   : > { %v3051_v3 = vpop.permute.xlu1 %3050  ;;  %3656 = vrot.lane.b32.xlu0 %v3651_v27, %s4275_s27 }
 0x2f7   : > { %v3060_v7 = vsel %vm373_vm7, %v3049_v30, %v3051_v3  ;;  %v3070_v48 = vadd.f32 %v3051_v3, %v3019_v40 }
 0x2f8   : > { %v3069_v26 = vadd.f32 %v3060_v7, %v3018_v46  ;;  %3628 = vrot.lane.b32.xlu1 %v3623_v12, %s4273_s3  ;;  %s3973_s3 = sld [smem:[#allocation9 + $0x5b]] }
 0x2f9   : > { %v3089_v35 = vpop.permute.xlu0 %3088 }
 0x2fa   : > { %v3055_v11 = vpop.permute.xlu1 %3054  ;;  %v3097_v28 = vadd.f32 %v3089_v35, %v3069_v26  ;;  %v3098_v24 = vadd.f32 %v3089_v35, %v3070_v48  ;;  %3682 = vrot.lane.b32.xlu0 %v3677_v18, %s4276_s24 }
 0x2fb   : > { %v3061_v21 = vsel %vm373_vm7, %v3053_v22, %v3055_v11  ;;  %v3072_v44 = vadd.f32 %v3055_v11, %v3021_v56  ;;  %v3196_v22 = vmul.f32 %v6787_v17, %v3192_v38 }
 0x2fc   : > { %v3071_v50 = vadd.f32 %v3061_v21, %v3020_v31  ;;  %3654 = vrot.lane.b32.xlu1 %v3649_v61, %s4275_s27  ;;  %s3882_s27 = sshll.u32 %s4441_s4, 4 }
 0x2fd   : > { %v3093_v0 = vpop.permute.xlu0 %3092 }
 0x2fe   : > { %v3059_v55 = vpop.permute.xlu1 %3058 }
 0x2ff   : > { %v3062_v32 = vsel %vm373_vm7, %v3057_v5, %v3059_v55  ;;  %v3074_v40 = vadd.f32 %v3059_v55, %v3023_v36 }
 0x300   : > { %v3073_v58 = vadd.f32 %v3062_v32, %v3022_v2  ;;  %3680 = vrot.lane.b32.xlu1 %v3675_v13, %s4276_s24  ;;  %v3194_v2 = vmul.f32 %v3192_v38, %v6679_v37  ;;  %v3209_v13 = vrot.slane %v3196_v22, 5  ;;  %v3213_v37 = vrot.slane %v3198_v19, 5 }
 0x301   : > { %v3102_v46 = vadd.f32 %v3093_v0, %v3074_v40  ;;  %v3119_v10 = vpop.permute.xlu0 %3118 }
 0x302   : > { %v3101_v43 = vadd.f32 %v3093_v0, %v3073_v58  ;;  %v3091_v42 = vpop.permute.xlu1 %3090  ;;  %v3206_v48 = vrot.slane %v3194_v2, 5 }
 0x303   : > { %v3099_v29 = vadd.f32 %v3091_v42, %v3071_v50  ;;  %v3100_v23 = vadd.f32 %v3091_v42, %v3072_v44 }
 0x304   : > { %3684 = vrot.lane.b32.xlu1 %v3679_v59, %s4276_s24  ;;  %v3210_v21 = vsel %vm1512_vm9, %v3206_v48, %v3209_v13  ;;  %s192_s24 = scalar_lea.vmem [#allocation10], %s3882_s27 }
 0x305   : > { %v3127_v63 = vadd.f32 %v3119_v10, %v3099_v29  ;;  %v3128_v8 = vadd.f32 %v3119_v10, %v3100_v23  ;;  %v3145_v9 = vpop.permute.xlu0 %3144  ;;  %s3775_s17 = sshll.u32 %s192_s24, 4  ;;  %s7153_s17 = int_to_ptr.vmem [resolvable:$true] %s3775_s17 }
 0x306   : > { %v3117_v4 = vpop.permute.xlu1 %3116  ;;  %s4177_s7 = scalar_lea.vmem %s7153_s17, 256  ;;  %p4184_p0 = scmp.lt.s32.totalorder %s7153_s17, %s4182_s26 }
 0x307   : > { %v3125_v53 = vadd.f32 %v3117_v4, %v3097_v28  ;;  %v3126_v62 = vadd.f32 %v3117_v4, %v3098_v24  ;;  %v3214_v28 = vsel %vm1512_vm9, %v3209_v13, %v3213_v37  ;;  %p4178_p12 = scmp.ne.s32.totalorder %s7153_s17, %s4177_s7  ;;  %p4185_p1 = scmp.lt.s32.totalorder %s4183_s18, %s4177_s7 }
 0x309   : > { %v3153_v56 = vadd.f32 %v3145_v9, %v3125_v53  ;;  %v3154_v16 = vadd.f32 %v3145_v9, %v3126_v62  ;;  %v3149_v41 = vpop.permute.xlu0 %3148  ;;  %p4179_p13 = pnand %p4178_p12, %p7533_p2  ;;  %p4186_p9 = por %p4185_p1, %p4184_p0 }
 0x30a   : > { %v3121_v31 = vpop.permute.xlu1 %3120 }
 0x30b   : > { %v3129_v30 = vadd.f32 %v3121_v31, %v3101_v43  ;;  %v3130_v33 = vadd.f32 %v3121_v31, %v3102_v46  ;;  %v3195_v31 = vmul.f32 %v6941_v45, %v3192_v38  ;;  %p4180_p6 = pneg %p4179_p13 }
 0x30d   : > { %v3157_v39 = vadd.f32 %v3149_v41, %v3129_v30  ;;  %v3158_v20 = vadd.f32 %v3149_v41, %v3130_v33  ;;  %v3175_v6 = vpop.permute.xlu0 %3174  ;;  %v4131_v41 = vld [vmem:[#allocation4 + $0x70] sm:$0x3]  ;;  %p4187_p8 = pnand %p4186_p9, %p4180_p6 }
 0x30e   : > { %v3147_v14 = vpop.permute.xlu1 %3146 }
 0x30f   : > { %v3155_v34 = vadd.f32 %v3147_v14, %v3127_v63  ;;  %v3156_v52 = vadd.f32 %v3147_v14, %v3128_v8  ;;  %v3207_v14 = vrot.slane %v3195_v31, 5 }
 0x311   : > { %v3183_v36 = vadd.f32 %v3175_v6, %v3155_v34  ;;  %v3184_v47 = vadd.f32 %v3175_v6, %v3156_v52  ;;  %v7054_v27 = vpop.permute.xlu0 %3251 }
 0x312   : > { %v3173_v54 = vpop.permute.xlu1 %3172 }
 0x313   : > { %v7052_v12 = vadd.f32 %v3173_v54, %v3153_v56  ;;  %v3182_v3 = vadd.f32 %v3173_v54, %v3154_v16  ;;  %v3224_v50 = vadd.f32 %v3210_v21, %v3184_v47  ;;  %v4130_v56 = vld [vmem:[#allocation4 + $0x50] sm:$0xfc]  ;;  %v3446_v21 = vstv %s3973_s3 }
 0x314   : > { %v3193_v16 = vmul.f32 %v4130_v56, %v3192_v38 }
 0x315   : > { %v3256_v61 = vpop.permute.xlu0 %3255  ;;  %v3222_v1 = vadd.f32 %v3206_v48, %v3182_v3 }
 0x316   : > { %v3177_v7 = vpop.permute.xlu1 %3176 }
 0x317   : > { %v3185_v26 = vadd.f32 %v3177_v7, %v3157_v39  ;;  %v3186_v5 = vadd.f32 %v3177_v7, %v3158_v20  ;;  %v3197_v39 = vmul.f32 %v4131_v41, %v3192_v38  ;;  %v3205_v20 = vrot.slane %v3193_v16, 5 }
 0x319   : > { %v3260_v18 = vpop.permute.xlu0 %3259  ;;  %v3226_v55 = vadd.f32 %v3214_v28, %v3186_v5  ;;  %v3211_v6 = vrot.slane %v3197_v39, 5  ;;  %v3208_v47 = vsel %vm1512_vm9, %v3205_v20, %v3207_v14 }
 0x31a   : > { %v3254_v11 = vpop.permute.xlu1 %3253  ;;  %v3223_v3 = vadd.f32 %v3208_v47, %v3183_v36 }
 0x31b   : > { %v7058_v44 = vadd.f32 %v3254_v11, %v3222_v1  ;;  %v3212_v7 = vsel %vm1512_vm9, %v3207_v14, %v3211_v6  ;;  %v3263_v1 = vsel %vm330_vm6, %v7054_v27, %v3254_v11 }
 0x31c   : > { %v3225_v5 = vadd.f32 %v3212_v7, %v3185_v26  ;;  %v3447_v26 = vmul.f32 %v3446_v21, %v6934_v57 }
 0x31d   : > { %v3303_v15 = vpop.permute.xlu0 %3302 }
 0x31e   : > { %v3258_v35 = vpop.permute.xlu1 %3257  ;;  %v3459_v14 = vrot.slane %v3447_v26, 6 }
 0x31f   : > { %v3275_v24 = vadd.f32 %v3258_v35, %v3224_v50  ;;  %v3264_v2 = vsel %vm330_vm6, %v3256_v61, %v3258_v35  ;;  %v3221_v61 = vadd.f32 %v3205_v20, %v7052_v12 }
 0x320   : > { %v3274_v13 = vadd.f32 %v3264_v2, %v3223_v3 }
 0x321   : > { %v3307_v40 = vpop.permute.xlu0 %3306  ;;  %v3272_v56 = vadd.f32 %v3263_v1, %v3221_v61 }
 0x322   : > { %v3262_v32 = vpop.permute.xlu1 %3261 }
 0x323   : > { %v3277_v25 = vadd.f32 %v3262_v32, %v3226_v55  ;;  %v3265_v19 = vsel %vm330_vm6, %v3260_v18, %v3262_v32  ;;  %v3449_v32 = vmul.f32 %v6941_v45, %v3446_v21  ;;  %v3451_v45 = vmul.f32 %v3446_v21, %v6949_v51 }
 0x324   : > { %v3276_v28 = vadd.f32 %v3265_v19, %v3225_v5 }
 0x325   : > { %v3311_v0 = vpop.permute.xlu0 %3310 }
 0x326   : > { %v3305_v58 = vpop.permute.xlu1 %3304 }
 0x327   : > { %v3314_v55 = vsel %vm373_vm7, %v3303_v15, %v3305_v58  ;;  %v3324_v27 = vadd.f32 %v3305_v58, %v7058_v44  ;;  %v3450_v15 = vmul.f32 %v6787_v17, %v3446_v21  ;;  %v3461_v58 = vrot.slane %v3449_v32, 6 }
 0x328   : > { %v3323_v12 = vadd.f32 %v3314_v55, %v3272_v56 }
 0x329   : > { %v3343_v59 = vpop.permute.xlu0 %3342  ;;  %v3463_v2 = vrot.slane %v3450_v15, 6  ;;  %v3462_v5 = vsel %vm1774_vm10, %v3459_v14, %v3461_v58 }
 0x32a   : > { %v3309_v46 = vpop.permute.xlu1 %3308  ;;  %v3351_v39 = vadd.f32 %v3343_v59, %v3323_v12 }
 0x32b   : > { %v3315_v38 = vsel %vm373_vm7, %v3307_v40, %v3309_v46  ;;  %v3326_v36 = vadd.f32 %v3309_v46, %v3275_v24  ;;  %v3352_v24 = vadd.f32 %v3343_v59, %v3324_v27 }
 0x32c   : > { %v3325_v50 = vadd.f32 %v3315_v38, %v3274_v13  ;;  %v3465_v13 = vrot.slane %v3451_v45, 6 }
 0x32d   : > { %v7061_v42 = vpop.permute.xlu0 %3346 }
 0x32e   : > { %v3313_v43 = vpop.permute.xlu1 %3312 }
 0x32f   : > { %v3316_v35 = vsel %vm373_vm7, %v3311_v0, %v3313_v43  ;;  %v3328_v46 = vadd.f32 %v3313_v43, %v3277_v25  ;;  %v3448_v0 = vmul.f32 %v3446_v21, %v6951_v60  ;;  %v3452_v60 = vmul.f32 %v3446_v21, %v6962_v49 }
 0x330   : > { %v3327_v11 = vadd.f32 %v3316_v35, %v3276_v28  ;;  %v3466_v28 = vsel %vm1774_vm10, %v3461_v58, %v3465_v13 }
 0x331   : > { %v3373_v23 = vpop.permute.xlu0 %3372  ;;  %v3356_v17 = vadd.f32 %v7061_v42, %v3328_v46  ;;  %v3467_v49 = vrot.slane %v3452_v60, 6 }
 0x332   : > { %v3345_v29 = vpop.permute.xlu1 %3344  ;;  %v3355_v57 = vadd.f32 %v7061_v42, %v3327_v11 }
 0x333   : > { %v3353_v16 = vadd.f32 %v3345_v29, %v3325_v50  ;;  %v3354_v18 = vadd.f32 %v3345_v29, %v3326_v36  ;;  %v3468_v56 = vsel %vm1774_vm10, %v3463_v2, %v3467_v49 }
 0x335   : > { %v7065_v63 = vpop.permute.xlu0 %3398  ;;  %v3381_v20 = vadd.f32 %v3373_v23, %v3353_v16  ;;  %v3382_v29 = vadd.f32 %v3373_v23, %v3354_v18  ;;  %v3460_v23 = vrot.slane %v3448_v0, 6 }
 0x336   : > { %v7063_v10 = vpop.permute.xlu1 %3370 }
 0x337   : > { %v3380_v44 = vadd.f32 %v7063_v10, %v3352_v24  ;;  %v3379_v47 = vadd.f32 %v7063_v10, %v3351_v39  ;;  %v3464_v21 = vsel %vm1774_vm10, %v3460_v23, %v3463_v2 }
 0x339   : > { %v7069_v4 = vpop.permute.xlu0 %3402  ;;  %v3408_v7 = vadd.f32 %v7065_v63, %v3380_v44  ;;  %v3407_v19 = vadd.f32 %v7065_v63, %v3379_v47 }
 0x33a   : > { %v7067_v8 = vpop.permute.xlu1 %3374 }
 0x33b   : > { %v3383_v59 = vadd.f32 %v7067_v8, %v3355_v57  ;;  %v3384_v38 = vadd.f32 %v7067_v8, %v3356_v17 }
 0x33d   : > { %v7071_v62 = vpop.permute.xlu0 %3428  ;;  %v3411_v42 = vadd.f32 %v7069_v4, %v3383_v59  ;;  %v3412_v50 = vadd.f32 %v7069_v4, %v3384_v38 }
 0x33e   : > { %v3401_v53 = vpop.permute.xlu1 %3400 }
 0x33f   : > { %v3409_v25 = vadd.f32 %v3401_v53, %v3381_v20  ;;  %v3410_v43 = vadd.f32 %v3401_v53, %v3382_v29 }
 0x341   : > { %v7076_v30 = vpop.permute.xlu0 %3505  ;;  %v3437_v10 = vadd.f32 %v7071_v62, %v3409_v25  ;;  %v3438_v53 = vadd.f32 %v7071_v62, %v3410_v43 }
 0x342   : > { %v7073_v9 = vpop.permute.xlu1 %3426 }
 0x343   : > { %v3436_v1 = vadd.f32 %v7073_v9, %v3408_v7  ;;  %v3435_v8 = vadd.f32 %v7073_v9, %v3407_v19  ;;  %v3477_v35 = vadd.f32 %v3462_v5, %v3437_v10  ;;  %v3478_v55 = vadd.f32 %v3464_v21, %v3438_v53 }
 0x345   : > { %v7080_v34 = vpop.permute.xlu0 %3509  ;;  %v3476_v18 = vadd.f32 %v3460_v23, %v3436_v1  ;;  %v3475_v27 = vadd.f32 %v3459_v14, %v3435_v8 }
 0x346   : > { %v7078_v33 = vpop.permute.xlu1 %3430 }
 0x347   : > { %v3439_v63 = vadd.f32 %v7078_v33, %v3411_v42  ;;  %v3440_v16 = vadd.f32 %v7078_v33, %v3412_v50 }
 0x349   : > { %v7085_v54 = vpop.permute.xlu0 %3513  ;;  %v3479_v12 = vadd.f32 %v3466_v28, %v3439_v63  ;;  %v3480_v39 = vadd.f32 %v3468_v56, %v3440_v16 }
 0x34a   : > { %v7082_v52 = vpop.permute.xlu1 %3507 }
 0x34b   : > { %v3517_v4 = vsel %vm330_vm6, %v7076_v30, %v7082_v52  ;;  %v3527_v24 = vadd.f32 %v7082_v52, %v3476_v18 }
 0x34c   : > { %v3526_v30 = vadd.f32 %v3517_v4, %v3475_v27 }
 0x34d   : > { %v7092_v48 = vpop.permute.xlu0 %3556 }
 0x34e   : > { %v7088_v22 = vpop.permute.xlu1 %3511 }
 0x34f   : > { %v3518_v62 = vsel %vm330_vm6, %v7080_v34, %v7088_v22  ;;  %v3529_v34 = vadd.f32 %v7088_v22, %v3478_v55 }
 0x350   : > { %v3528_v11 = vadd.f32 %v3518_v62, %v3477_v35 }
 0x351   : > { %v3561_v40 = vpop.permute.xlu0 %3560 }
 0x352   : > { %v7097_v37 = vpop.permute.xlu1 %3515 }
 0x353   : > { %v3519_v32 = vsel %vm330_vm6, %v7085_v54, %v7097_v37  ;;  %v3531_v52 = vadd.f32 %v7097_v37, %v3480_v39 }
 0x354   : > { %v3530_v20 = vadd.f32 %v3519_v32, %v3479_v12 }
 0x355   : > { %v3565_v41 = vpop.permute.xlu0 %3564 }
 0x356   : > { %v7105_v31 = vpop.permute.xlu1 %3558 }
 0x357   : > { %v3568_v33 = vsel %vm373_vm7, %v7092_v48, %v7105_v31  ;;  %v3578_v14 = vadd.f32 %v7105_v31, %v3527_v24 }
 0x358   : > { %v3577_v29 = vadd.f32 %v3568_v33, %v3526_v30 }
 0x359   : > { %v3597_v3 = vpop.permute.xlu0 %3596 }
 0x35a   : > { %v3563_v6 = vpop.permute.xlu1 %3562  ;;  %v3605_v45 = vadd.f32 %v3597_v3, %v3577_v29  ;;  %v3606_v48 = vadd.f32 %v3597_v3, %v3578_v14 }
 0x35b   : > { %v3569_v9 = vsel %vm373_vm7, %v3561_v40, %v3563_v6  ;;  %v3580_v40 = vadd.f32 %v3563_v6, %v3529_v34 }
 0x35c   : > { %v3579_v0 = vadd.f32 %v3569_v9, %v3528_v11 }
 0x35d   : > { %v3601_v61 = vpop.permute.xlu0 %3600 }
 0x35e   : > { %v3567_v51 = vpop.permute.xlu1 %3566 }
 0x35f   : > { %v3570_v15 = vsel %vm373_vm7, %v3565_v41, %v3567_v51  ;;  %v3582_v47 = vadd.f32 %v3567_v51, %v3531_v52 }
 0x360   : > { %v3581_v44 = vadd.f32 %v3570_v15, %v3530_v20 }
 0x361   : > { %v3627_v26 = vpop.permute.xlu0 %3626  ;;  %v3610_v7 = vadd.f32 %v3601_v61, %v3582_v47 }
 0x362   : > { %v3599_v36 = vpop.permute.xlu1 %3598  ;;  %v3609_v17 = vadd.f32 %v3601_v61, %v3581_v44 }
 0x363   : > { %v3607_v54 = vadd.f32 %v3599_v36, %v3579_v0  ;;  %v3608_v57 = vadd.f32 %v3599_v36, %v3580_v40 }
 0x365   : > { %v3653_v22 = vpop.permute.xlu0 %3652  ;;  %v3635_v43 = vadd.f32 %v3627_v26, %v3607_v54  ;;  %v3636_v6 = vadd.f32 %v3627_v26, %v3608_v57 }
 0x366   : > { %v3625_v46 = vpop.permute.xlu1 %3624 }
 0x367   : > { %v3633_v60 = vadd.f32 %v3625_v46, %v3605_v45  ;;  %v3634_v41 = vadd.f32 %v3625_v46, %v3606_v48 }
 0x369   : > { %v3657_v25 = vpop.permute.xlu0 %3656  ;;  %v3661_v13 = vadd.f32 %v3653_v22, %v3633_v60  ;;  %v3662_v19 = vadd.f32 %v3653_v22, %v3634_v41 }
 0x36a   : > { %v3629_v58 = vpop.permute.xlu1 %3628 }
 0x36b   : > { %v3637_v31 = vadd.f32 %v3629_v58, %v3609_v17  ;;  %v3638_v53 = vadd.f32 %v3629_v58, %v3610_v7 }
 0x36d   : > { %v3683_v38 = vpop.permute.xlu0 %3682  ;;  %v3665_v1 = vadd.f32 %v3657_v25, %v3637_v31  ;;  %v3666_v62 = vadd.f32 %v3657_v25, %v3638_v53 }
 0x36e   : > { %v3655_v59 = vpop.permute.xlu1 %3654 }
 0x36f   : > { %v3663_v23 = vadd.f32 %v3655_v59, %v3635_v43  ;;  %v3664_v2 = vadd.f32 %v3655_v59, %v3636_v6 }
 0x371   : > { %v3691_v37 = vadd.f32 %v3683_v38, %v3663_v23  ;;  %v3692_v10 = vadd.f32 %v3683_v38, %v3664_v2 }
 0x372   : > { %v3681_v49 = vpop.permute.xlu1 %3680 }
 0x373   : > { %v3697_v3 = vsub.f32 0.0, %v3691_v37  ;;  %v3698_v51 = vsub.f32 0.0, %v3692_v10  ;;  %v3689_v42 = vadd.f32 %v3681_v49, %v3661_v13  ;;  %v3690_v5 = vadd.f32 %v3681_v49, %v3662_v19 }
 0x375   : > { %v3705_v21 = vmul.f32 1.442695, %v3697_v3  ;;  %v3707_v8 = vmul.f32 1.442695, %v3698_v51  ;;  %v3695_v50 = vsub.f32 0.0, %v3689_v42  ;;  %v3696_v63 = vsub.f32 0.0, %v3690_v5 }
 0x376   : > { %v3685_v36 = vpop.permute.xlu1 %3684 }
 0x377   : > { %4073 = vpow2.f32 %v3705_v21  ;;  %v3701_v61 = vmul.f32 1.442695, %v3695_v50  ;;  %v3703_v35 = vmul.f32 1.442695, %v3696_v63  ;;  %v3693_v28 = vadd.f32 %v3685_v36, %v3665_v1 }
 0x378   : > { %4075 = vpow2.f32 %v3707_v8  ;;  %v3694_v55 = vadd.f32 %v3685_v36, %v3666_v62 }
 0x379   : > { %4077 = vpow2.f32 %v3701_v61  ;;  %v3699_v56 = vsub.f32 0.0, %v3693_v28 }
 0x37a   : > { %4079 = vpow2.f32 %v3703_v35  ;;  %v3700_v16 = vsub.f32 0.0, %v3694_v55 }
 0x37b   : > { %v3709_v18 = vmul.f32 1.442695, %v3699_v56 }
 0x37c   : > { %v3711_v4 = vmul.f32 1.442695, %v3700_v16 }
 0x37d   : > { %4081 = vpow2.f32 %v3709_v18 }
 0x37e   : > { %4083 = vpow2.f32 %v3711_v4 }
 0x381   : > { %v4074_v9 = vpop.eup %4073 }
 0x382   : > { %v4076_v26 = vpop.eup %4075  ;;  %v3715_v12 = vadd.f32 1.0, %v4074_v9 }
 0x383   : > { %v4078_v27 = vpop.eup %4077  ;;  %v3716_v33 = vadd.f32 1.0, %v4076_v26 }
 0x384   : > { %v4080_v11 = vpop.eup %4079  ;;  %v3713_v34 = vadd.f32 1.0, %v4078_v27 }
 0x385   : > { %v3714_v32 = vadd.f32 1.0, %v4080_v11 }
 0x386   : > { %4085 = vrcp.f32 %v3713_v34 }
 0x387   : > { %v4082_v24 = vpop.eup %4081  ;;  %4087 = vrcp.f32 %v3714_v32 }
 0x388   : > { %v4084_v46 = vpop.eup %4083  ;;  %4089 = vrcp.f32 %v3715_v12  ;;  %v3717_v30 = vadd.f32 1.0, %v4082_v24 }
 0x389   : > { %4091 = vrcp.f32 %v3716_v33  ;;  %v3718_v0 = vadd.f32 1.0, %v4084_v46 }
 0x38a   : > { %4093 = vrcp.f32 %v3717_v30 }
 0x38b   : > { %4095 = vrcp.f32 %v3718_v0 }
 0x390   : > { %v4086_v40 = vpop.eup %4085 }
 0x391   : > { %v4088_v15 = vpop.eup %4087  ;;  %3737 = vrot.lane.b32.xlu0 %v4086_v40, %s4277_s30 }
 0x392   : > { %3739 = vrot.lane.b32.xlu1 %v4088_v15, %s4277_s30  ;;  %v4090_v39 = vpop.eup %4089 }
 0x393   : > { %v4092_v20 = vpop.eup %4091 }
 0x394   : > { %v4094_v22 = vpop.eup %4093 }
 0x395   : > { %3741 = vrot.lane.b32.xlu0 %v4090_v39, %s4277_s30  ;;  %v4096_v29 = vpop.eup %4095 }
 0x396   : > { %3743 = vrot.lane.b32.xlu1 %v4092_v20, %s4277_s30 }
 0x399   : > { %3745 = vrot.lane.b32.xlu0 %v4094_v22, %s4277_s30 }
 0x39a   : > { %3747 = vrot.lane.b32.xlu1 %v4096_v29, %s4277_s30 }
 0x403   : > { %v3738_v14 = vpop.permute.xlu0 %3737 }
 0x404   : > { %v3740_v54 = vpop.permute.xlu1 %3739 }
 0x405   : > { %v3750_v57 = vsel %vm3749_vm11, %v3738_v14, %v3740_v54 }
 0x406   : > { %3757 = vst.msk [vmem:[%s192_s24 - $0x5] sm:$0xe0] %vm3756_vm12, %v3750_v57 }
 0x407   : > { %v3742_v52 = vpop.permute.xlu0 %3741 }
 0x408   : > { %v3744_v44 = vpop.permute.xlu1 %3743 }
 0x409   : > { %v3751_v58 = vsel %vm3749_vm11, %v3742_v52, %v3744_v44 }
 0x40a   : > { %3758 = vst.msk [vmem:[%s192_s24 + $0x3] sm:$0xff] %vm198_vm1, %v3751_v58 }
 0x40b   : > { %v3746_v45 = vpop.permute.xlu0 %3745 }
 0x40c   : > { %v3748_v48 = vpop.permute.xlu1 %3747 }
 0x40d   : > { %v3752_v47 = vsel %vm3749_vm11, %v3746_v45, %v3748_v48 }
 0x40e   : > { %3760 = vst.msk [vmem:[%s192_s24 + $0xb] sm:$0x1f] %vm3759_vm13, %v3752_v47 }
 0x40f   : > { %4190 = shalt.err (!%p4187_p8)
}
 0x410   : > { %s4191_s20 = scalar_lea.hbm %s7159_s5, 256  ;;  %s4195_s8 = scalar_lea.hbm %s7211_s2, 512 }
 0x411   : > { %p4192_p4 = scmp.ne.s32.totalorder %s7159_s5, %s4191_s20  ;;  %p4196_p5 = scmp.lt.u32.totalorder %s7159_s5, %s7211_s2 }
 0x412   : > { %p4197_p3 = scmp.lt.u32.totalorder %s4195_s8, %s4191_s20  ;;  %p4199_p12 = scmp.lt.u32.totalorder %s4191_s20, %s7159_s5 }
 0x413   : > { %p4193_p10 = pnand %p4192_p4, %p7533_p2 }
 0x414   : > { %p4198_p7 = por %p4197_p3, %p4196_p5 }
 0x415   : > { %p4194_p11 = pneg %p4193_p10 }
 0x416   : > { %p4200_p13 = por %p4199_p12, %p4198_p7 }
 0x418   : > { %p4201_p6 = pnand %p4200_p13, %p4194_p11 }
 0x41a   : > { %4204 = shalt.err (!%p4201_p6)
}
 0x41b   : > { %s4279_s27 = smov 128   ;;  %s4280_s24 = smov 8  }
 0x41c   : > { %3993 = dma.vmem_to_hbm [thread:$0]  (%p7533_p2), %s7153_s17, 256, %s7159_s5, %s3762_s12, %s4279_s27, %s4279_s27, %s4280_s24  }
 0x41d PF: > { %s3790_s15 = sand.u32 1, %s4243_s9   ;;  %p7534_p0 = scmp.ne.s32.totalorder %s7316_s22, 0 }
 0x41e   : > { %p7535_p1 = scmp.ge.s32.totalorder %s4263_s14, 2  ;;  %s3791_s16 = scalar_lea.sflag [#allocation7], %s3790_s15 }
 0x420   : > { %p4004_p9 = pnand %p7535_p1, %p7534_p0 }
 0x422   : > { %4238 = dma.done.wait (!%p4004_p9), %s3791_s16, 256  }
 0x423   : > { %4240 = vsyncadd (!%p4004_p9), %s3791_s16, 4294967040  ;;  %s19_s14 = sadd.s32 1, %s4263_s14   ;;  %s7536_s9 = smov %s4247_s10 }
 0x424   : > { %p16_p8 = scmp.ge.s32.totalorder %s19_s14, 4   ;;  %s7537_s10 = smov %s4251_s11 }
 0x425   : > { %s7538_s11 = smov %s4406_s25  ;;  %s7539_s12 = smov %s4259_s13 }
 0x426   : > { %s7540_s13 = smov %s7542_s29  ;;  %18 = sbr.rel (!%p16_p8) target bundleno = 7 (0x7), region = 87 }
 0x42d   :  { %3796 = vsyncpa [#allocation6], 1 }
 0x42e   :  { %3798 = vsyncpa [#allocation6 + $0x1], 1 }
 0x42f   :  { %3799 = vsyncpa [#allocation7], 1 }
 0x430   :  { %3801 = vsyncpa [#allocation7 + $0x1], 1 }
 0x431   :  { %3802 = vsyncpa [#allocation8], 1 }
 0x432   :  { %3804 = vsyncpa [#allocation8 + $0x1], 1 }

</bundles_post_ra>
